<compile_context>
chip_gen: v6e
topology: v6e:2x2x1
jax: 0.10.0
libtpu: 0.0.40
codegen_flags: <defaults>
</compile_context>

<pallas_src>
import functools

import jax
import jax.numpy as jnp
from jax.experimental import pallas as pl
from jax.experimental.pallas import tpu as pltpu


# ----------------------------------------------------------------------------
# Hardware-aware knobs
# ----------------------------------------------------------------------------

def _vmem_limit_bytes():
    """Generation-aware scoped-VMEM limit (~40 MiB on v7x, 64 MiB on v5e/v6e)."""
    cap = 128 * 1024 * 1024
    try:
        info_cap = int(pltpu.get_tpu_info().vmem_capacity_bytes)
        if info_cap >= 32 * 1024 * 1024:
            cap = info_cap
    except Exception:
        pass
    return min(int(cap * 0.62), 64 * 1024 * 1024)


_VMEM_LIMIT = _vmem_limit_bytes()
# Weights up to this size are kept fully VMEM-resident inside linear / ln_linear.
_RESIDENT_W_BYTES = min(12 * 1024 * 1024, _VMEM_LIMIT // 3)


def _pick_tile(dim, target, align):
    """Largest multiple of `align` <= target that divides `dim`, else full dim
    (full-dim blocks are always legal on TPU).  Callers keep awkward dims small."""
    if dim <= target or dim % align != 0:
        return dim
    t = min(target, dim) - (min(target, dim) % align)
    while t >= align:
        if dim % t == 0:
            return t
        t -= align
    return dim


def _sublane_align(dtype):
    # bf16 packs 16 rows per vreg -> align row tiles to 16; f32 -> 8.
    return 16 if jnp.dtype(dtype).itemsize == 2 else 8


# ----------------------------------------------------------------------------
# Linear: y = x @ W + b (+ residual)
#   - weight-resident 1-D grid when the weight fits VMEM (no accumulator scratch,
#     each weight read from HBM once)
#   - streamed (m, n, k) grid with f32 VMEM accumulator otherwise
# ----------------------------------------------------------------------------

def _linear_kernel(x_ref, w_ref, b_ref, o_ref):
    acc = jnp.dot(x_ref[...].astype(w_ref.dtype), w_ref[...],
                  preferred_element_type=jnp.float32)
    o_ref[...] = (acc + b_ref[...].astype(jnp.float32)).astype(o_ref.dtype)


def _linear_res_kernel(x_ref, w_ref, b_ref, r_ref, o_ref):
    acc = jnp.dot(x_ref[...].astype(w_ref.dtype), w_ref[...],
                  preferred_element_type=jnp.float32)
    o_ref[...] = (acc + b_ref[...].astype(jnp.float32)
                  + r_ref[...].astype(jnp.float32)).astype(o_ref.dtype)


def _linear_acc_kernel(x_ref, w_ref, b_ref, o_ref, acc_ref):
    k = pl.program_id(2)

    @pl.when(k == 0)
    def _():
        acc_ref[...] = jnp.zeros_like(acc_ref)

    acc_ref[...] += jnp.dot(x_ref[...].astype(w_ref.dtype), w_ref[...],
                            preferred_element_type=jnp.float32)

    @pl.when(k == pl.num_programs(2) - 1)
    def _():
        o_ref[...] = (acc_ref[...] + b_ref[...].astype(jnp.float32)
                      ).astype(o_ref.dtype)


def _linear_acc_res_kernel(x_ref, w_ref, b_ref, r_ref, o_ref, acc_ref):
    k = pl.program_id(2)

    @pl.when(k == 0)
    def _():
        acc_ref[...] = jnp.zeros_like(acc_ref)

    acc_ref[...] += jnp.dot(x_ref[...].astype(w_ref.dtype), w_ref[...],
                            preferred_element_type=jnp.float32)

    @pl.when(k == pl.num_programs(2) - 1)
    def _():
        o_ref[...] = (acc_ref[...] + b_ref[...].astype(jnp.float32)
                      + r_ref[...].astype(jnp.float32)).astype(o_ref.dtype)


def linear(x2d, w, b, residual=None, *, out_dtype=None):
    """y = x2d @ w + b (+ residual).  x2d: (M,K); w: (K,N) (in,out) bf16; b: (N,) f32."""
    M, K = x2d.shape
    N = w.shape[1]
    if out_dtype is None:
        out_dtype = x2d.dtype
    align = _sublane_align(x2d.dtype)
    w_bytes = K * N * w.dtype.itemsize
    n_res = 0 if residual is None else 1
    bytes_accessed = int(M * K * x2d.dtype.itemsize + w_bytes
                         + n_res * M * N * 4
                         + M * N * jnp.dtype(out_dtype).itemsize)
    cost = pl.CostEstimate(flops=2 * M * N * K, transcendentals=0,
                           bytes_accessed=bytes_accessed)

    if w_bytes <= _RESIDENT_W_BYTES:
        # Weight fully VMEM-resident; 1-D grid over rows, no accumulator.
        tm = _pick_tile(M, 256, align)
        grid = (M // tm,)
        in_specs = [pl.BlockSpec((tm, K), lambda m: (m, 0)),
                    pl.BlockSpec((K, N), lambda m: (0, 0)),
                    pl.BlockSpec((1, N), lambda m: (0, 0))]
        args = [x2d, w, b.reshape(1, N)]
        kernel = _linear_kernel
        if residual is not None:
            in_specs.append(pl.BlockSpec((tm, N), lambda m: (m, 0)))
            args.append(residual)
            kernel = _linear_res_kernel
        out_spec = pl.BlockSpec((tm, N), lambda m: (m, 0))
        dims = ("parallel",)
        scratch = []
    else:
        # Fallback: streamed (m, n, k) grid with an f32 VMEM accumulator.
        tm = _pick_tile(M, 512, align)
        tn = _pick_tile(N, 256, 128)
        tk = _pick_tile(K, 512, 128)
        grid = (M // tm, N // tn, K // tk)
        in_specs = [pl.BlockSpec((tm, tk), lambda m, n, k: (m, k)),
                    pl.BlockSpec((tk, tn), lambda m, n, k: (k, n)),
                    pl.BlockSpec((1, tn), lambda m, n, k: (0, n))]
        args = [x2d, w, b.reshape(1, N)]
        kernel = _linear_acc_kernel
        if residual is not None:
            in_specs.append(pl.BlockSpec((tm, tn), lambda m, n, k: (m, n)))
            args.append(residual)
            kernel = _linear_acc_res_kernel
        out_spec = pl.BlockSpec((tm, tn), lambda m, n, k: (m, n))
        dims = ("parallel", "parallel", "arbitrary")
        scratch = [pltpu.VMEM((tm, tn), jnp.float32)]

    return pl.pallas_call(
        kernel,
        out_shape=jax.ShapeDtypeStruct((M, N), out_dtype),
        grid=grid,
        in_specs=in_specs,
        out_specs=out_spec,
        scratch_shapes=scratch,
        compiler_params=pltpu.CompilerParams(
            dimension_semantics=dims, vmem_limit_bytes=_VMEM_LIMIT),
        cost_estimate=cost,
    )(*args)


# ----------------------------------------------------------------------------
# Fused LayerNorm -> linear (-> QuickGELU).  LayerNorm is computed once per row
# tile (full-N output, 1-D grid) when the weight fits VMEM.
# ----------------------------------------------------------------------------

def _ln_linear_kernel(x_ref, g_ref, bln_ref, w_ref, b_ref, o_ref, *, quick_gelu):
    x = x_ref[...].astype(jnp.float32)
    mu = jnp.mean(x, axis=-1, keepdims=True)
    xc = x - mu
    var = jnp.mean(xc * xc, axis=-1, keepdims=True)
    xn = xc * jax.lax.rsqrt(var + 1e-5)
    xn = xn * g_ref[...].astype(jnp.float32) + bln_ref[...].astype(jnp.float32)
    y = jnp.dot(xn.astype(w_ref.dtype), w_ref[...],
                preferred_element_type=jnp.float32)
    y = y + b_ref[...].astype(jnp.float32)
    if quick_gelu:
        y = y * jax.nn.sigmoid(1.702 * y)
    o_ref[...] = y.astype(o_ref.dtype)


def ln_linear(x2d, gamma, beta, w, b, *, quick_gelu=False, out_dtype=None):
    """y = [QuickGELU](LayerNorm(x2d) @ w + b).  x2d: (M,K); w: (K,N) bf16."""
    M, K = x2d.shape
    N = w.shape[1]
    if out_dtype is None:
        out_dtype = x2d.dtype
    align = _sublane_align(x2d.dtype)
    tm = _pick_tile(M, 256, align)
    w_bytes = K * N * w.dtype.itemsize
    kernel = functools.partial(_ln_linear_kernel, quick_gelu=quick_gelu)

    if w_bytes <= _RESIDENT_W_BYTES:
        grid = (M // tm,)
        in_specs = [pl.BlockSpec((tm, K), lambda m: (m, 0)),
                    pl.BlockSpec((1, K), lambda m: (0, 0)),
                    pl.BlockSpec((1, K), lambda m: (0, 0)),
                    pl.BlockSpec((K, N), lambda m: (0, 0)),
                    pl.BlockSpec((1, N), lambda m: (0, 0))]
        out_spec = pl.BlockSpec((tm, N), lambda m: (m, 0))
        dims = ("parallel",)
    else:
        # Fallback: tile N (recomputes LN per N tile) when the weight is too big.
        tn = _pick_tile(N, 512, 128)
        grid = (M // tm, N // tn)
        in_specs = [pl.BlockSpec((tm, K), lambda m, n: (m, 0)),
                    pl.BlockSpec((1, K), lambda m, n: (0, 0)),
                    pl.BlockSpec((1, K), lambda m, n: (0, 0)),
                    pl.BlockSpec((K, tn), lambda m, n: (0, n)),
                    pl.BlockSpec((1, tn), lambda m, n: (0, n))]
        out_spec = pl.BlockSpec((tm, tn), lambda m, n: (m, n))
        dims = ("parallel", "parallel")

    bytes_accessed = int(M * K * x2d.dtype.itemsize + w_bytes
                         + M * N * jnp.dtype(out_dtype).itemsize)
    return pl.pallas_call(
        kernel,
        out_shape=jax.ShapeDtypeStruct((M, N), out_dtype),
        grid=grid,
        in_specs=in_specs,
        out_specs=out_spec,
        compiler_params=pltpu.CompilerParams(
            dimension_semantics=dims, vmem_limit_bytes=_VMEM_LIMIT),
        cost_estimate=pl.CostEstimate(
            flops=2 * M * N * K + 10 * M * K,
            transcendentals=(M * N if quick_gelu else 0),
            bytes_accessed=bytes_accessed),
    )(x2d, gamma.reshape(1, K), beta.reshape(1, K), w, b.reshape(1, N))


# ----------------------------------------------------------------------------
# Multi-head attention core.  Processes `bb` sequences per grid step (batched
# dot_general), folds the 1/sqrt(hd) scale into q, stores each head's output
# directly into a lane slice of the output ref, and (main path) takes the
# per-sequence msg token as a separate (bb, 1, 3D) block so the (L+1)-token
# concat never round-trips HBM and only the L main query rows are computed.
# ----------------------------------------------------------------------------

def _attention_body(qkv, msg, o_ref, n_head, scale):
    bb, S, threeD = qkv.shape
    D = threeD // 3
    hd = D // n_head
    kv = qkv if msg is None else jnp.concatenate([qkv, msg], axis=1)  # (bb,Skv,3D)
    for h in range(n_head):  # static unroll keeps MXU pushes back-to-back
        q = qkv[:, :, h * hd:(h + 1) * hd] * scale                    # scale in q
        k = kv[:, :, D + h * hd:D + (h + 1) * hd]
        v = kv[:, :, 2 * D + h * hd:2 * D + (h + 1) * hd]
        s = jax.lax.dot_general(q, k, (((2,), (2,)), ((0,), (0,))),
                                preferred_element_type=jnp.float32)   # (bb,S,Skv)
        s = s - jnp.max(s, axis=-1, keepdims=True)
        p = jnp.exp(s)
        p = p * pl.reciprocal(jnp.sum(p, axis=-1, keepdims=True), approx=True)
        o = jax.lax.dot_general(p.astype(v.dtype), v, (((2,), (1,)), ((0,), (0,))),
                                preferred_element_type=jnp.float32)   # (bb,S,hd)
        o_ref[:, :, h * hd:(h + 1) * hd] = o.astype(o_ref.dtype)


def _mha_kernel(qkv_ref, o_ref, *, n_head, scale):
    _attention_body(qkv_ref[...], None, o_ref, n_head, scale)


def _mha_msg_kernel(qkv_ref, msg_ref, o_ref, *, n_head, scale):
    _attention_body(qkv_ref[...], msg_ref[...], o_ref, n_head, scale)


def _pick_bb(batch, per_seq_bytes, budget=4 * 1024 * 1024):
    bb = max(1, min(batch, budget // max(per_seq_bytes, 1)))
    while batch % bb:
        bb -= 1
    return bb


def mha(qkv, n_head, msg=None):
    """qkv: (B, S, 3D) [q|k|v]; msg: optional (B, 1, 3D) extra key/value token.
    Returns softmax(q k^T / sqrt(hd)) v for the S main queries: (B, S, D)."""
    Bb, S, threeD = qkv.shape
    D = threeD // 3
    hd = D // n_head
    Skv = S + (0 if msg is None else 1)
    itemsize = qkv.dtype.itemsize
    bb = _pick_bb(Bb, Skv * threeD * itemsize)
    kernel_kw = dict(n_head=n_head, scale=float(hd) ** -0.5)

    if msg is None:
        kernel = functools.partial(_mha_kernel, **kernel_kw)
        in_specs = [pl.BlockSpec((bb, S, threeD), lambda i: (i, 0, 0))]
        args = (qkv,)
    else:
        kernel = functools.partial(_mha_msg_kernel, **kernel_kw)
        in_specs = [pl.BlockSpec((bb, S, threeD), lambda i: (i, 0, 0)),
                    pl.BlockSpec((bb, 1, threeD), lambda i: (i, 0, 0))]
        args = (qkv, msg)

    bytes_accessed = int((Bb * S * threeD
                          + (0 if msg is None else Bb * threeD)
                          + Bb * S * D) * itemsize)
    return pl.pallas_call(
        kernel,
        out_shape=jax.ShapeDtypeStruct((Bb, S, D), qkv.dtype),
        grid=(Bb // bb,),
        in_specs=in_specs,
        out_specs=pl.BlockSpec((bb, S, D), lambda i: (i, 0, 0)),
        compiler_params=pltpu.CompilerParams(
            dimension_semantics=("parallel",), vmem_limit_bytes=_VMEM_LIMIT),
        cost_estimate=pl.CostEstimate(
            flops=4 * Bb * S * Skv * D,
            transcendentals=Bb * n_head * S * Skv,
            bytes_accessed=bytes_accessed),
    )(*args)


# ----------------------------------------------------------------------------
# CrossFramelAttentionBlock forward.  x: (L, B*T, D) -> (L, B*T, D).
# ----------------------------------------------------------------------------

def cross_frame_attention_block(x, params, T, n_head):
    L, BT, D = x.shape
    B = BT // T
    f32, bf16 = jnp.float32, jnp.bfloat16

    # ---- message token path (batch=B, seq=T): msg_fc -> LN -> MHA -> out+res --
    msg = linear(x[0], params["msg_fc_w"], params["msg_fc_b"], out_dtype=f32)
    mqkv = ln_linear(msg, params["msg_ln_g"], params["msg_ln_b"],
                     params["msg_attn_in_w"], params["msg_attn_in_b"],
                     out_dtype=bf16)                                      # (BT,3D)
    mattn = mha(mqkv.reshape(B, T, 3 * D), n_head)                        # (B,T,D)
    msg = linear(mattn.reshape(BT, D), params["msg_attn_out_w"],
                 params["msg_attn_out_b"], residual=msg, out_dtype=f32)   # (BT,D)

    # ---- main attention over L main tokens + the per-frame msg token ---------
    # One boundary transpose to batch-major; concat/slice glue is gone (the msg
    # token goes to the attention kernel as its own block, queries = L tokens).
    xb = jnp.transpose(x, (1, 0, 2))                                      # (BT,L,D)
    xb2 = xb.reshape(BT * L, D)
    qkv = ln_linear(xb2, params["ln1_g"], params["ln1_b"],
                    params["attn_in_w"], params["attn_in_b"],
                    out_dtype=bf16)                                       # (BT*L,3D)
    msg_qkv = ln_linear(msg, params["ln1_g"], params["ln1_b"],
                        params["attn_in_w"], params["attn_in_b"],
                        out_dtype=bf16)                                   # (BT,3D)
    attn = mha(qkv.reshape(BT, L, 3 * D), n_head,
               msg=msg_qkv.reshape(BT, 1, 3 * D))                         # (BT,L,D)
    xb2 = linear(attn.reshape(BT * L, D), params["attn_out_w"],
                 params["attn_out_b"], residual=xb2, out_dtype=f32)       # (BT*L,D)

    # ---- MLP: ln_2 -> c_fc -> QuickGELU -> c_proj (+ residual) ---------------
    h = ln_linear(xb2, params["ln2_g"], params["ln2_b"],
                  params["mlp_w1"], params["mlp_b1"], quick_gelu=True,
                  out_dtype=bf16)
    xb2 = linear(h, params["mlp_w2"], params["mlp_b2"], residual=xb2,
                 out_dtype=f32)

    return jnp.transpose(xb2.reshape(BT, L, D), (1, 0, 2))                # (L,BT,D)


# ----------------------------------------------------------------------------
# Deterministic parameter init.
# NOTE: matmul weights are stored pre-transposed (in_features, out_features) and
# in bf16 (cast PyTorch (out,in) f32 weights ONCE at conversion time); biases and
# LayerNorm params stay f32.
# ----------------------------------------------------------------------------

def init_params(key, d_model):
    ks = jax.random.split(key, 8)
    D = d_model
    f32 = jnp.float32

    def w(k, shape, scale=0.02):
        return (scale * jax.random.normal(k, shape, dtype=f32)).astype(jnp.bfloat16)

    return {
        "msg_fc_w": w(ks[0], (D, D)),
        "msg_fc_b": jnp.zeros((D,), f32),
        "msg_ln_g": jnp.ones((D,), f32),
        "msg_ln_b": jnp.zeros((D,), f32),
        "msg_attn_in_w": w(ks[1], (D, 3 * D)),
        "msg_attn_in_b": jnp.zeros((3 * D,), f32),
        "msg_attn_out_w": w(ks[2], (D, D)),
        "msg_attn_out_b": jnp.zeros((D,), f32),
        "attn_in_w": w(ks[3], (D, 3 * D)),
        "attn_in_b": jnp.zeros((3 * D,), f32),
        "attn_out_w": w(ks[4], (D, D)),
        "attn_out_b": jnp.zeros((D,), f32),
        "ln1_g": jnp.ones((D,), f32),
        "ln1_b": jnp.zeros((D,), f32),
        "ln2_g": jnp.ones((D,), f32),
        "ln2_b": jnp.zeros((D,), f32),
        "mlp_w1": w(ks[5], (D, 4 * D)),
        "mlp_b1": jnp.zeros((4 * D,), f32),
        "mlp_w2": w(ks[6], (4 * D, D)),
        "mlp_b2": jnp.zeros((D,), f32),
    }


if __name__ == "__main__":
    # Small shapes implied by forward: x is (L, B*T, D)
    L, B, T, D, n_head = 8, 2, 2, 32, 4

    key = jax.random.PRNGKey(0)
    k_x, k_p = jax.random.split(key)
    x = jax.random.normal(k_x, (L, B * T, D), dtype=jnp.float32)
    params = init_params(k_p, D)

    fwd = jax.jit(functools.partial(cross_frame_attention_block, T=T, n_head=n_head))
    out = jax.block_until_ready(fwd(x, params))

    assert out.shape == (L, B * T, D), out.shape
    assert bool(jnp.isfinite(out).all())
    print("KERNEL_OK")
</pallas_src>

<mosaic_0001>
module attributes {stable_mosaic.version = 11 : i64} {
  func.func @_linear_kernel(%arg0: i32, %arg1: memref<4x32xf32, #tpu.memory_space<vmem>>, %arg2: memref<32x32xbf16, #tpu.memory_space<vmem>>, %arg3: memref<1x32xf32, #tpu.memory_space<vmem>>, %arg4: memref<4x32xf32, #tpu.memory_space<vmem>>) attributes {dimension_semantics = [#tpu.dimension_semantics<parallel>], iteration_bounds = array<i64: 1>, scalar_prefetch = 0 : i64, scratch_operands = 0 : i64, tpu.core_type = #tpu.core_type<tc>, window_params = [{transform_indices = @transform_0, window_bounds = array<i64: 4, 32>}, {pipeline_mode = #tpu.pipeline_mode<synchronous>, transform_indices = @transform_1, window_bounds = array<i64: 32, 32>}, {pipeline_mode = #tpu.pipeline_mode<synchronous>, transform_indices = @transform_2, window_bounds = array<i64: 1, 32>}, {transform_indices = @transform_3, window_bounds = array<i64: 4, 32>}]} {
    %c0 = arith.constant 0 : index
    %c0_0 = arith.constant 0 : index
    %0 = vector.load %arg1[%c0, %c0_0] : memref<4x32xf32, #tpu.memory_space<vmem>>, vector<4x32xf32>
    %1 = arith.truncf %0 : vector<4x32xf32> to vector<4x32xbf16>
    %c0_1 = arith.constant 0 : index
    %c0_2 = arith.constant 0 : index
    %2 = vector.load %arg2[%c0_1, %c0_2] : memref<32x32xbf16, #tpu.memory_space<vmem>>, vector<32x32xbf16>
    %cst = arith.constant dense<0.000000e+00> : vector<4x32xf32>
    %3 = tpu.matmul %1, %2, %cst {dimension_numbers = #tpu.dot_dimension_numbers<[1], [0], [0], [1], [0, 0, 1, 1], [], []>} : vector<4x32xbf16>, vector<32x32xbf16>, vector<4x32xf32> -> vector<4x32xf32>
    %c0_3 = arith.constant 0 : index
    %c0_4 = arith.constant 0 : index
    %4 = vector.load %arg3[%c0_3, %c0_4] : memref<1x32xf32, #tpu.memory_space<vmem>>, vector<1x32xf32>
    %5 = vector.broadcast %4 : vector<1x32xf32> to vector<4x32xf32>
    %6 = arith.addf %3, %5 : vector<4x32xf32>
    %c0_5 = arith.constant 0 : index
    %c0_6 = arith.constant 0 : index
    %7 = vector.load %arg4[%c0_5, %c0_6] : memref<4x32xf32, #tpu.memory_space<vmem>>, vector<4x32xf32>
    tpu.vector_store %arg4[%c0_5, %c0_6], %6 {strides = array<i32>} : memref<4x32xf32, #tpu.memory_space<vmem>>, vector<4x32xf32>,
    return
  }
  func.func @transform_0(%arg0: i32) -> (i32, i32) {
    %c0_i32 = arith.constant 0 : i32
    %c0_i32_0 = arith.constant 0 : i32
    return %arg0, %c0_i32 : i32, i32
  }
  func.func @transform_1(%arg0: i32) -> (i32, i32) {
    %c0_i32 = arith.constant 0 : i32
    %c0_i32_0 = arith.constant 0 : i32
    %c0_i32_1 = arith.constant 0 : i32
    return %c0_i32, %c0_i32_0 : i32, i32
  }
  func.func @transform_2(%arg0: i32) -> (i32, i32) {
    %c0_i32 = arith.constant 0 : i32
    %c0_i32_0 = arith.constant 0 : i32
    %c0_i32_1 = arith.constant 0 : i32
    return %c0_i32, %c0_i32_0 : i32, i32
  }
  func.func @transform_3(%arg0: i32) -> (i32, i32) {
    %c0_i32 = arith.constant 0 : i32
    %c0_i32_0 = arith.constant 0 : i32
    return %arg0, %c0_i32 : i32, i32
  }
}

module attributes {stable_mosaic.version = 11 : i64} {
  func.func @_ln_linear_kernel(%arg0: i32, %arg1: memref<4x32xf32, #tpu.memory_space<vmem>>, %arg2: memref<1x32xf32, #tpu.memory_space<vmem>>, %arg3: memref<1x32xf32, #tpu.memory_space<vmem>>, %arg4: memref<32x96xbf16, #tpu.memory_space<vmem>>, %arg5: memref<1x96xf32, #tpu.memory_space<vmem>>, %arg6: memref<4x96xbf16, #tpu.memory_space<vmem>>) attributes {dimension_semantics = [#tpu.dimension_semantics<parallel>], iteration_bounds = array<i64: 1>, scalar_prefetch = 0 : i64, scratch_operands = 0 : i64, tpu.core_type = #tpu.core_type<tc>, window_params = [{transform_indices = @transform_0, window_bounds = array<i64: 4, 32>}, {pipeline_mode = #tpu.pipeline_mode<synchronous>, transform_indices = @transform_1, window_bounds = array<i64: 1, 32>}, {pipeline_mode = #tpu.pipeline_mode<synchronous>, transform_indices = @transform_2, window_bounds = array<i64: 1, 32>}, {pipeline_mode = #tpu.pipeline_mode<synchronous>, transform_indices = @transform_3, window_bounds = array<i64: 32, 96>}, {pipeline_mode = #tpu.pipeline_mode<synchronous>, transform_indices = @transform_4, window_bounds = array<i64: 1, 96>}, {transform_indices = @transform_5, window_bounds = array<i64: 4, 96>}]} {
    %c0 = arith.constant 0 : index
    %c0_0 = arith.constant 0 : index
    %0 = vector.load %arg1[%c0, %c0_0] : memref<4x32xf32, #tpu.memory_space<vmem>>, vector<4x32xf32>
    %cst = arith.constant dense<0.000000e+00> : vector<4xf32>
    %1 = vector.multi_reduction <add>, %0, %cst [1] : vector<4x32xf32> to vector<4xf32>
    %2 = vector.shape_cast %1 : vector<4xf32> to vector<4x1xf32>
    %cst_1 = arith.constant 3.200000e+01 : f32
    %3 = vector.broadcast %cst_1 : f32 to vector<4x1xf32>
    %4 = arith.divf %2, %3 : vector<4x1xf32>
    %5 = vector.broadcast %4 : vector<4x1xf32> to vector<4x32xf32>
    %6 = arith.subf %0, %5 : vector<4x32xf32>
    %7 = arith.mulf %6, %6 : vector<4x32xf32>
    %cst_2 = arith.constant dense<0.000000e+00> : vector<4xf32>
    %8 = vector.multi_reduction <add>, %7, %cst_2 [1] : vector<4x32xf32> to vector<4xf32>
    %9 = vector.shape_cast %8 : vector<4xf32> to vector<4x1xf32>
    %cst_3 = arith.constant 3.200000e+01 : f32
    %10 = vector.broadcast %cst_3 : f32 to vector<4x1xf32>
    %11 = arith.divf %9, %10 : vector<4x1xf32>
    %cst_4 = arith.constant 9.99999974E-6 : f32
    %12 = vector.broadcast %cst_4 : f32 to vector<4x1xf32>
    %13 = arith.addf %11, %12 : vector<4x1xf32>
    %14 = math.rsqrt %13 : vector<4x1xf32>
    %15 = vector.broadcast %14 : vector<4x1xf32> to vector<4x32xf32>
    %16 = arith.mulf %6, %15 : vector<4x32xf32>
    %c0_5 = arith.constant 0 : index
    %c0_6 = arith.constant 0 : index
    %17 = vector.load %arg2[%c0_5, %c0_6] : memref<1x32xf32, #tpu.memory_space<vmem>>, vector<1x32xf32>
    %18 = vector.broadcast %17 : vector<1x32xf32> to vector<4x32xf32>
    %19 = arith.mulf %16, %18 : vector<4x32xf32>
    %c0_7 = arith.constant 0 : index
    %c0_8 = arith.constant 0 : index
    %20 = vector.load %arg3[%c0_7, %c0_8] : memref<1x32xf32, #tpu.memory_space<vmem>>, vector<1x32xf32>
    %21 = vector.broadcast %20 : vector<1x32xf32> to vector<4x32xf32>
    %22 = arith.addf %19, %21 : vector<4x32xf32>
    %23 = arith.truncf %22 : vector<4x32xf32> to vector<4x32xbf16>
    %c0_9 = arith.constant 0 : index
    %c0_10 = arith.constant 0 : index
    %24 = vector.load %arg4[%c0_9, %c0_10] : memref<32x96xbf16, #tpu.memory_space<vmem>>, vector<32x96xbf16>
    %cst_11 = arith.constant dense<0.000000e+00> : vector<4x96xf32>
    %25 = tpu.matmul %23, %24, %cst_11 {dimension_numbers = #tpu.dot_dimension_numbers<[1], [0], [0], [1], [0, 0, 1, 1], [], []>} : vector<4x32xbf16>, vector<32x96xbf16>, vector<4x96xf32> -> vector<4x96xf32>
    %c0_12 = arith.constant 0 : index
    %c0_13 = arith.constant 0 : index
    %26 = vector.load %arg5[%c0_12, %c0_13] : memref<1x96xf32, #tpu.memory_space<vmem>>, vector<1x96xf32>
    %27 = vector.broadcast %26 : vector<1x96xf32> to vector<4x96xf32>
    %28 = arith.addf %25, %27 : vector<4x96xf32>
    %29 = arith.truncf %28 : vector<4x96xf32> to vector<4x96xbf16>
    %c0_14 = arith.constant 0 : index
    %c0_15 = arith.constant 0 : index
    %30 = vector.load %arg6[%c0_14, %c0_15] : memref<4x96xbf16, #tpu.memory_space<vmem>>, vector<4x96xbf16>
    tpu.vector_store %arg6[%c0_14, %c0_15], %29 {strides = array<i32>} : memref<4x96xbf16, #tpu.memory_space<vmem>>, vector<4x96xbf16>,
    return
  }
  func.func @transform_0(%arg0: i32) -> (i32, i32) {
    %c0_i32 = arith.constant 0 : i32
    %c0_i32_0 = arith.constant 0 : i32
    return %arg0, %c0_i32 : i32, i32
  }
  func.func @transform_1(%arg0: i32) -> (i32, i32) {
    %c0_i32 = arith.constant 0 : i32
    %c0_i32_0 = arith.constant 0 : i32
    %c0_i32_1 = arith.constant 0 : i32
    return %c0_i32, %c0_i32_0 : i32, i32
  }
  func.func @transform_2(%arg0: i32) -> (i32, i32) {
    %c0_i32 = arith.constant 0 : i32
    %c0_i32_0 = arith.constant 0 : i32
    %c0_i32_1 = arith.constant 0 : i32
    return %c0_i32, %c0_i32_0 : i32, i32
  }
  func.func @transform_3(%arg0: i32) -> (i32, i32) {
    %c0_i32 = arith.constant 0 : i32
    %c0_i32_0 = arith.constant 0 : i32
    %c0_i32_1 = arith.constant 0 : i32
    return %c0_i32, %c0_i32_0 : i32, i32
  }
  func.func @transform_4(%arg0: i32) -> (i32, i32) {
    %c0_i32 = arith.constant 0 : i32
    %c0_i32_0 = arith.constant 0 : i32
    %c0_i32_1 = arith.constant 0 : i32
    return %c0_i32, %c0_i32_0 : i32, i32
  }
  func.func @transform_5(%arg0: i32) -> (i32, i32) {
    %c0_i32 = arith.constant 0 : i32
    %c0_i32_0 = arith.constant 0 : i32
    return %arg0, %c0_i32 : i32, i32
  }
}

module attributes {stable_mosaic.version = 11 : i64} {
  func.func @_mha_kernel(%arg0: i32, %arg1: memref<2x2x96xbf16, #tpu.memory_space<vmem>>, %arg2: memref<2x2x32xbf16, #tpu.memory_space<vmem>>) attributes {dimension_semantics = [#tpu.dimension_semantics<parallel>], iteration_bounds = array<i64: 1>, scalar_prefetch = 0 : i64, scratch_operands = 0 : i64, tpu.core_type = #tpu.core_type<tc>, window_params = [{transform_indices = @transform_0, window_bounds = array<i64: 2, 2, 96>}, {transform_indices = @transform_1, window_bounds = array<i64: 2, 2, 32>}]} {
    %c0 = arith.constant 0 : index
    %c0_0 = arith.constant 0 : index
    %c0_1 = arith.constant 0 : index
    %0 = vector.load %arg1[%c0, %c0_0, %c0_1] : memref<2x2x96xbf16, #tpu.memory_space<vmem>>, vector<2x2x96xbf16>
    %1 = vector.extract_strided_slice %0 {offsets = [0, 0, 0], sizes = [2, 2, 8], strides = [1, 1, 1]} : vector<2x2x96xbf16> to vector<2x2x8xbf16>
    %cst = arith.constant 3.535160e-01 : bf16
    %2 = vector.broadcast %cst : bf16 to vector<2x2x8xbf16>
    %3 = arith.mulf %1, %2 : vector<2x2x8xbf16>
    %4 = vector.extract_strided_slice %0 {offsets = [0, 0, 32], sizes = [2, 2, 8], strides = [1, 1, 1]} : vector<2x2x96xbf16> to vector<2x2x8xbf16>
    %5 = vector.extract_strided_slice %0 {offsets = [0, 0, 64], sizes = [2, 2, 8], strides = [1, 1, 1]} : vector<2x2x96xbf16> to vector<2x2x8xbf16>
    %cst_2 = arith.constant dense<0.000000e+00> : vector<2x2x2xf32>
    %6 = tpu.matmul %3, %4, %cst_2 {dimension_numbers = #tpu.dot_dimension_numbers<[2], [2], [1], [1], [0, 0, 0, 1, 1, 1], [0], [0]>} : vector<2x2x8xbf16>, vector<2x2x8xbf16>, vector<2x2x2xf32> -> vector<2x2x2xf32>
    %cst_3 = arith.constant dense<0xFF800000> : vector<2x2xf32>
    %7 = vector.multi_reduction <maximumf>, %6, %cst_3 [2] : vector<2x2x2xf32> to vector<2x2xf32>
    %8 = vector.shape_cast %7 : vector<2x2xf32> to vector<2x2x1xf32>
    %9 = vector.broadcast %8 : vector<2x2x1xf32> to vector<2x2x2xf32>
    %10 = arith.subf %6, %9 : vector<2x2x2xf32>
    %11 = math.exp %10 : vector<2x2x2xf32>
    %cst_4 = arith.constant dense<0.000000e+00> : vector<2x2xf32>
    %12 = vector.multi_reduction <add>, %11, %cst_4 [2] : vector<2x2x2xf32> to vector<2x2xf32>
    %13 = vector.shape_cast %12 : vector<2x2xf32> to vector<2x2x1xf32>
    %14 = tpu.reciprocal %13 {approx = true} : vector<2x2x1xf32> -> vector<2x2x1xf32>
    %15 = vector.broadcast %14 : vector<2x2x1xf32> to vector<2x2x2xf32>
    %16 = arith.mulf %11, %15 : vector<2x2x2xf32>
    %17 = arith.truncf %16 : vector<2x2x2xf32> to vector<2x2x2xbf16>
    %cst_5 = arith.constant dense<0.000000e+00> : vector<2x2x8xf32>
    %18 = tpu.matmul %17, %5, %cst_5 {dimension_numbers = #tpu.dot_dimension_numbers<[2], [1], [1], [2], [0, 0, 0, 1, 1, 2], [0], [0]>} : vector<2x2x2xbf16>, vector<2x2x8xbf16>, vector<2x2x8xf32> -> vector<2x2x8xf32>
    %19 = arith.truncf %18 : vector<2x2x8xf32> to vector<2x2x8xbf16>
    %c0_6 = arith.constant 0 : index
    %c0_7 = arith.constant 0 : index
    %c0_8 = arith.constant 0 : index
    %20 = vector.load %arg2[%c0_6, %c0_7, %c0_8] : memref<2x2x32xbf16, #tpu.memory_space<vmem>>, vector<2x2x8xbf16>
    tpu.vector_store %arg2[%c0_6, %c0_7, %c0_8], %19 {strides = array<i32>} : memref<2x2x32xbf16, #tpu.memory_space<vmem>>, vector<2x2x8xbf16>,
    %21 = vector.extract_strided_slice %0 {offsets = [0, 0, 8], sizes = [2, 2, 8], strides = [1, 1, 1]} : vector<2x2x96xbf16> to vector<2x2x8xbf16>
    %cst_9 = arith.constant 3.535160e-01 : bf16
    %22 = vector.broadcast %cst_9 : bf16 to vector<2x2x8xbf16>
    %23 = arith.mulf %21, %22 : vector<2x2x8xbf16>
    %24 = vector.extract_strided_slice %0 {offsets = [0, 0, 40], sizes = [2, 2, 8], strides = [1, 1, 1]} : vector<2x2x96xbf16> to vector<2x2x8xbf16>
    %25 = vector.extract_strided_slice %0 {offsets = [0, 0, 72], sizes = [2, 2, 8], strides = [1, 1, 1]} : vector<2x2x96xbf16> to vector<2x2x8xbf16>
    %cst_10 = arith.constant dense<0.000000e+00> : vector<2x2x2xf32>
    %26 = tpu.matmul %23, %24, %cst_10 {dimension_numbers = #tpu.dot_dimension_numbers<[2], [2], [1], [1], [0, 0, 0, 1, 1, 1], [0], [0]>} : vector<2x2x8xbf16>, vector<2x2x8xbf16>, vector<2x2x2xf32> -> vector<2x2x2xf32>
    %cst_11 = arith.constant dense<0xFF800000> : vector<2x2xf32>
    %27 = vector.multi_reduction <maximumf>, %26, %cst_11 [2] : vector<2x2x2xf32> to vector<2x2xf32>
    %28 = vector.shape_cast %27 : vector<2x2xf32> to vector<2x2x1xf32>
    %29 = vector.broadcast %28 : vector<2x2x1xf32> to vector<2x2x2xf32>
    %30 = arith.subf %26, %29 : vector<2x2x2xf32>
    %31 = math.exp %30 : vector<2x2x2xf32>
    %cst_12 = arith.constant dense<0.000000e+00> : vector<2x2xf32>
    %32 = vector.multi_reduction <add>, %31, %cst_12 [2] : vector<2x2x2xf32> to vector<2x2xf32>
    %33 = vector.shape_cast %32 : vector<2x2xf32> to vector<2x2x1xf32>
    %34 = tpu.reciprocal %33 {approx = true} : vector<2x2x1xf32> -> vector<2x2x1xf32>
    %35 = vector.broadcast %34 : vector<2x2x1xf32> to vector<2x2x2xf32>
    %36 = arith.mulf %31, %35 : vector<2x2x2xf32>
    %37 = arith.truncf %36 : vector<2x2x2xf32> to vector<2x2x2xbf16>
    %cst_13 = arith.constant dense<0.000000e+00> : vector<2x2x8xf32>
    %38 = tpu.matmul %37, %25, %cst_13 {dimension_numbers = #tpu.dot_dimension_numbers<[2], [1], [1], [2], [0, 0, 0, 1, 1, 2], [0], [0]>} : vector<2x2x2xbf16>, vector<2x2x8xbf16>, vector<2x2x8xf32> -> vector<2x2x8xf32>
    %39 = arith.truncf %38 : vector<2x2x8xf32> to vector<2x2x8xbf16>
    %c0_14 = arith.constant 0 : index
    %c0_15 = arith.constant 0 : index
    %c8 = arith.constant 8 : index
    %40 = vector.load %arg2[%c0_14, %c0_15, %c8] : memref<2x2x32xbf16, #tpu.memory_space<vmem>>, vector<2x2x8xbf16>
    tpu.vector_store %arg2[%c0_14, %c0_15, %c8], %39 {strides = array<i32>} : memref<2x2x32xbf16, #tpu.memory_space<vmem>>, vector<2x2x8xbf16>,
    %41 = vector.extract_strided_slice %0 {offsets = [0, 0, 16], sizes = [2, 2, 8], strides = [1, 1, 1]} : vector<2x2x96xbf16> to vector<2x2x8xbf16>
    %cst_16 = arith.constant 3.535160e-01 : bf16
    %42 = vector.broadcast %cst_16 : bf16 to vector<2x2x8xbf16>
    %43 = arith.mulf %41, %42 : vector<2x2x8xbf16>
    %44 = vector.extract_strided_slice %0 {offsets = [0, 0, 48], sizes = [2, 2, 8], strides = [1, 1, 1]} : vector<2x2x96xbf16> to vector<2x2x8xbf16>
    %45 = vector.extract_strided_slice %0 {offsets = [0, 0, 80], sizes = [2, 2, 8], strides = [1, 1, 1]} : vector<2x2x96xbf16> to vector<2x2x8xbf16>
    %cst_17 = arith.constant dense<0.000000e+00> : vector<2x2x2xf32>
    %46 = tpu.matmul %43, %44, %cst_17 {dimension_numbers = #tpu.dot_dimension_numbers<[2], [2], [1], [1], [0, 0, 0, 1, 1, 1], [0], [0]>} : vector<2x2x8xbf16>, vector<2x2x8xbf16>, vector<2x2x2xf32> -> vector<2x2x2xf32>
    %cst_18 = arith.constant dense<0xFF800000> : vector<2x2xf32>
    %47 = vector.multi_reduction <maximumf>, %46, %cst_18 [2] : vector<2x2x2xf32> to vector<2x2xf32>
    %48 = vector.shape_cast %47 : vector<2x2xf32> to vector<2x2x1xf32>
    %49 = vector.broadcast %48 : vector<2x2x1xf32> to vector<2x2x2xf32>
    %50 = arith.subf %46, %49 : vector<2x2x2xf32>
    %51 = math.exp %50 : vector<2x2x2xf32>
    %cst_19 = arith.constant dense<0.000000e+00> : vector<2x2xf32>
    %52 = vector.multi_reduction <add>, %51, %cst_19 [2] : vector<2x2x2xf32> to vector<2x2xf32>
    %53 = vector.shape_cast %52 : vector<2x2xf32> to vector<2x2x1xf32>
    %54 = tpu.reciprocal %53 {approx = true} : vector<2x2x1xf32> -> vector<2x2x1xf32>
    %55 = vector.broadcast %54 : vector<2x2x1xf32> to vector<2x2x2xf32>
    %56 = arith.mulf %51, %55 : vector<2x2x2xf32>
    %57 = arith.truncf %56 : vector<2x2x2xf32> to vector<2x2x2xbf16>
    %cst_20 = arith.constant dense<0.000000e+00> : vector<2x2x8xf32>
    %58 = tpu.matmul %57, %45, %cst_20 {dimension_numbers = #tpu.dot_dimension_numbers<[2], [1], [1], [2], [0, 0, 0, 1, 1, 2], [0], [0]>} : vector<2x2x2xbf16>, vector<2x2x8xbf16>, vector<2x2x8xf32> -> vector<2x2x8xf32>
    %59 = arith.truncf %58 : vector<2x2x8xf32> to vector<2x2x8xbf16>
    %c0_21 = arith.constant 0 : index
    %c0_22 = arith.constant 0 : index
    %c16 = arith.constant 16 : index
    %60 = vector.load %arg2[%c0_21, %c0_22, %c16] : memref<2x2x32xbf16, #tpu.memory_space<vmem>>, vector<2x2x8xbf16>
    tpu.vector_store %arg2[%c0_21, %c0_22, %c16], %59 {strides = array<i32>} : memref<2x2x32xbf16, #tpu.memory_space<vmem>>, vector<2x2x8xbf16>,
    %61 = vector.extract_strided_slice %0 {offsets = [0, 0, 24], sizes = [2, 2, 8], strides = [1, 1, 1]} : vector<2x2x96xbf16> to vector<2x2x8xbf16>
    %cst_23 = arith.constant 3.535160e-01 : bf16
    %62 = vector.broadcast %cst_23 : bf16 to vector<2x2x8xbf16>
    %63 = arith.mulf %61, %62 : vector<2x2x8xbf16>
    %64 = vector.extract_strided_slice %0 {offsets = [0, 0, 56], sizes = [2, 2, 8], strides = [1, 1, 1]} : vector<2x2x96xbf16> to vector<2x2x8xbf16>
    %65 = vector.extract_strided_slice %0 {offsets = [0, 0, 88], sizes = [2, 2, 8], strides = [1, 1, 1]} : vector<2x2x96xbf16> to vector<2x2x8xbf16>
    %cst_24 = arith.constant dense<0.000000e+00> : vector<2x2x2xf32>
    %66 = tpu.matmul %63, %64, %cst_24 {dimension_numbers = #tpu.dot_dimension_numbers<[2], [2], [1], [1], [0, 0, 0, 1, 1, 1], [0], [0]>} : vector<2x2x8xbf16>, vector<2x2x8xbf16>, vector<2x2x2xf32> -> vector<2x2x2xf32>
    %cst_25 = arith.constant dense<0xFF800000> : vector<2x2xf32>
    %67 = vector.multi_reduction <maximumf>, %66, %cst_25 [2] : vector<2x2x2xf32> to vector<2x2xf32>
    %68 = vector.shape_cast %67 : vector<2x2xf32> to vector<2x2x1xf32>
    %69 = vector.broadcast %68 : vector<2x2x1xf32> to vector<2x2x2xf32>
    %70 = arith.subf %66, %69 : vector<2x2x2xf32>
    %71 = math.exp %70 : vector<2x2x2xf32>
    %cst_26 = arith.constant dense<0.000000e+00> : vector<2x2xf32>
    %72 = vector.multi_reduction <add>, %71, %cst_26 [2] : vector<2x2x2xf32> to vector<2x2xf32>
    %73 = vector.shape_cast %72 : vector<2x2xf32> to vector<2x2x1xf32>
    %74 = tpu.reciprocal %73 {approx = true} : vector<2x2x1xf32> -> vector<2x2x1xf32>
    %75 = vector.broadcast %74 : vector<2x2x1xf32> to vector<2x2x2xf32>
    %76 = arith.mulf %71, %75 : vector<2x2x2xf32>
    %77 = arith.truncf %76 : vector<2x2x2xf32> to vector<2x2x2xbf16>
    %cst_27 = arith.constant dense<0.000000e+00> : vector<2x2x8xf32>
    %78 = tpu.matmul %77, %65, %cst_27 {dimension_numbers = #tpu.dot_dimension_numbers<[2], [1], [1], [2], [0, 0, 0, 1, 1, 2], [0], [0]>} : vector<2x2x2xbf16>, vector<2x2x8xbf16>, vector<2x2x8xf32> -> vector<2x2x8xf32>
    %79 = arith.truncf %78 : vector<2x2x8xf32> to vector<2x2x8xbf16>
    %c0_28 = arith.constant 0 : index
    %c0_29 = arith.constant 0 : index
    %c24 = arith.constant 24 : index
    %80 = vector.load %arg2[%c0_28, %c0_29, %c24] : memref<2x2x32xbf16, #tpu.memory_space<vmem>>, vector<2x2x8xbf16>
    tpu.vector_store %arg2[%c0_28, %c0_29, %c24], %79 {strides = array<i32>} : memref<2x2x32xbf16, #tpu.memory_space<vmem>>, vector<2x2x8xbf16>,
    return
  }
  func.func @transform_0(%arg0: i32) -> (i32, i32, i32) {
    %c0_i32 = arith.constant 0 : i32
    %c0_i32_0 = arith.constant 0 : i32
    %c0_i32_1 = arith.constant 0 : i32
    return %arg0, %c0_i32, %c0_i32_0 : i32, i32, i32
  }
  func.func @transform_1(%arg0: i32) -> (i32, i32, i32) {
    %c0_i32 = arith.constant 0 : i32
    %c0_i32_0 = arith.constant 0 : i32
    %c0_i32_1 = arith.constant 0 : i32
    return %arg0, %c0_i32, %c0_i32_0 : i32, i32, i32
  }
}

module attributes {stable_mosaic.version = 11 : i64} {
  func.func @_linear_res_kernel(%arg0: i32, %arg1: memref<4x32xbf16, #tpu.memory_space<vmem>>, %arg2: memref<32x32xbf16, #tpu.memory_space<vmem>>, %arg3: memref<1x32xf32, #tpu.memory_space<vmem>>, %arg4: memref<4x32xf32, #tpu.memory_space<vmem>>, %arg5: memref<4x32xf32, #tpu.memory_space<vmem>>) attributes {dimension_semantics = [#tpu.dimension_semantics<parallel>], iteration_bounds = array<i64: 1>, scalar_prefetch = 0 : i64, scratch_operands = 0 : i64, tpu.core_type = #tpu.core_type<tc>, window_params = [{transform_indices = @transform_0, window_bounds = array<i64: 4, 32>}, {pipeline_mode = #tpu.pipeline_mode<synchronous>, transform_indices = @transform_1, window_bounds = array<i64: 32, 32>}, {pipeline_mode = #tpu.pipeline_mode<synchronous>, transform_indices = @transform_2, window_bounds = array<i64: 1, 32>}, {transform_indices = @transform_3, window_bounds = array<i64: 4, 32>}, {transform_indices = @transform_4, window_bounds = array<i64: 4, 32>}]} {
    %c0 = arith.constant 0 : index
    %c0_0 = arith.constant 0 : index
    %0 = vector.load %arg1[%c0, %c0_0] : memref<4x32xbf16, #tpu.memory_space<vmem>>, vector<4x32xbf16>
    %c0_1 = arith.constant 0 : index
    %c0_2 = arith.constant 0 : index
    %1 = vector.load %arg2[%c0_1, %c0_2] : memref<32x32xbf16, #tpu.memory_space<vmem>>, vector<32x32xbf16>
    %cst = arith.constant dense<0.000000e+00> : vector<4x32xf32>
    %2 = tpu.matmul %0, %1, %cst {dimension_numbers = #tpu.dot_dimension_numbers<[1], [0], [0], [1], [0, 0, 1, 1], [], []>} : vector<4x32xbf16>, vector<32x32xbf16>, vector<4x32xf32> -> vector<4x32xf32>
    %c0_3 = arith.constant 0 : index
    %c0_4 = arith.constant 0 : index
    %3 = vector.load %arg3[%c0_3, %c0_4] : memref<1x32xf32, #tpu.memory_space<vmem>>, vector<1x32xf32>
    %4 = vector.broadcast %3 : vector<1x32xf32> to vector<4x32xf32>
    %5 = arith.addf %2, %4 : vector<4x32xf32>
    %c0_5 = arith.constant 0 : index
    %c0_6 = arith.constant 0 : index
    %6 = vector.load %arg4[%c0_5, %c0_6] : memref<4x32xf32, #tpu.memory_space<vmem>>, vector<4x32xf32>
    %7 = arith.addf %5, %6 : vector<4x32xf32>
    %c0_7 = arith.constant 0 : index
    %c0_8 = arith.constant 0 : index
    %8 = vector.load %arg5[%c0_7, %c0_8] : memref<4x32xf32, #tpu.memory_space<vmem>>, vector<4x32xf32>
    tpu.vector_store %arg5[%c0_7, %c0_8], %7 {strides = array<i32>} : memref<4x32xf32, #tpu.memory_space<vmem>>, vector<4x32xf32>,
    return
  }
  func.func @transform_0(%arg0: i32) -> (i32, i32) {
    %c0_i32 = arith.constant 0 : i32
    %c0_i32_0 = arith.constant 0 : i32
    return %arg0, %c0_i32 : i32, i32
  }
  func.func @transform_1(%arg0: i32) -> (i32, i32) {
    %c0_i32 = arith.constant 0 : i32
    %c0_i32_0 = arith.constant 0 : i32
    %c0_i32_1 = arith.constant 0 : i32
    return %c0_i32, %c0_i32_0 : i32, i32
  }
  func.func @transform_2(%arg0: i32) -> (i32, i32) {
    %c0_i32 = arith.constant 0 : i32
    %c0_i32_0 = arith.constant 0 : i32
    %c0_i32_1 = arith.constant 0 : i32
    return %c0_i32, %c0_i32_0 : i32, i32
  }
  func.func @transform_3(%arg0: i32) -> (i32, i32) {
    %c0_i32 = arith.constant 0 : i32
    %c0_i32_0 = arith.constant 0 : i32
    return %arg0, %c0_i32 : i32, i32
  }
  func.func @transform_4(%arg0: i32) -> (i32, i32) {
    %c0_i32 = arith.constant 0 : i32
    %c0_i32_0 = arith.constant 0 : i32
    return %arg0, %c0_i32 : i32, i32
  }
}

module attributes {stable_mosaic.version = 11 : i64} {
  func.func @_ln_linear_kernel(%arg0: i32, %arg1: memref<32x32xf32, #tpu.memory_space<vmem>>, %arg2: memref<1x32xf32, #tpu.memory_space<vmem>>, %arg3: memref<1x32xf32, #tpu.memory_space<vmem>>, %arg4: memref<32x96xbf16, #tpu.memory_space<vmem>>, %arg5: memref<1x96xf32, #tpu.memory_space<vmem>>, %arg6: memref<32x96xbf16, #tpu.memory_space<vmem>>) attributes {dimension_semantics = [#tpu.dimension_semantics<parallel>], iteration_bounds = array<i64: 1>, scalar_prefetch = 0 : i64, scratch_operands = 0 : i64, tpu.core_type = #tpu.core_type<tc>, window_params = [{transform_indices = @transform_0, window_bounds = array<i64: 32, 32>}, {pipeline_mode = #tpu.pipeline_mode<synchronous>, transform_indices = @transform_1, window_bounds = array<i64: 1, 32>}, {pipeline_mode = #tpu.pipeline_mode<synchronous>, transform_indices = @transform_2, window_bounds = array<i64: 1, 32>}, {pipeline_mode = #tpu.pipeline_mode<synchronous>, transform_indices = @transform_3, window_bounds = array<i64: 32, 96>}, {pipeline_mode = #tpu.pipeline_mode<synchronous>, transform_indices = @transform_4, window_bounds = array<i64: 1, 96>}, {transform_indices = @transform_5, window_bounds = array<i64: 32, 96>}]} {
    %c0 = arith.constant 0 : index
    %c0_0 = arith.constant 0 : index
    %0 = vector.load %arg1[%c0, %c0_0] : memref<32x32xf32, #tpu.memory_space<vmem>>, vector<32x32xf32>
    %cst = arith.constant dense<0.000000e+00> : vector<32xf32>
    %1 = vector.multi_reduction <add>, %0, %cst [1] : vector<32x32xf32> to vector<32xf32>
    %2 = vector.shape_cast %1 : vector<32xf32> to vector<32x1xf32>
    %cst_1 = arith.constant 3.200000e+01 : f32
    %3 = vector.broadcast %cst_1 : f32 to vector<32x1xf32>
    %4 = arith.divf %2, %3 : vector<32x1xf32>
    %5 = vector.broadcast %4 : vector<32x1xf32> to vector<32x32xf32>
    %6 = arith.subf %0, %5 : vector<32x32xf32>
    %7 = arith.mulf %6, %6 : vector<32x32xf32>
    %cst_2 = arith.constant dense<0.000000e+00> : vector<32xf32>
    %8 = vector.multi_reduction <add>, %7, %cst_2 [1] : vector<32x32xf32> to vector<32xf32>
    %9 = vector.shape_cast %8 : vector<32xf32> to vector<32x1xf32>
    %cst_3 = arith.constant 3.200000e+01 : f32
    %10 = vector.broadcast %cst_3 : f32 to vector<32x1xf32>
    %11 = arith.divf %9, %10 : vector<32x1xf32>
    %cst_4 = arith.constant 9.99999974E-6 : f32
    %12 = vector.broadcast %cst_4 : f32 to vector<32x1xf32>
    %13 = arith.addf %11, %12 : vector<32x1xf32>
    %14 = math.rsqrt %13 : vector<32x1xf32>
    %15 = vector.broadcast %14 : vector<32x1xf32> to vector<32x32xf32>
    %16 = arith.mulf %6, %15 : vector<32x32xf32>
    %c0_5 = arith.constant 0 : index
    %c0_6 = arith.constant 0 : index
    %17 = vector.load %arg2[%c0_5, %c0_6] : memref<1x32xf32, #tpu.memory_space<vmem>>, vector<1x32xf32>
    %18 = vector.broadcast %17 : vector<1x32xf32> to vector<32x32xf32>
    %19 = arith.mulf %16, %18 : vector<32x32xf32>
    %c0_7 = arith.constant 0 : index
    %c0_8 = arith.constant 0 : index
    %20 = vector.load %arg3[%c0_7, %c0_8] : memref<1x32xf32, #tpu.memory_space<vmem>>, vector<1x32xf32>
    %21 = vector.broadcast %20 : vector<1x32xf32> to vector<32x32xf32>
    %22 = arith.addf %19, %21 : vector<32x32xf32>
    %23 = arith.truncf %22 : vector<32x32xf32> to vector<32x32xbf16>
    %c0_9 = arith.constant 0 : index
    %c0_10 = arith.constant 0 : index
    %24 = vector.load %arg4[%c0_9, %c0_10] : memref<32x96xbf16, #tpu.memory_space<vmem>>, vector<32x96xbf16>
    %cst_11 = arith.constant dense<0.000000e+00> : vector<32x96xf32>
    %25 = tpu.matmul %23, %24, %cst_11 {dimension_numbers = #tpu.dot_dimension_numbers<[1], [0], [0], [1], [0, 0, 1, 1], [], []>} : vector<32x32xbf16>, vector<32x96xbf16>, vector<32x96xf32> -> vector<32x96xf32>
    %c0_12 = arith.constant 0 : index
    %c0_13 = arith.constant 0 : index
    %26 = vector.load %arg5[%c0_12, %c0_13] : memref<1x96xf32, #tpu.memory_space<vmem>>, vector<1x96xf32>
    %27 = vector.broadcast %26 : vector<1x96xf32> to vector<32x96xf32>
    %28 = arith.addf %25, %27 : vector<32x96xf32>
    %29 = arith.truncf %28 : vector<32x96xf32> to vector<32x96xbf16>
    %c0_14 = arith.constant 0 : index
    %c0_15 = arith.constant 0 : index
    %30 = vector.load %arg6[%c0_14, %c0_15] : memref<32x96xbf16, #tpu.memory_space<vmem>>, vector<32x96xbf16>
    tpu.vector_store %arg6[%c0_14, %c0_15], %29 {strides = array<i32>} : memref<32x96xbf16, #tpu.memory_space<vmem>>, vector<32x96xbf16>,
    return
  }
  func.func @transform_0(%arg0: i32) -> (i32, i32) {
    %c0_i32 = arith.constant 0 : i32
    %c0_i32_0 = arith.constant 0 : i32
    return %arg0, %c0_i32 : i32, i32
  }
  func.func @transform_1(%arg0: i32) -> (i32, i32) {
    %c0_i32 = arith.constant 0 : i32
    %c0_i32_0 = arith.constant 0 : i32
    %c0_i32_1 = arith.constant 0 : i32
    return %c0_i32, %c0_i32_0 : i32, i32
  }
  func.func @transform_2(%arg0: i32) -> (i32, i32) {
    %c0_i32 = arith.constant 0 : i32
    %c0_i32_0 = arith.constant 0 : i32
    %c0_i32_1 = arith.constant 0 : i32
    return %c0_i32, %c0_i32_0 : i32, i32
  }
  func.func @transform_3(%arg0: i32) -> (i32, i32) {
    %c0_i32 = arith.constant 0 : i32
    %c0_i32_0 = arith.constant 0 : i32
    %c0_i32_1 = arith.constant 0 : i32
    return %c0_i32, %c0_i32_0 : i32, i32
  }
  func.func @transform_4(%arg0: i32) -> (i32, i32) {
    %c0_i32 = arith.constant 0 : i32
    %c0_i32_0 = arith.constant 0 : i32
    %c0_i32_1 = arith.constant 0 : i32
    return %c0_i32, %c0_i32_0 : i32, i32
  }
  func.func @transform_5(%arg0: i32) -> (i32, i32) {
    %c0_i32 = arith.constant 0 : i32
    %c0_i32_0 = arith.constant 0 : i32
    return %arg0, %c0_i32 : i32, i32
  }
}

module attributes {stable_mosaic.version = 11 : i64} {
  func.func @_linear_res_kernel(%arg0: i32, %arg1: memref<32x32xbf16, #tpu.memory_space<vmem>>, %arg2: memref<32x32xbf16, #tpu.memory_space<vmem>>, %arg3: memref<1x32xf32, #tpu.memory_space<vmem>>, %arg4: memref<32x32xf32, #tpu.memory_space<vmem>>, %arg5: memref<32x32xf32, #tpu.memory_space<vmem>>) attributes {dimension_semantics = [#tpu.dimension_semantics<parallel>], iteration_bounds = array<i64: 1>, scalar_prefetch = 0 : i64, scratch_operands = 0 : i64, tpu.core_type = #tpu.core_type<tc>, window_params = [{transform_indices = @transform_0, window_bounds = array<i64: 32, 32>}, {pipeline_mode = #tpu.pipeline_mode<synchronous>, transform_indices = @transform_1, window_bounds = array<i64: 32, 32>}, {pipeline_mode = #tpu.pipeline_mode<synchronous>, transform_indices = @transform_2, window_bounds = array<i64: 1, 32>}, {transform_indices = @transform_3, window_bounds = array<i64: 32, 32>}, {transform_indices = @transform_4, window_bounds = array<i64: 32, 32>}]} {
    %c0 = arith.constant 0 : index
    %c0_0 = arith.constant 0 : index
    %0 = vector.load %arg1[%c0, %c0_0] : memref<32x32xbf16, #tpu.memory_space<vmem>>, vector<32x32xbf16>
    %c0_1 = arith.constant 0 : index
    %c0_2 = arith.constant 0 : index
    %1 = vector.load %arg2[%c0_1, %c0_2] : memref<32x32xbf16, #tpu.memory_space<vmem>>, vector<32x32xbf16>
    %cst = arith.constant dense<0.000000e+00> : vector<32x32xf32>
    %2 = tpu.matmul %0, %1, %cst {dimension_numbers = #tpu.dot_dimension_numbers<[1], [0], [0], [1], [0, 0, 1, 1], [], []>} : vector<32x32xbf16>, vector<32x32xbf16>, vector<32x32xf32> -> vector<32x32xf32>
    %c0_3 = arith.constant 0 : index
    %c0_4 = arith.constant 0 : index
    %3 = vector.load %arg3[%c0_3, %c0_4] : memref<1x32xf32, #tpu.memory_space<vmem>>, vector<1x32xf32>
    %4 = vector.broadcast %3 : vector<1x32xf32> to vector<32x32xf32>
    %5 = arith.addf %2, %4 : vector<32x32xf32>
    %c0_5 = arith.constant 0 : index
    %c0_6 = arith.constant 0 : index
    %6 = vector.load %arg4[%c0_5, %c0_6] : memref<32x32xf32, #tpu.memory_space<vmem>>, vector<32x32xf32>
    %7 = arith.addf %5, %6 : vector<32x32xf32>
    %c0_7 = arith.constant 0 : index
    %c0_8 = arith.constant 0 : index
    %8 = vector.load %arg5[%c0_7, %c0_8] : memref<32x32xf32, #tpu.memory_space<vmem>>, vector<32x32xf32>
    tpu.vector_store %arg5[%c0_7, %c0_8], %7 {strides = array<i32>} : memref<32x32xf32, #tpu.memory_space<vmem>>, vector<32x32xf32>,
    return
  }
  func.func @transform_0(%arg0: i32) -> (i32, i32) {
    %c0_i32 = arith.constant 0 : i32
    %c0_i32_0 = arith.constant 0 : i32
    return %arg0, %c0_i32 : i32, i32
  }
  func.func @transform_1(%arg0: i32) -> (i32, i32) {
    %c0_i32 = arith.constant 0 : i32
    %c0_i32_0 = arith.constant 0 : i32
    %c0_i32_1 = arith.constant 0 : i32
    return %c0_i32, %c0_i32_0 : i32, i32
  }
  func.func @transform_2(%arg0: i32) -> (i32, i32) {
    %c0_i32 = arith.constant 0 : i32
    %c0_i32_0 = arith.constant 0 : i32
    %c0_i32_1 = arith.constant 0 : i32
    return %c0_i32, %c0_i32_0 : i32, i32
  }
  func.func @transform_3(%arg0: i32) -> (i32, i32) {
    %c0_i32 = arith.constant 0 : i32
    %c0_i32_0 = arith.constant 0 : i32
    return %arg0, %c0_i32 : i32, i32
  }
  func.func @transform_4(%arg0: i32) -> (i32, i32) {
    %c0_i32 = arith.constant 0 : i32
    %c0_i32_0 = arith.constant 0 : i32
    return %arg0, %c0_i32 : i32, i32
  }
}

module attributes {stable_mosaic.version = 11 : i64} {
  func.func @_ln_linear_kernel(%arg0: i32, %arg1: memref<32x32xf32, #tpu.memory_space<vmem>>, %arg2: memref<1x32xf32, #tpu.memory_space<vmem>>, %arg3: memref<1x32xf32, #tpu.memory_space<vmem>>, %arg4: memref<32x128xbf16, #tpu.memory_space<vmem>>, %arg5: memref<1x128xf32, #tpu.memory_space<vmem>>, %arg6: memref<32x128xbf16, #tpu.memory_space<vmem>>) attributes {dimension_semantics = [#tpu.dimension_semantics<parallel>], iteration_bounds = array<i64: 1>, scalar_prefetch = 0 : i64, scratch_operands = 0 : i64, tpu.core_type = #tpu.core_type<tc>, window_params = [{transform_indices = @transform_0, window_bounds = array<i64: 32, 32>}, {pipeline_mode = #tpu.pipeline_mode<synchronous>, transform_indices = @transform_1, window_bounds = array<i64: 1, 32>}, {pipeline_mode = #tpu.pipeline_mode<synchronous>, transform_indices = @transform_2, window_bounds = array<i64: 1, 32>}, {pipeline_mode = #tpu.pipeline_mode<synchronous>, transform_indices = @transform_3, window_bounds = array<i64: 32, 128>}, {pipeline_mode = #tpu.pipeline_mode<synchronous>, transform_indices = @transform_4, window_bounds = array<i64: 1, 128>}, {transform_indices = @transform_5, window_bounds = array<i64: 32, 128>}]} {
    %c0 = arith.constant 0 : index
    %c0_0 = arith.constant 0 : index
    %0 = vector.load %arg1[%c0, %c0_0] : memref<32x32xf32, #tpu.memory_space<vmem>>, vector<32x32xf32>
    %cst = arith.constant dense<0.000000e+00> : vector<32xf32>
    %1 = vector.multi_reduction <add>, %0, %cst [1] : vector<32x32xf32> to vector<32xf32>
    %2 = vector.shape_cast %1 : vector<32xf32> to vector<32x1xf32>
    %cst_1 = arith.constant 3.200000e+01 : f32
    %3 = vector.broadcast %cst_1 : f32 to vector<32x1xf32>
    %4 = arith.divf %2, %3 : vector<32x1xf32>
    %5 = vector.broadcast %4 : vector<32x1xf32> to vector<32x32xf32>
    %6 = arith.subf %0, %5 : vector<32x32xf32>
    %7 = arith.mulf %6, %6 : vector<32x32xf32>
    %cst_2 = arith.constant dense<0.000000e+00> : vector<32xf32>
    %8 = vector.multi_reduction <add>, %7, %cst_2 [1] : vector<32x32xf32> to vector<32xf32>
    %9 = vector.shape_cast %8 : vector<32xf32> to vector<32x1xf32>
    %cst_3 = arith.constant 3.200000e+01 : f32
    %10 = vector.broadcast %cst_3 : f32 to vector<32x1xf32>
    %11 = arith.divf %9, %10 : vector<32x1xf32>
    %cst_4 = arith.constant 9.99999974E-6 : f32
    %12 = vector.broadcast %cst_4 : f32 to vector<32x1xf32>
    %13 = arith.addf %11, %12 : vector<32x1xf32>
    %14 = math.rsqrt %13 : vector<32x1xf32>
    %15 = vector.broadcast %14 : vector<32x1xf32> to vector<32x32xf32>
    %16 = arith.mulf %6, %15 : vector<32x32xf32>
    %c0_5 = arith.constant 0 : index
    %c0_6 = arith.constant 0 : index
    %17 = vector.load %arg2[%c0_5, %c0_6] : memref<1x32xf32, #tpu.memory_space<vmem>>, vector<1x32xf32>
    %18 = vector.broadcast %17 : vector<1x32xf32> to vector<32x32xf32>
    %19 = arith.mulf %16, %18 : vector<32x32xf32>
    %c0_7 = arith.constant 0 : index
    %c0_8 = arith.constant 0 : index
    %20 = vector.load %arg3[%c0_7, %c0_8] : memref<1x32xf32, #tpu.memory_space<vmem>>, vector<1x32xf32>
    %21 = vector.broadcast %20 : vector<1x32xf32> to vector<32x32xf32>
    %22 = arith.addf %19, %21 : vector<32x32xf32>
    %23 = arith.truncf %22 : vector<32x32xf32> to vector<32x32xbf16>
    %c0_9 = arith.constant 0 : index
    %c0_10 = arith.constant 0 : index
    %24 = vector.load %arg4[%c0_9, %c0_10] : memref<32x128xbf16, #tpu.memory_space<vmem>>, vector<32x128xbf16>
    %cst_11 = arith.constant dense<0.000000e+00> : vector<32x128xf32>
    %25 = tpu.matmul %23, %24, %cst_11 {dimension_numbers = #tpu.dot_dimension_numbers<[1], [0], [0], [1], [0, 0, 1, 1], [], []>} : vector<32x32xbf16>, vector<32x128xbf16>, vector<32x128xf32> -> vector<32x128xf32>
    %c0_12 = arith.constant 0 : index
    %c0_13 = arith.constant 0 : index
    %26 = vector.load %arg5[%c0_12, %c0_13] : memref<1x128xf32, #tpu.memory_space<vmem>>, vector<1x128xf32>
    %27 = vector.broadcast %26 : vector<1x128xf32> to vector<32x128xf32>
    %28 = arith.addf %25, %27 : vector<32x128xf32>
    %cst_14 = arith.constant 1.702000e+00 : f32
    %29 = vector.broadcast %cst_14 : f32 to vector<32x128xf32>
    %30 = arith.mulf %29, %28 : vector<32x128xf32>
    %31 = arith.negf %30 : vector<32x128xf32>
    %32 = math.exp %31 : vector<32x128xf32>
    %cst_15 = arith.constant 1.000000e+00 : f32
    %33 = vector.broadcast %cst_15 : f32 to vector<32x128xf32>
    %34 = arith.addf %33, %32 : vector<32x128xf32>
    %35 = arith.divf %33, %34 : vector<32x128xf32>
    %36 = arith.mulf %28, %35 : vector<32x128xf32>
    %37 = arith.truncf %36 : vector<32x128xf32> to vector<32x128xbf16>
    %c0_16 = arith.constant 0 : index
    %c0_17 = arith.constant 0 : index
    %38 = vector.load %arg6[%c0_16, %c0_17] : memref<32x128xbf16, #tpu.memory_space<vmem>>, vector<32x128xbf16>
    tpu.vector_store %arg6[%c0_16, %c0_17], %37 {strides = array<i32>} : memref<32x128xbf16, #tpu.memory_space<vmem>>, vector<32x128xbf16>,
    return
  }
  func.func @transform_0(%arg0: i32) -> (i32, i32) {
    %c0_i32 = arith.constant 0 : i32
    %c0_i32_0 = arith.constant 0 : i32
    return %arg0, %c0_i32 : i32, i32
  }
  func.func @transform_1(%arg0: i32) -> (i32, i32) {
    %c0_i32 = arith.constant 0 : i32
    %c0_i32_0 = arith.constant 0 : i32
    %c0_i32_1 = arith.constant 0 : i32
    return %c0_i32, %c0_i32_0 : i32, i32
  }
  func.func @transform_2(%arg0: i32) -> (i32, i32) {
    %c0_i32 = arith.constant 0 : i32
    %c0_i32_0 = arith.constant 0 : i32
    %c0_i32_1 = arith.constant 0 : i32
    return %c0_i32, %c0_i32_0 : i32, i32
  }
  func.func @transform_3(%arg0: i32) -> (i32, i32) {
    %c0_i32 = arith.constant 0 : i32
    %c0_i32_0 = arith.constant 0 : i32
    %c0_i32_1 = arith.constant 0 : i32
    return %c0_i32, %c0_i32_0 : i32, i32
  }
  func.func @transform_4(%arg0: i32) -> (i32, i32) {
    %c0_i32 = arith.constant 0 : i32
    %c0_i32_0 = arith.constant 0 : i32
    %c0_i32_1 = arith.constant 0 : i32
    return %c0_i32, %c0_i32_0 : i32, i32
  }
  func.func @transform_5(%arg0: i32) -> (i32, i32) {
    %c0_i32 = arith.constant 0 : i32
    %c0_i32_0 = arith.constant 0 : i32
    return %arg0, %c0_i32 : i32, i32
  }
}

module attributes {stable_mosaic.version = 11 : i64} {
  func.func @_mha_msg_kernel(%arg0: i32, %arg1: memref<4x8x96xbf16, #tpu.memory_space<vmem>>, %arg2: memref<4x1x96xbf16, #tpu.memory_space<vmem>>, %arg3: memref<4x8x32xbf16, #tpu.memory_space<vmem>>) attributes {dimension_semantics = [#tpu.dimension_semantics<parallel>], iteration_bounds = array<i64: 1>, scalar_prefetch = 0 : i64, scratch_operands = 0 : i64, tpu.core_type = #tpu.core_type<tc>, window_params = [{transform_indices = @transform_0, window_bounds = array<i64: 4, 8, 96>}, {transform_indices = @transform_1, window_bounds = array<i64: 4, 1, 96>}, {transform_indices = @transform_2, window_bounds = array<i64: 4, 8, 32>}]} {
    %c0 = arith.constant 0 : index
    %c0_0 = arith.constant 0 : index
    %c0_1 = arith.constant 0 : index
    %0 = vector.load %arg1[%c0, %c0_0, %c0_1] : memref<4x8x96xbf16, #tpu.memory_space<vmem>>, vector<4x8x96xbf16>
    %c0_2 = arith.constant 0 : index
    %c0_3 = arith.constant 0 : index
    %c0_4 = arith.constant 0 : index
    %1 = vector.load %arg2[%c0_2, %c0_3, %c0_4] : memref<4x1x96xbf16, #tpu.memory_space<vmem>>, vector<4x1x96xbf16>
    %2 = tpu.concatenate %0, %1 in 1 : vector<4x8x96xbf16>, vector<4x1x96xbf16> -> vector<4x9x96xbf16>
    %3 = vector.extract_strided_slice %0 {offsets = [0, 0, 0], sizes = [4, 8, 8], strides = [1, 1, 1]} : vector<4x8x96xbf16> to vector<4x8x8xbf16>
    %cst = arith.constant 3.535160e-01 : bf16
    %4 = vector.broadcast %cst : bf16 to vector<4x8x8xbf16>
    %5 = arith.mulf %3, %4 : vector<4x8x8xbf16>
    %6 = vector.extract_strided_slice %2 {offsets = [0, 0, 32], sizes = [4, 9, 8], strides = [1, 1, 1]} : vector<4x9x96xbf16> to vector<4x9x8xbf16>
    %7 = vector.extract_strided_slice %2 {offsets = [0, 0, 64], sizes = [4, 9, 8], strides = [1, 1, 1]} : vector<4x9x96xbf16> to vector<4x9x8xbf16>
    %cst_5 = arith.constant dense<0.000000e+00> : vector<4x8x9xf32>
    %8 = tpu.matmul %5, %6, %cst_5 {dimension_numbers = #tpu.dot_dimension_numbers<[2], [2], [1], [1], [0, 0, 0, 1, 1, 1], [0], [0]>} : vector<4x8x8xbf16>, vector<4x9x8xbf16>, vector<4x8x9xf32> -> vector<4x8x9xf32>
    %cst_6 = arith.constant dense<0xFF800000> : vector<4x8xf32>
    %9 = vector.multi_reduction <maximumf>, %8, %cst_6 [2] : vector<4x8x9xf32> to vector<4x8xf32>
    %10 = vector.shape_cast %9 : vector<4x8xf32> to vector<4x8x1xf32>
    %11 = vector.broadcast %10 : vector<4x8x1xf32> to vector<4x8x9xf32>
    %12 = arith.subf %8, %11 : vector<4x8x9xf32>
    %13 = math.exp %12 : vector<4x8x9xf32>
    %cst_7 = arith.constant dense<0.000000e+00> : vector<4x8xf32>
    %14 = vector.multi_reduction <add>, %13, %cst_7 [2] : vector<4x8x9xf32> to vector<4x8xf32>
    %15 = vector.shape_cast %14 : vector<4x8xf32> to vector<4x8x1xf32>
    %16 = tpu.reciprocal %15 {approx = true} : vector<4x8x1xf32> -> vector<4x8x1xf32>
    %17 = vector.broadcast %16 : vector<4x8x1xf32> to vector<4x8x9xf32>
    %18 = arith.mulf %13, %17 : vector<4x8x9xf32>
    %19 = arith.truncf %18 : vector<4x8x9xf32> to vector<4x8x9xbf16>
    %cst_8 = arith.constant dense<0.000000e+00> : vector<4x8x8xf32>
    %20 = tpu.matmul %19, %7, %cst_8 {dimension_numbers = #tpu.dot_dimension_numbers<[2], [1], [1], [2], [0, 0, 0, 1, 1, 2], [0], [0]>} : vector<4x8x9xbf16>, vector<4x9x8xbf16>, vector<4x8x8xf32> -> vector<4x8x8xf32>
    %21 = arith.truncf %20 : vector<4x8x8xf32> to vector<4x8x8xbf16>
    %c0_9 = arith.constant 0 : index
    %c0_10 = arith.constant 0 : index
    %c0_11 = arith.constant 0 : index
    %22 = vector.load %arg3[%c0_9, %c0_10, %c0_11] : memref<4x8x32xbf16, #tpu.memory_space<vmem>>, vector<4x8x8xbf16>
    tpu.vector_store %arg3[%c0_9, %c0_10, %c0_11], %21 {strides = array<i32>} : memref<4x8x32xbf16, #tpu.memory_space<vmem>>, vector<4x8x8xbf16>,
    %23 = vector.extract_strided_slice %0 {offsets = [0, 0, 8], sizes = [4, 8, 8], strides = [1, 1, 1]} : vector<4x8x96xbf16> to vector<4x8x8xbf16>
    %cst_12 = arith.constant 3.535160e-01 : bf16
    %24 = vector.broadcast %cst_12 : bf16 to vector<4x8x8xbf16>
    %25 = arith.mulf %23, %24 : vector<4x8x8xbf16>
    %26 = vector.extract_strided_slice %2 {offsets = [0, 0, 40], sizes = [4, 9, 8], strides = [1, 1, 1]} : vector<4x9x96xbf16> to vector<4x9x8xbf16>
    %27 = vector.extract_strided_slice %2 {offsets = [0, 0, 72], sizes = [4, 9, 8], strides = [1, 1, 1]} : vector<4x9x96xbf16> to vector<4x9x8xbf16>
    %cst_13 = arith.constant dense<0.000000e+00> : vector<4x8x9xf32>
    %28 = tpu.matmul %25, %26, %cst_13 {dimension_numbers = #tpu.dot_dimension_numbers<[2], [2], [1], [1], [0, 0, 0, 1, 1, 1], [0], [0]>} : vector<4x8x8xbf16>, vector<4x9x8xbf16>, vector<4x8x9xf32> -> vector<4x8x9xf32>
    %cst_14 = arith.constant dense<0xFF800000> : vector<4x8xf32>
    %29 = vector.multi_reduction <maximumf>, %28, %cst_14 [2] : vector<4x8x9xf32> to vector<4x8xf32>
    %30 = vector.shape_cast %29 : vector<4x8xf32> to vector<4x8x1xf32>
    %31 = vector.broadcast %30 : vector<4x8x1xf32> to vector<4x8x9xf32>
    %32 = arith.subf %28, %31 : vector<4x8x9xf32>
    %33 = math.exp %32 : vector<4x8x9xf32>
    %cst_15 = arith.constant dense<0.000000e+00> : vector<4x8xf32>
    %34 = vector.multi_reduction <add>, %33, %cst_15 [2] : vector<4x8x9xf32> to vector<4x8xf32>
    %35 = vector.shape_cast %34 : vector<4x8xf32> to vector<4x8x1xf32>
    %36 = tpu.reciprocal %35 {approx = true} : vector<4x8x1xf32> -> vector<4x8x1xf32>
    %37 = vector.broadcast %36 : vector<4x8x1xf32> to vector<4x8x9xf32>
    %38 = arith.mulf %33, %37 : vector<4x8x9xf32>
    %39 = arith.truncf %38 : vector<4x8x9xf32> to vector<4x8x9xbf16>
    %cst_16 = arith.constant dense<0.000000e+00> : vector<4x8x8xf32>
    %40 = tpu.matmul %39, %27, %cst_16 {dimension_numbers = #tpu.dot_dimension_numbers<[2], [1], [1], [2], [0, 0, 0, 1, 1, 2], [0], [0]>} : vector<4x8x9xbf16>, vector<4x9x8xbf16>, vector<4x8x8xf32> -> vector<4x8x8xf32>
    %41 = arith.truncf %40 : vector<4x8x8xf32> to vector<4x8x8xbf16>
    %c0_17 = arith.constant 0 : index
    %c0_18 = arith.constant 0 : index
    %c8 = arith.constant 8 : index
    %42 = vector.load %arg3[%c0_17, %c0_18, %c8] : memref<4x8x32xbf16, #tpu.memory_space<vmem>>, vector<4x8x8xbf16>
    tpu.vector_store %arg3[%c0_17, %c0_18, %c8], %41 {strides = array<i32>} : memref<4x8x32xbf16, #tpu.memory_space<vmem>>, vector<4x8x8xbf16>,
    %43 = vector.extract_strided_slice %0 {offsets = [0, 0, 16], sizes = [4, 8, 8], strides = [1, 1, 1]} : vector<4x8x96xbf16> to vector<4x8x8xbf16>
    %cst_19 = arith.constant 3.535160e-01 : bf16
    %44 = vector.broadcast %cst_19 : bf16 to vector<4x8x8xbf16>
    %45 = arith.mulf %43, %44 : vector<4x8x8xbf16>
    %46 = vector.extract_strided_slice %2 {offsets = [0, 0, 48], sizes = [4, 9, 8], strides = [1, 1, 1]} : vector<4x9x96xbf16> to vector<4x9x8xbf16>
    %47 = vector.extract_strided_slice %2 {offsets = [0, 0, 80], sizes = [4, 9, 8], strides = [1, 1, 1]} : vector<4x9x96xbf16> to vector<4x9x8xbf16>
    %cst_20 = arith.constant dense<0.000000e+00> : vector<4x8x9xf32>
    %48 = tpu.matmul %45, %46, %cst_20 {dimension_numbers = #tpu.dot_dimension_numbers<[2], [2], [1], [1], [0, 0, 0, 1, 1, 1], [0], [0]>} : vector<4x8x8xbf16>, vector<4x9x8xbf16>, vector<4x8x9xf32> -> vector<4x8x9xf32>
    %cst_21 = arith.constant dense<0xFF800000> : vector<4x8xf32>
    %49 = vector.multi_reduction <maximumf>, %48, %cst_21 [2] : vector<4x8x9xf32> to vector<4x8xf32>
    %50 = vector.shape_cast %49 : vector<4x8xf32> to vector<4x8x1xf32>
    %51 = vector.broadcast %50 : vector<4x8x1xf32> to vector<4x8x9xf32>
    %52 = arith.subf %48, %51 : vector<4x8x9xf32>
    %53 = math.exp %52 : vector<4x8x9xf32>
    %cst_22 = arith.constant dense<0.000000e+00> : vector<4x8xf32>
    %54 = vector.multi_reduction <add>, %53, %cst_22 [2] : vector<4x8x9xf32> to vector<4x8xf32>
    %55 = vector.shape_cast %54 : vector<4x8xf32> to vector<4x8x1xf32>
    %56 = tpu.reciprocal %55 {approx = true} : vector<4x8x1xf32> -> vector<4x8x1xf32>
    %57 = vector.broadcast %56 : vector<4x8x1xf32> to vector<4x8x9xf32>
    %58 = arith.mulf %53, %57 : vector<4x8x9xf32>
    %59 = arith.truncf %58 : vector<4x8x9xf32> to vector<4x8x9xbf16>
    %cst_23 = arith.constant dense<0.000000e+00> : vector<4x8x8xf32>
    %60 = tpu.matmul %59, %47, %cst_23 {dimension_numbers = #tpu.dot_dimension_numbers<[2], [1], [1], [2], [0, 0, 0, 1, 1, 2], [0], [0]>} : vector<4x8x9xbf16>, vector<4x9x8xbf16>, vector<4x8x8xf32> -> vector<4x8x8xf32>
    %61 = arith.truncf %60 : vector<4x8x8xf32> to vector<4x8x8xbf16>
    %c0_24 = arith.constant 0 : index
    %c0_25 = arith.constant 0 : index
    %c16 = arith.constant 16 : index
    %62 = vector.load %arg3[%c0_24, %c0_25, %c16] : memref<4x8x32xbf16, #tpu.memory_space<vmem>>, vector<4x8x8xbf16>
    tpu.vector_store %arg3[%c0_24, %c0_25, %c16], %61 {strides = array<i32>} : memref<4x8x32xbf16, #tpu.memory_space<vmem>>, vector<4x8x8xbf16>,
    %63 = vector.extract_strided_slice %0 {offsets = [0, 0, 24], sizes = [4, 8, 8], strides = [1, 1, 1]} : vector<4x8x96xbf16> to vector<4x8x8xbf16>
    %cst_26 = arith.constant 3.535160e-01 : bf16
    %64 = vector.broadcast %cst_26 : bf16 to vector<4x8x8xbf16>
    %65 = arith.mulf %63, %64 : vector<4x8x8xbf16>
    %66 = vector.extract_strided_slice %2 {offsets = [0, 0, 56], sizes = [4, 9, 8], strides = [1, 1, 1]} : vector<4x9x96xbf16> to vector<4x9x8xbf16>
    %67 = vector.extract_strided_slice %2 {offsets = [0, 0, 88], sizes = [4, 9, 8], strides = [1, 1, 1]} : vector<4x9x96xbf16> to vector<4x9x8xbf16>
    %cst_27 = arith.constant dense<0.000000e+00> : vector<4x8x9xf32>
    %68 = tpu.matmul %65, %66, %cst_27 {dimension_numbers = #tpu.dot_dimension_numbers<[2], [2], [1], [1], [0, 0, 0, 1, 1, 1], [0], [0]>} : vector<4x8x8xbf16>, vector<4x9x8xbf16>, vector<4x8x9xf32> -> vector<4x8x9xf32>
    %cst_28 = arith.constant dense<0xFF800000> : vector<4x8xf32>
    %69 = vector.multi_reduction <maximumf>, %68, %cst_28 [2] : vector<4x8x9xf32> to vector<4x8xf32>
    %70 = vector.shape_cast %69 : vector<4x8xf32> to vector<4x8x1xf32>
    %71 = vector.broadcast %70 : vector<4x8x1xf32> to vector<4x8x9xf32>
    %72 = arith.subf %68, %71 : vector<4x8x9xf32>
    %73 = math.exp %72 : vector<4x8x9xf32>
    %cst_29 = arith.constant dense<0.000000e+00> : vector<4x8xf32>
    %74 = vector.multi_reduction <add>, %73, %cst_29 [2] : vector<4x8x9xf32> to vector<4x8xf32>
    %75 = vector.shape_cast %74 : vector<4x8xf32> to vector<4x8x1xf32>
    %76 = tpu.reciprocal %75 {approx = true} : vector<4x8x1xf32> -> vector<4x8x1xf32>
    %77 = vector.broadcast %76 : vector<4x8x1xf32> to vector<4x8x9xf32>
    %78 = arith.mulf %73, %77 : vector<4x8x9xf32>
    %79 = arith.truncf %78 : vector<4x8x9xf32> to vector<4x8x9xbf16>
    %cst_30 = arith.constant dense<0.000000e+00> : vector<4x8x8xf32>
    %80 = tpu.matmul %79, %67, %cst_30 {dimension_numbers = #tpu.dot_dimension_numbers<[2], [1], [1], [2], [0, 0, 0, 1, 1, 2], [0], [0]>} : vector<4x8x9xbf16>, vector<4x9x8xbf16>, vector<4x8x8xf32> -> vector<4x8x8xf32>
    %81 = arith.truncf %80 : vector<4x8x8xf32> to vector<4x8x8xbf16>
    %c0_31 = arith.constant 0 : index
    %c0_32 = arith.constant 0 : index
    %c24 = arith.constant 24 : index
    %82 = vector.load %arg3[%c0_31, %c0_32, %c24] : memref<4x8x32xbf16, #tpu.memory_space<vmem>>, vector<4x8x8xbf16>
    tpu.vector_store %arg3[%c0_31, %c0_32, %c24], %81 {strides = array<i32>} : memref<4x8x32xbf16, #tpu.memory_space<vmem>>, vector<4x8x8xbf16>,
    return
  }
  func.func @transform_0(%arg0: i32) -> (i32, i32, i32) {
    %c0_i32 = arith.constant 0 : i32
    %c0_i32_0 = arith.constant 0 : i32
    %c0_i32_1 = arith.constant 0 : i32
    return %arg0, %c0_i32, %c0_i32_0 : i32, i32, i32
  }
  func.func @transform_1(%arg0: i32) -> (i32, i32, i32) {
    %c0_i32 = arith.constant 0 : i32
    %c0_i32_0 = arith.constant 0 : i32
    %c0_i32_1 = arith.constant 0 : i32
    return %arg0, %c0_i32, %c0_i32_0 : i32, i32, i32
  }
  func.func @transform_2(%arg0: i32) -> (i32, i32, i32) {
    %c0_i32 = arith.constant 0 : i32
    %c0_i32_0 = arith.constant 0 : i32
    %c0_i32_1 = arith.constant 0 : i32
    return %arg0, %c0_i32, %c0_i32_0 : i32, i32, i32
  }
}

module attributes {stable_mosaic.version = 11 : i64} {
  func.func @_linear_res_kernel(%arg0: i32, %arg1: memref<32x128xbf16, #tpu.memory_space<vmem>>, %arg2: memref<128x32xbf16, #tpu.memory_space<vmem>>, %arg3: memref<1x32xf32, #tpu.memory_space<vmem>>, %arg4: memref<32x32xf32, #tpu.memory_space<vmem>>, %arg5: memref<32x32xf32, #tpu.memory_space<vmem>>) attributes {dimension_semantics = [#tpu.dimension_semantics<parallel>], iteration_bounds = array<i64: 1>, scalar_prefetch = 0 : i64, scratch_operands = 0 : i64, tpu.core_type = #tpu.core_type<tc>, window_params = [{transform_indices = @transform_0, window_bounds = array<i64: 32, 128>}, {pipeline_mode = #tpu.pipeline_mode<synchronous>, transform_indices = @transform_1, window_bounds = array<i64: 128, 32>}, {pipeline_mode = #tpu.pipeline_mode<synchronous>, transform_indices = @transform_2, window_bounds = array<i64: 1, 32>}, {transform_indices = @transform_3, window_bounds = array<i64: 32, 32>}, {transform_indices = @transform_4, window_bounds = array<i64: 32, 32>}]} {
    %c0 = arith.constant 0 : index
    %c0_0 = arith.constant 0 : index
    %0 = vector.load %arg1[%c0, %c0_0] : memref<32x128xbf16, #tpu.memory_space<vmem>>, vector<32x128xbf16>
    %c0_1 = arith.constant 0 : index
    %c0_2 = arith.constant 0 : index
    %1 = vector.load %arg2[%c0_1, %c0_2] : memref<128x32xbf16, #tpu.memory_space<vmem>>, vector<128x32xbf16>
    %cst = arith.constant dense<0.000000e+00> : vector<32x32xf32>
    %2 = tpu.matmul %0, %1, %cst {dimension_numbers = #tpu.dot_dimension_numbers<[1], [0], [0], [1], [0, 0, 1, 1], [], []>} : vector<32x128xbf16>, vector<128x32xbf16>, vector<32x32xf32> -> vector<32x32xf32>
    %c0_3 = arith.constant 0 : index
    %c0_4 = arith.constant 0 : index
    %3 = vector.load %arg3[%c0_3, %c0_4] : memref<1x32xf32, #tpu.memory_space<vmem>>, vector<1x32xf32>
    %4 = vector.broadcast %3 : vector<1x32xf32> to vector<32x32xf32>
    %5 = arith.addf %2, %4 : vector<32x32xf32>
    %c0_5 = arith.constant 0 : index
    %c0_6 = arith.constant 0 : index
    %6 = vector.load %arg4[%c0_5, %c0_6] : memref<32x32xf32, #tpu.memory_space<vmem>>, vector<32x32xf32>
    %7 = arith.addf %5, %6 : vector<32x32xf32>
    %c0_7 = arith.constant 0 : index
    %c0_8 = arith.constant 0 : index
    %8 = vector.load %arg5[%c0_7, %c0_8] : memref<32x32xf32, #tpu.memory_space<vmem>>, vector<32x32xf32>
    tpu.vector_store %arg5[%c0_7, %c0_8], %7 {strides = array<i32>} : memref<32x32xf32, #tpu.memory_space<vmem>>, vector<32x32xf32>,
    return
  }
  func.func @transform_0(%arg0: i32) -> (i32, i32) {
    %c0_i32 = arith.constant 0 : i32
    %c0_i32_0 = arith.constant 0 : i32
    return %arg0, %c0_i32 : i32, i32
  }
  func.func @transform_1(%arg0: i32) -> (i32, i32) {
    %c0_i32 = arith.constant 0 : i32
    %c0_i32_0 = arith.constant 0 : i32
    %c0_i32_1 = arith.constant 0 : i32
    return %c0_i32, %c0_i32_0 : i32, i32
  }
  func.func @transform_2(%arg0: i32) -> (i32, i32) {
    %c0_i32 = arith.constant 0 : i32
    %c0_i32_0 = arith.constant 0 : i32
    %c0_i32_1 = arith.constant 0 : i32
    return %c0_i32, %c0_i32_0 : i32, i32
  }
  func.func @transform_3(%arg0: i32) -> (i32, i32) {
    %c0_i32 = arith.constant 0 : i32
    %c0_i32_0 = arith.constant 0 : i32
    return %arg0, %c0_i32 : i32, i32
  }
  func.func @transform_4(%arg0: i32) -> (i32, i32) {
    %c0_i32 = arith.constant 0 : i32
    %c0_i32_0 = arith.constant 0 : i32
    return %arg0, %c0_i32 : i32, i32
  }
}

</mosaic_0001>

<bundles_post_ra>
// kernel: cross_frame_attention_block.10
= control target key start
LH: loop header
LB: loop body
LE: loop exit
PB: predicated region body
PF: predicated region fallthrough
CT: control target
= control target key end

     0   :  { %v109_v0 = vmov 0.0   ;;  %vm110_vm0 = vmmov 0   ;;  %vm40_vm1 = vcmask 261120   ;;  %vm84_vm2 = vcmask 257024   ;;  %s146_s1 = inlined_call_operand.vmem [shape: bf16[32,32], index: 1, kind: input, shape index: {}]   ;;  %s147_s0 = inlined_call_operand.vmem [shape: f32[4,32], index: 0, kind: input, shape index: {}]   ;;  %s148_s2 = inlined_call_operand.vmem [shape: f32[1,32], index: 2, kind: input, shape index: {}]   ;;  %s149_s3 = inlined_call_operand.vmem [shape: f32[4,32], index: 3, kind: output, shape index: {}]  }
   0x1   :  { %97 = vmatprep.subr.bf16.mxu0 %v109_v0  ;;  %v107_v1 = vld [vmem:[%s146_s1 + $0x8] sm:$0xff]   ;;  %101 = vmatprep.mubr.msk.bf16.mxu0 %vm110_vm0, %v109_v0  ;;  %v108_v2 = vld [vmem:[%s146_s1] sm:$0xff]  }
   0x2   :  { %98 = vmatpush3.bf16.msra.mxu0 %v107_v1  ;;  %v15_v3 = vld [vmem:[%s147_s0] sm:$0xf] }
   0x3   :  { %99 = vmatprep.subr.bf16.mxu0 %v109_v0  ;;  %v16_v4 = vpack.c.bf16 %v15_v3, %v15_v3  ;;  %v90_v5 = vld [vmem:[%s148_s2] ss:$0 sm:$0xff] }
   0x6   :  { %100 = vmatpush3.bf16.msra.mxu0 %v108_v2 }
   0x9   :  { %102 = vmatmul.mubr.msk.bf16.vlgmr.msra.gmra.mxu0 %vm40_vm1, %v16_v4 }
  0xc9   :  { %v78_v6 = vpop.f32.mrf.mxu0 }
  0xca   :  { %v79_v7 = vadd.f32 %v90_v5, %v78_v6 }
  0xcb   :  { %v103_v8 = vpop.f32.mrf.mxu0 }
  0xcc   :  { %85 = vst.msk [vmem:[%s149_s3] sm:$0xf] %vm84_vm2, %v79_v7 }
  0xcd   :  { %v81_v9 = vpop.f32.mrf.mxu0 }
  0xcf   :  { %v104_v10 = vpop.f32.mrf.mxu0 }

// kernel: cross_frame_attention_block.11
= control target key start
LH: loop header
LB: loop body
LE: loop exit
PB: predicated region body
PF: predicated region fallthrough
CT: control target
= control target key end

     0   :  { %vm22_vm0 = vcmask 257024   ;;  %v151_v7 = vmov 0.0   ;;  %vm152_vm1 = vmmov 0   ;;  %vm77_vm2 = vcmask 261120   ;;  %s204_s0 = inlined_call_operand.vmem [shape: f32[4,32], index: 0, kind: input, shape index: {}]   ;;  %s205_s3 = inlined_call_operand.vmem [shape: bf16[32,96], index: 3, kind: input, shape index: {}]   ;;  %s206_s1 = inlined_call_operand.vmem [shape: f32[1,32], index: 1, kind: input, shape index: {}]   ;;  %s207_s2 = inlined_call_operand.vmem [shape: f32[1,32], index: 2, kind: input, shape index: {}]   ;;  %s208_s4 = inlined_call_operand.vmem [shape: f32[1,96], index: 4, kind: input, shape index: {}]   ;;  %s209_s5 = inlined_call_operand.vmem [shape: bf16[4,96], index: 5, kind: output, shape index: {}]  }
   0x1   :  { %v21_v0 = vld [vmem:[%s204_s0] sm:$0xf]  ;;  %137 = vmatprep.subr.bf16.mxu0 %v151_v7  ;;  %v147_v8 = vld [vmem:[%s205_s3 + $0x8] sm:$0xff]   ;;  %141 = vmatprep.mubr.msk.bf16.mxu0 %vm152_vm1, %v151_v7  ;;  %vm122_vm3 = vcmask 779264  }
   0x2   :  { %v23_v1 = vsel %vm22_vm0, %v21_v0, 0.0  ;;  %138 = vmatpush3.bf16.msra.mxu0 %v147_v8  ;;  %v148_v9 = vld [vmem:[%s205_s3] sm:$0xff]  }
   0x3   :  { %24 = vadd.xlane.f32.xlu0 %v23_v1  ;;  %139 = vmatprep.subr.bf16.mxu0 %v151_v7  ;;  %v128_v14 = vld [vmem:[%s206_s1] ss:$0 sm:$0xff] }
   0x4   :  { %v129_v16 = vld [vmem:[%s207_s2] ss:$0 sm:$0xff] }
   0x5   :  { %v130_v20 = vld [vmem:[%s208_s4] ss:$0 sm:$0xff] }
   0x6   :  { %140 = vmatpush3.bf16.msra.mxu0 %v148_v9 }
  0x8c   :  { %v25_v2 = vpop.xlane.xlu0 %24 }
  0x8d   :  { %v27_v3 = vmul.f32 0.03125, %v25_v2 }
  0x8f   :  { %v28_v4 = vsub.f32 %v21_v0, %v27_v3 }
  0x91   :  { %v29_v5 = vmul.f32 %v28_v4, %v28_v4 }
  0x93   :  { %v30_v6 = vsel %vm22_vm0, %v29_v5, 0.0 }
  0x94   :  { %31 = vadd.xlane.f32.xlu0 %v30_v6 }
 0x11d   :  { %v32_v10 = vpop.xlane.xlu0 %31 }
 0x11e   :  { %v33_v11 = vmul.f32 0.03125, %v32_v10 }
 0x120   :  { %v34_v12 = vadd.f32 1e-05, %v33_v11 }
 0x122   :  { %149 = vrsqrt.f32 %v34_v12 }
 0x12f   :  { %v150_v13 = vpop.eup %149 }
 0x130   :  { %v36_v15 = vmul.f32 %v150_v13, %v28_v4 }
 0x132   :  { %v44_v17 = vmul.f32 %v128_v14, %v36_v15 }
 0x134   :  { %v52_v18 = vadd.f32 %v129_v16, %v44_v17 }
 0x136   :  { %v53_v19 = vpack.c.bf16 %v52_v18, %v52_v18 }
 0x138   :  { %142 = vmatmul.mubr.msk.bf16.vlgmr.msra.gmra.mxu0 %vm77_vm2, %v53_v19 }
 0x1f8   :  { %v115_v21 = vpop.f32.mrf.mxu0 }
 0x1f9   :  { %v116_v22 = vadd.f32 %v130_v20, %v115_v21 }
 0x1fa   :  { %v143_v23 = vpop.f32.mrf.mxu0 }
 0x1fb   :  { %v121_v24 = vpack.c.bf16 %v116_v22, %v116_v22 }
 0x1fc   :  { %v118_v25 = vpop.f32.mrf.mxu0 }
 0x1fd   :  { %123 = vst.msk [vmem:[%s209_s5] sm:$0x3] %vm122_vm3, %v121_v24 }
 0x1fe   :  { %v144_v26 = vpop.f32.mrf.mxu0 }

// kernel: cross_frame_attention_block.13
= control target key start
LH: loop header
LB: loop body
LE: loop exit
PB: predicated region body
PF: predicated region fallthrough
CT: control target
= control target key end

     0   :  { %v113_v0 = vmov 0.0   ;;  %vm114_vm0 = vmmov 0   ;;  %vm42_vm1 = vcmask 261120   ;;  %vm88_vm2 = vcmask 257024   ;;  %s158_s1 = inlined_call_operand.vmem [shape: bf16[32,32], index: 1, kind: input, shape index: {}]   ;;  %s159_s0 = inlined_call_operand.vmem [shape: bf16[4,32], index: 0, kind: input, shape index: {}]   ;;  %s160_s2 = inlined_call_operand.vmem [shape: f32[1,32], index: 2, kind: input, shape index: {}]   ;;  %s161_s3 = inlined_call_operand.vmem [shape: f32[4,32], index: 3, kind: input, shape index: {}]   ;;  %s162_s4 = inlined_call_operand.vmem [shape: f32[4,32], index: 4, kind: output, shape index: {}]  }
   0x1   :  { %101 = vmatprep.subr.bf16.mxu0 %v113_v0  ;;  %v111_v1 = vld [vmem:[%s158_s1 + $0x8] sm:$0xff]   ;;  %105 = vmatprep.mubr.msk.bf16.mxu0 %vm114_vm0, %v113_v0  ;;  %v112_v2 = vld [vmem:[%s158_s1] sm:$0xff]  }
   0x2   :  { %102 = vmatpush3.bf16.msra.mxu0 %v111_v1  ;;  %v18_v3 = vld [vmem:[%s159_s0] sm:$0x3] }
   0x3   :  { %103 = vmatprep.subr.bf16.mxu0 %v113_v0  ;;  %v94_v4 = vld [vmem:[%s160_s2] ss:$0 sm:$0xff] }
   0x4   :  { %v86_v6 = vld [vmem:[%s161_s3] sm:$0xf] }
   0x6   :  { %104 = vmatpush3.bf16.msra.mxu0 %v112_v2 }
   0x9   :  { %106 = vmatmul.mubr.msk.bf16.vlgmr.msra.gmra.mxu0 %vm42_vm1, %v18_v3 }
  0xc9   :  { %v80_v5 = vpop.f32.mrf.mxu0 }
  0xca   :  { %v81_v7 = vadd.f32 %v94_v4, %v80_v5 }
  0xcb   :  { %v107_v8 = vpop.f32.mrf.mxu0 }
  0xcc   :  { %v87_v9 = vadd.f32 %v86_v6, %v81_v7 }
  0xcd   :  { %v83_v10 = vpop.f32.mrf.mxu0 }
  0xce   :  { %89 = vst.msk [vmem:[%s162_s4] sm:$0xf] %vm88_vm2, %v87_v9 }
  0xcf   :  { %v108_v11 = vpop.f32.mrf.mxu0 }

// kernel: cross_frame_attention_block.12
= control target key start
LH: loop header
LB: loop body
LE: loop exit
PB: predicated region body
PF: predicated region fallthrough
CT: control target
= control target key end

     0   :  { %v18_v0 = vlaneseq  ;;  %v1279_v1 = vmov 1966171168   ;;  %v1280_v3 = vmov 0.0   ;;  %vm1281_vm0 = vmmov 0   ;;  %s1283_s10 = smov 64   ;;  %s1284_s11 = smov 88   ;;  %s1510_s0 = inlined_call_operand.vmem [shape: bf16[2,2,96], index: 0, kind: input, shape index: {}]   ;;  %s1511_s1 = inlined_call_operand.vmem [shape: bf16[2,2,32], index: 1, kind: output, shape index: {}]  }
   0x1   :  { %v16_v2 = vunpack.c.l.s4 %v1279_v1  ;;  %1134 = vmatprep.subr.bf16.mxu0 %v1280_v3  ;;  %1140 = vmatprep.subr.bf16.mxu1 %v1280_v3  ;;  %v1311_v6 = vld [vmem:[%s1510_s0] sm:$0x1]  ;;  %v1316_v7 = vld [vmem:[%s1510_s0 + $0x1] sm:$0x1]  ;;  %s1282_s0 = smov 96   ;;  %vm31_vm1 = vcmask 64512  }
   0x2   :  { %v19_v4 = vshrl.u32 %v18_v0, 7  ;;  %1136 = vmatprep.mubr.msk.bf16.mxu0 %vm1281_vm0, %v1280_v3  ;;  %1142 = vmatprep.mubr.msk.bf16.mxu1 %vm1281_vm0, %v1280_v3  ;;  %v12_v17 = vmul.bf16 1052065461, %v1311_v6  ;;  %v13_v18 = vmul.bf16 1052065461, %v1316_v7  ;;  %vm141_vm2 = vcmask 9216  }
   0x3   :  { %v17_v5 = vunpack.c.0.s8 %v16_v2  ;;  %vm172_vm3 = vcmask 1040384   ;;  %s1285_s12 = smov 120   ;;  %vm168_vm4 = vcmask 15360   ;;  %vm266_vm5 = vcmask 57344   ;;  %s1286_s17 = smov 56  }
   0x4   :  { %s1287_s18 = smov 80   ;;  %s1288_s19 = smov 112   ;;  %vm557_vm6 = vcmask 122944   ;;  %vm818_vm7 = vcmask 188544   ;;  %vm1079_vm8 = vcmask 254144  }
   0x5   :  { %v1322_v8 = vsub.s32 %v17_v5, %v19_v4  ;;  %s1289_s20 = smov 48   ;;  %s1290_s21 = smov 72  }
   0x6   :  { %s1291_s22 = smov 104   ;;  %s1292_s23 = smov 40  }
   0x7   :  { %v21_v9 = vrot.slane %v1311_v6, %v1322_v8  ;;  %v85_v10 = vrot.slane %v1316_v7, %v1322_v8  ;;  %v276_v43 = vrot.slane %v12_v17, %v1322_v8  ;;  %v341_v44 = vrot.slane %v13_v18, %v1322_v8  ;;  %s1293_s24 = smov 8   ;;  %s1294_s25 = smov 16  }
   0x8   :  { %s1295_s5 = smov 24  }
   0x9   :  { %v1329_v11 = vrot.slane %v21_v9, %v1322_v8  ;;  %v1333_v12 = vrot.slane %v85_v10, %v1322_v8  ;;  %v1362_v45 = vrot.slane %v276_v43, %v1322_v8  ;;  %v1366_v46 = vrot.slane %v341_v44, %v1322_v8 }
   0xb   :  { %29 = vrot.lane.b32.xlu0 %v1329_v11, %s1282_s0 }
   0xf   :  { %93 = vrot.lane.b32.xlu0 %v1333_v12, %s1282_s0 }
  0x7d   :  { %v30_v13 = vpop.permute.xlu0 %29 }
  0x7e   :  { %v36_v14 = vsel %vm31_vm1, %v30_v13, 0 }
  0x7f   :  { %1135 = vmatpush3.bf16.xpose.msra.mxu0 %v36_v14 }
  0x80   :  { %1146 = vmatprep.subr.bf16.mxu0 %v1280_v3 }
  0x81   :  { %v94_v15 = vpop.permute.xlu0 %93 }
  0x82   :  { %v99_v16 = vsel %vm31_vm1, %v94_v15, 0 }
  0x83   :  { %1141 = vmatpush3.bf16.xpose.msra.mxu1 %v99_v16 }
  0x84   :  { %1152 = vmatprep.subr.bf16.mxu1 %v1280_v3 }
  0x86   :  { %1137 = vmatmul.mubr.msk.bf16.vlgmr.msra.gmra.mxu0 %vm31_vm1, %v12_v17 }
  0x87   :  { %1148 = vmatprep.mubr.msk.bf16.mxu0 %vm1281_vm0, %v1280_v3 }
  0x8a   :  { %1143 = vmatmul.mubr.msk.bf16.vlgmr.msra.gmra.mxu1 %vm31_vm1, %v13_v18 }
  0x8b   :  { %1154 = vmatprep.mubr.msk.bf16.mxu1 %vm1281_vm0, %v1280_v3 }
 0x146   :  { %v72_v19 = vpop.f32.mrf.mxu0 }
 0x147   :  { %v142_v20 = vsel %vm141_vm2, %v72_v19, -inf }
 0x148   :  { %143 = vmax.xlane.f32.xlu1 %v142_v20  ;;  %v1138_v21 = vpop.f32.mrf.mxu0 }
 0x14a   :  { %v75_v22 = vpop.f32.mrf.mxu0  ;;  %v135_v23 = vpop.f32.mrf.mxu1 }
 0x14b   :  { %v145_v24 = vsel %vm141_vm2, %v135_v23, -inf }
 0x14c   :  { %v1144_v25 = vpop.f32.mrf.mxu1  ;;  %146 = vmax.xlane.f32.xlu1 %v145_v24  ;;  %v1139_v26 = vpop.f32.mrf.mxu0 }
 0x14e   :  { %v138_v27 = vpop.f32.mrf.mxu1 }
 0x150   :  { %v1145_v28 = vpop.f32.mrf.mxu1 }
 0x15d   :  { %166 = vrot.lane.b32.xlu1 %v1329_v11, %s1283_s10 }
 0x161   :  { %216 = vrot.lane.b32.xlu1 %v1333_v12, %s1283_s10 }
 0x165   :  { %286 = vrot.lane.b32.xlu1 %v1329_v11, %s1284_s11 }
 0x1d1   :  { %v144_v29 = vpop.xlane.xlu1 %143 }
 0x1d2   :  { %v148_v30 = vsub.f32 %v72_v19, %v144_v29 }
 0x1d4   :  { %v150_v31 = vmul.f32 1.442695, %v148_v30 }
 0x1d5   :  { %v147_v32 = vpop.xlane.xlu1 %146 }
 0x1d6   :  { %1247 = vpow2.f32 %v150_v31  ;;  %v149_v33 = vsub.f32 %v135_v23, %v147_v32 }
 0x1d8   :  { %v152_v34 = vmul.f32 1.442695, %v149_v33 }
 0x1d9   :  { %v167_v35 = vpop.permute.xlu1 %166 }
 0x1da   :  { %1249 = vpow2.f32 %v152_v34  ;;  %v174_v36 = vsel %vm172_vm3, %v167_v35, 0 }
 0x1db   :  { %1147 = vmatpush3.bf16.msra.mxu0 %v174_v36 }
 0x1dc   :  { %1158 = vmatprep.subr.bf16.mxu0 %v1280_v3 }
 0x1dd   :  { %v217_v37 = vpop.permute.xlu1 %216 }
 0x1de   :  { %v222_v38 = vsel %vm172_vm3, %v217_v37, 0 }
 0x1df   :  { %1153 = vmatpush3.bf16.msra.mxu1 %v222_v38 }
 0x1e0   :  { %1164 = vmatprep.subr.bf16.mxu1 %v1280_v3 }
 0x1e1   :  { %v287_v47 = vpop.permute.xlu1 %286 }
 0x1e2   :  { %v292_v55 = vsel %vm31_vm1, %v287_v47, 0 }
 0x1e3   :  { %v1248_v39 = vpop.eup %1247 }
 0x1e4   :  { %v154_v40 = vsel %vm141_vm2, %v1248_v39, 0.0 }
 0x1e5   :  { %155 = vadd.xlane.f32.xlu0 %v154_v40 }
 0x1e7   :  { %v1250_v41 = vpop.eup %1249 }
 0x1e8   :  { %v157_v42 = vsel %vm141_vm2, %v1250_v41, 0.0 }
 0x1e9   :  { %158 = vadd.xlane.f32.xlu1 %v157_v42 }
 0x1fa   :  { %351 = vrot.lane.b32.xlu1 %v1333_v12, %s1284_s11 }
 0x1fb   :  { %284 = vrot.lane.b32.xlu0 %v1362_v45, %s1285_s12 }
 0x1fe   :  { %349 = vrot.lane.b32.xlu1 %v1366_v46, %s1285_s12 }
 0x26e   :  { %v156_v48 = vpop.xlane.xlu0 %155 }
 0x26f   :  { %1251 = vrcp.f32 %v156_v48 }
 0x272   :  { %v159_v49 = vpop.xlane.xlu1 %158  ;;  %v285_v59 = vpop.permute.xlu0 %284 }
 0x273   :  { %1253 = vrcp.f32 %v159_v49 }
 0x276   :  { %v352_v54 = vpop.permute.xlu1 %351 }
 0x277   :  { %v357_v57 = vsel %vm31_vm1, %v352_v54, 0 }
 0x27a   :  { %v350_v60 = vpop.permute.xlu1 %349 }
 0x27c   :  { %v1252_v50 = vpop.eup %1251 }
 0x27d   :  { %v162_v51 = vmul.f32 %v1252_v50, %v1248_v39 }
 0x27f   :  { %v164_v52 = vpack.c.bf16 %v162_v51, %v162_v51 }
 0x280   :  { %v1254_v53 = vpop.eup %1253 }
 0x281   :  { %1149 = vmatmul.mubr.msk.bf16.vlgmr.msra.gmra.mxu0 %vm168_vm4, %v164_v52  ;;  %v163_v56 = vmul.f32 %v1254_v53, %v1250_v41 }
 0x282   :  { %1159 = vmatpush3.bf16.xpose.msra.mxu0 %v292_v55  ;;  %1160 = vmatprep.mubr.msk.bf16.mxu0 %vm1281_vm0, %v1280_v3 }
 0x283   :  { %v165_v58 = vpack.c.bf16 %v163_v56, %v163_v56  ;;  %1170 = vmatprep.subr.bf16.mxu0 %v1280_v3 }
 0x285   :  { %1155 = vmatmul.mubr.msk.bf16.vlgmr.msra.gmra.mxu1 %vm168_vm4, %v165_v58 }
 0x286   :  { %1165 = vmatpush3.bf16.xpose.msra.mxu1 %v357_v57  ;;  %1166 = vmatprep.mubr.msk.bf16.mxu1 %vm1281_vm0, %v1280_v3 }
 0x287   :  { %1176 = vmatprep.subr.bf16.mxu1 %v1280_v3 }
 0x289   :  { %1161 = vmatmul.mubr.msk.bf16.vlgmr.msra.gmra.mxu0 %vm31_vm1, %v285_v59 }
 0x28a   :  { %1172 = vmatprep.mubr.msk.bf16.mxu0 %vm1281_vm0, %v1280_v3 }
 0x28d   :  { %1167 = vmatmul.mubr.msk.bf16.vlgmr.msra.gmra.mxu1 %vm31_vm1, %v350_v60 }
 0x28e   :  { %1178 = vmatprep.mubr.msk.bf16.mxu1 %vm1281_vm0, %v1280_v3 }
 0x341   :  { %v210_v61 = vpop.f32.mrf.mxu0 }
 0x342   :  { %v264_v62 = vpack.c.bf16 %v210_v61, %v210_v61 }
 0x343   :  { %v1150_v63 = vpop.f32.mrf.mxu0 }
 0x344   :  { %267 = vst.msk [vmem:[%s1511_s1] sm:$0x1] %vm266_vm5, %v264_v62 }
 0x345   :  { %v213_v0 = vpop.f32.mrf.mxu0  ;;  %v258_v1 = vpop.f32.mrf.mxu1 }
 0x346   :  { %v265_v2 = vpack.c.bf16 %v258_v1, %v258_v1 }
 0x347   :  { %v1151_v4 = vpop.f32.mrf.mxu0  ;;  %v1156_v5 = vpop.f32.mrf.mxu1 }
 0x348   :  { %268 = vst.msk [vmem:[%s1511_s1 + $0x1] sm:$0x1] %vm266_vm5, %v265_v2 }
 0x349   :  { %v261_v6 = vpop.f32.mrf.mxu1  ;;  %v328_v7 = vpop.f32.mrf.mxu0 }
 0x34a   :  { %v399_v9 = vsel %vm141_vm2, %v328_v7, -inf }
 0x34b   :  { %v1157_v10 = vpop.f32.mrf.mxu1  ;;  %400 = vmax.xlane.f32.xlu1 %v399_v9  ;;  %v1162_v13 = vpop.f32.mrf.mxu0 }
 0x34d   :  { %v331_v14 = vpop.f32.mrf.mxu0  ;;  %v393_v15 = vpop.f32.mrf.mxu1 }
 0x34e   :  { %v402_v16 = vsel %vm141_vm2, %v393_v15, -inf }
 0x34f   :  { %403 = vmax.xlane.f32.xlu0 %v402_v16  ;;  %v1163_v17 = vpop.f32.mrf.mxu0  ;;  %v1168_v18 = vpop.f32.mrf.mxu1 }
 0x351   :  { %v396_v19 = vpop.f32.mrf.mxu1 }
 0x353   :  { %v1169_v20 = vpop.f32.mrf.mxu1 }
 0x35c   :  { %423 = vrot.lane.b32.xlu1 %v1329_v11, %s1286_s17 }
 0x360   :  { %562 = vrot.lane.b32.xlu1 %v1329_v11, %s1287_s18 }
 0x365   :  { %471 = vrot.lane.b32.xlu0 %v1333_v12, %s1286_s17 }
 0x369   :  { %560 = vrot.lane.b32.xlu0 %v1362_v45, %s1288_s19 }
 0x3d4   :  { %v401_v21 = vpop.xlane.xlu1 %400 }
 0x3d5   :  { %v405_v22 = vsub.f32 %v328_v7, %v401_v21 }
 0x3d7   :  { %v407_v23 = vmul.f32 1.442695, %v405_v22 }
 0x3d8   :  { %v404_v24 = vpop.xlane.xlu0 %403  ;;  %v424_v25 = vpop.permute.xlu1 %423 }
 0x3d9   :  { %1255 = vpow2.f32 %v407_v23  ;;  %v406_v26 = vsub.f32 %v393_v15, %v404_v24  ;;  %v429_v27 = vsel %vm172_vm3, %v424_v25, 0 }
 0x3da   :  { %1171 = vmatpush3.bf16.msra.mxu0 %v429_v27 }
 0x3db   :  { %v409_v28 = vmul.f32 1.442695, %v406_v26  ;;  %1182 = vmatprep.subr.bf16.mxu0 %v1280_v3 }
 0x3dc   :  { %v472_v33 = vpop.permute.xlu0 %471  ;;  %v563_v35 = vpop.permute.xlu1 %562 }
 0x3dd   :  { %1257 = vpow2.f32 %v409_v28  ;;  %v477_v34 = vsel %vm172_vm3, %v472_v33, 0  ;;  %v568_v43 = vsel %vm31_vm1, %v563_v35, 0 }
 0x3de   :  { %1177 = vmatpush3.bf16.msra.mxu1 %v477_v34 }
 0x3df   :  { %1188 = vmatprep.subr.bf16.mxu1 %v1280_v3 }
 0x3e0   :  { %v561_v49 = vpop.permute.xlu0 %560 }
 0x3e6   :  { %v1256_v29 = vpop.eup %1255 }
 0x3e7   :  { %v411_v30 = vsel %vm141_vm2, %v1256_v29, 0.0 }
 0x3e8   :  { %412 = vadd.xlane.f32.xlu1 %v411_v30 }
 0x3ea   :  { %v1258_v31 = vpop.eup %1257 }
 0x3eb   :  { %v414_v32 = vsel %vm141_vm2, %v1258_v31, 0.0 }
 0x3ec   :  { %415 = vadd.xlane.f32.xlu1 %v414_v32 }
 0x3fd   :  { %612 = vrot.lane.b32.xlu1 %v1333_v12, %s1287_s18 }
 0x401   :  { %610 = vrot.lane.b32.xlu1 %v1366_v46, %s1288_s19 }
 0x471   :  { %v413_v36 = vpop.xlane.xlu1 %412 }
 0x472   :  { %1259 = vrcp.f32 %v413_v36 }
 0x475   :  { %v416_v37 = vpop.xlane.xlu1 %415 }
 0x476   :  { %1261 = vrcp.f32 %v416_v37 }
 0x479   :  { %v613_v42 = vpop.permute.xlu1 %612 }
 0x47a   :  { %v618_v47 = vsel %vm31_vm1, %v613_v42, 0 }
 0x47d   :  { %v611_v50 = vpop.permute.xlu1 %610 }
 0x47f   :  { %v1260_v38 = vpop.eup %1259 }
 0x480   :  { %v419_v39 = vmul.f32 %v1260_v38, %v1256_v29 }
 0x482   :  { %v421_v40 = vpack.c.bf16 %v419_v39, %v419_v39 }
 0x483   :  { %v1262_v41 = vpop.eup %1261 }
 0x484   :  { %1173 = vmatmul.mubr.msk.bf16.vlgmr.msra.gmra.mxu0 %vm168_vm4, %v421_v40  ;;  %v420_v44 = vmul.f32 %v1262_v41, %v1258_v31 }
 0x485   :  { %1183 = vmatpush3.bf16.xpose.msra.mxu0 %v568_v43  ;;  %1184 = vmatprep.mubr.msk.bf16.mxu0 %vm1281_vm0, %v1280_v3 }
 0x486   :  { %v422_v48 = vpack.c.bf16 %v420_v44, %v420_v44  ;;  %1194 = vmatprep.subr.bf16.mxu0 %v1280_v3 }
 0x488   :  { %1179 = vmatmul.mubr.msk.bf16.vlgmr.msra.gmra.mxu1 %vm168_vm4, %v422_v48 }
 0x489   :  { %1189 = vmatpush3.bf16.xpose.msra.mxu1 %v618_v47  ;;  %1190 = vmatprep.mubr.msk.bf16.mxu1 %vm1281_vm0, %v1280_v3 }
 0x48a   :  { %1200 = vmatprep.subr.bf16.mxu1 %v1280_v3 }
 0x48c   :  { %1185 = vmatmul.mubr.msk.bf16.vlgmr.msra.gmra.mxu0 %vm31_vm1, %v561_v49 }
 0x48d   :  { %1196 = vmatprep.mubr.msk.bf16.mxu0 %vm1281_vm0, %v1280_v3 }
 0x490   :  { %1191 = vmatmul.mubr.msk.bf16.vlgmr.msra.gmra.mxu1 %vm31_vm1, %v611_v50 }
 0x491   :  { %1202 = vmatprep.mubr.msk.bf16.mxu1 %vm1281_vm0, %v1280_v3 }
 0x544   :  { %v1422_v51 = vpop.f32.mrf.mxu0 }
 0x546   :  { %v1174_v52 = vpop.f32.mrf.mxu0 }
 0x548   :  { %v468_v53 = vpop.f32.mrf.mxu0  ;;  %v1424_v54 = vpop.f32.mrf.mxu1 }
 0x54a   :  { %v1175_v55 = vpop.f32.mrf.mxu0  ;;  %v1180_v56 = vpop.f32.mrf.mxu1 }
 0x54b   :  { %v519_v56 = vpack.c.bf16 %v1422_v51, %v1422_v51 }
 0x54c   :  { %v516_v57 = vpop.f32.mrf.mxu1  ;;  %v604_v58 = vpop.f32.mrf.mxu0 }
 0x54d   :  { %v660_v59 = vsel %vm141_vm2, %v604_v58, -inf  ;;  %v529_v57 = vrot.slane %v519_v56, %v1322_v8 }
 0x54e   :  { %v1181_v60 = vpop.f32.mrf.mxu1  ;;  %661 = vmax.xlane.f32.xlu0 %v660_v59  ;;  %v1186_v61 = vpop.f32.mrf.mxu0 }
 0x54f   :  { %v536_v61 = vrot.slane %v529_v57, %v1322_v8 }
 0x550   :  { %v607_v62 = vpop.f32.mrf.mxu0  ;;  %v654_v63 = vpop.f32.mrf.mxu1 }
 0x551   :  { %v663_v0 = vsel %vm141_vm2, %v654_v63, -inf }
 0x552   :  { %664 = vmax.xlane.f32.xlu1 %v663_v0  ;;  %v1187_v1 = vpop.f32.mrf.mxu0  ;;  %v1192_v2 = vpop.f32.mrf.mxu1 }
 0x554   :  { %v657_v4 = vpop.f32.mrf.mxu1 }
 0x556   :  { %v1193_v5 = vpop.f32.mrf.mxu1 }
 0x563   :  { %684 = vrot.lane.b32.xlu1 %v1329_v11, %s1289_s20 }
 0x567   :  { %823 = vrot.lane.b32.xlu1 %v1329_v11, %s1290_s21 }
 0x56b   :  { %873 = vrot.lane.b32.xlu1 %v1333_v12, %s1290_s21 }
 0x56f   :  { %871 = vrot.lane.b32.xlu1 %v1366_v46, %s1291_s22 }
 0x5d7   :  { %v662_v6 = vpop.xlane.xlu0 %661 }
 0x5d8   :  { %v666_v7 = vsub.f32 %v604_v58, %v662_v6  ;;  %v520_v58 = vpack.c.bf16 %v1424_v54, %v1424_v54 }
 0x5da   :  { %v668_v9 = vmul.f32 1.442695, %v666_v7  ;;  %v543_v59 = vrot.slane %v520_v58, %v1322_v8 }
 0x5db   :  { %v665_v10 = vpop.xlane.xlu1 %664 }
 0x5dc   :  { %1263 = vpow2.f32 %v668_v9  ;;  %v667_v13 = vsub.f32 %v654_v63, %v665_v10  ;;  %v550_v51 = vrot.slane %v543_v59, %v1322_v8 }
 0x5de   :  { %v670_v14 = vmul.f32 1.442695, %v667_v13 }
 0x5df   :  { %v685_v19 = vpop.permute.xlu1 %684 }
 0x5e0   :  { %1265 = vpow2.f32 %v670_v14  ;;  %v690_v20 = vsel %vm172_vm3, %v685_v19, 0 }
 0x5e1   :  { %1195 = vmatpush3.bf16.msra.mxu0 %v690_v20 }
 0x5e2   :  { %1206 = vmatprep.subr.bf16.mxu0 %v1280_v3 }
 0x5e3   :  { %v824_v24 = vpop.permute.xlu1 %823 }
 0x5e4   :  { %v829_v27 = vsel %vm31_vm1, %v824_v24, 0 }
 0x5e7   :  { %v874_v30 = vpop.permute.xlu1 %873 }
 0x5e8   :  { %v879_v31 = vsel %vm31_vm1, %v874_v30, 0 }
 0x5e9   :  { %v1264_v15 = vpop.eup %1263 }
 0x5ea   :  { %v672_v16 = vsel %vm141_vm2, %v1264_v15, 0.0 }
 0x5eb   :  { %673 = vadd.xlane.f32.xlu0 %v672_v16  ;;  %v872_v34 = vpop.permute.xlu1 %871 }
 0x5ed   :  { %v1266_v17 = vpop.eup %1265 }
 0x5ee   :  { %v675_v18 = vsel %vm141_vm2, %v1266_v17, 0.0 }
 0x5ef   :  { %676 = vadd.xlane.f32.xlu0 %v675_v18 }
 0x605   :  { %732 = vrot.lane.b32.xlu0 %v1333_v12, %s1289_s20 }
 0x609   :  { %821 = vrot.lane.b32.xlu0 %v1362_v45, %s1291_s22 }
 0x674   :  { %v674_v46 = vpop.xlane.xlu0 %673 }
 0x675   :  { %1267 = vrcp.f32 %v674_v46 }
 0x678   :  { %v677_v21 = vpop.xlane.xlu0 %676 }
 0x679   :  { %1269 = vrcp.f32 %v677_v21 }
 0x67c   :  { %v733_v22 = vpop.permute.xlu0 %732 }
 0x67d   :  { %v738_v23 = vsel %vm172_vm3, %v733_v22, 0 }
 0x67e   :  { %1201 = vmatpush3.bf16.msra.mxu1 %v738_v23 }
 0x67f   :  { %1212 = vmatprep.subr.bf16.mxu1 %v1280_v3 }
 0x680   :  { %v822_v33 = vpop.permute.xlu0 %821 }
 0x682   :  { %v1268_v25 = vpop.eup %1267 }
 0x683   :  { %v680_v26 = vmul.f32 %v1268_v25, %v1264_v15 }
 0x685   :  { %v682_v28 = vpack.c.bf16 %v680_v26, %v680_v26 }
 0x686   :  { %v1270_v29 = vpop.eup %1269 }
 0x687   :  { %1197 = vmatmul.mubr.msk.bf16.vlgmr.msra.gmra.mxu0 %vm168_vm4, %v682_v28  ;;  %v681_v45 = vmul.f32 %v1270_v29, %v1266_v17 }
 0x688   :  { %1207 = vmatpush3.bf16.xpose.msra.mxu0 %v829_v27  ;;  %1208 = vmatprep.mubr.msk.bf16.mxu0 %vm1281_vm0, %v1280_v3 }
 0x689   :  { %v683_v32 = vpack.c.bf16 %v681_v45, %v681_v45  ;;  %1218 = vmatprep.subr.bf16.mxu0 %v1280_v3 }
 0x68b   :  { %1203 = vmatmul.mubr.msk.bf16.vlgmr.msra.gmra.mxu1 %vm168_vm4, %v683_v32 }
 0x68c   :  { %1213 = vmatpush3.bf16.xpose.msra.mxu1 %v879_v31  ;;  %1214 = vmatprep.mubr.msk.bf16.mxu1 %vm1281_vm0, %v1280_v3 }
 0x68d   :  { %1224 = vmatprep.subr.bf16.mxu1 %v1280_v3 }
 0x68f   :  { %1209 = vmatmul.mubr.msk.bf16.vlgmr.msra.gmra.mxu0 %vm31_vm1, %v822_v33 }
 0x690   :  { %1220 = vmatprep.mubr.msk.bf16.mxu0 %vm1281_vm0, %v1280_v3 }
 0x693   :  { %1215 = vmatmul.mubr.msk.bf16.vlgmr.msra.gmra.mxu1 %vm31_vm1, %v872_v34 }
 0x694   :  { %1226 = vmatprep.mubr.msk.bf16.mxu1 %vm1281_vm0, %v1280_v3 }
 0x747   :  { %v1456_v35 = vpop.f32.mrf.mxu0 }
 0x748   :  { %v780_v17 = vpack.c.bf16 %v1456_v35, %v1456_v35 }
 0x749   :  { %v1198_v36 = vpop.f32.mrf.mxu0 }
 0x74a   :  { %v790_v18 = vrot.slane %v780_v17, %v1322_v8 }
 0x74b   :  { %v729_v37 = vpop.f32.mrf.mxu0  ;;  %v774_v38 = vpop.f32.mrf.mxu1 }
 0x74c   :  { %v781_v60 = vpack.c.bf16 %v774_v38, %v774_v38  ;;  %v797_v19 = vrot.slane %v790_v18, %v1322_v8 }
 0x74d   :  { %v1199_v39 = vpop.f32.mrf.mxu0  ;;  %v1204_v40 = vpop.f32.mrf.mxu1 }
 0x74e   :  { %v804_v62 = vrot.slane %v781_v60, %v1322_v8 }
 0x74f   :  { %v777_v41 = vpop.f32.mrf.mxu1  ;;  %v865_v42 = vpop.f32.mrf.mxu0 }
 0x750   :  { %v921_v43 = vsel %vm141_vm2, %v865_v42, -inf  ;;  %v811_v63 = vrot.slane %v804_v62, %v1322_v8 }
 0x751   :  { %v1205_v44 = vpop.f32.mrf.mxu1  ;;  %922 = vmax.xlane.f32.xlu0 %v921_v43  ;;  %v1210_v47 = vpop.f32.mrf.mxu0 }
 0x753   :  { %v868_v48 = vpop.f32.mrf.mxu0  ;;  %v915_v49 = vpop.f32.mrf.mxu1 }
 0x754   :  { %v924_v50 = vsel %vm141_vm2, %v915_v49, -inf }
 0x755   :  { %925 = vmax.xlane.f32.xlu1 %v924_v50  ;;  %v1211_v3 = vpop.f32.mrf.mxu0  ;;  %v1216_v52 = vpop.f32.mrf.mxu1 }
 0x757   :  { %v918_v53 = vpop.f32.mrf.mxu1 }
 0x759   :  { %v1217_v55 = vpop.f32.mrf.mxu1 }
 0x766   :  { %945 = vrot.lane.b32.xlu1 %v1329_v11, %s1292_s23 }
 0x76a   :  { %551 = vrot.lane.b32.xlu1 %v536_v61, %s1293_s24 }
 0x76e   :  { %553 = vrot.lane.b32.xlu1 %v550_v51, %s1293_s24 }
 0x772   :  { %814 = vrot.lane.b32.xlu1 %v811_v63, %s1294_s25 }
 0x7da   :  { %v923_v54 = vpop.xlane.xlu0 %922 }
 0x7db   :  { %v927_v0 = vsub.f32 %v865_v42, %v923_v54 }
 0x7dd   :  { %v929_v11 = vmul.f32 1.442695, %v927_v0 }
 0x7de   :  { %v926_v1 = vpop.xlane.xlu1 %925 }
 0x7df   :  { %1271 = vpow2.f32 %v929_v11  ;;  %v928_v2 = vsub.f32 %v915_v49, %v926_v1 }
 0x7e1   :  { %v931_v4 = vmul.f32 1.442695, %v928_v2 }
 0x7e2   :  { %v946_v5 = vpop.permute.xlu1 %945 }
 0x7e3   :  { %1273 = vpow2.f32 %v931_v4  ;;  %v951_v6 = vsel %vm172_vm3, %v946_v5, 0 }
 0x7e4   :  { %1219 = vmatpush3.bf16.msra.mxu0 %v951_v6 }
 0x7e6   :  { %v552_v7 = vpop.permute.xlu1 %551 }
 0x7e7   :  { %558 = vst.msk [vmem:[%s1511_s1] sm:$0x1] %vm557_vm6, %v552_v7 }
 0x7ea   :  { %v554_v9 = vpop.permute.xlu1 %553 }
 0x7eb   :  { %559 = vst.msk [vmem:[%s1511_s1 + $0x1] sm:$0x1] %vm557_vm6, %v554_v9 }
 0x7ec   :  { %v1272_v10 = vpop.eup %1271 }
 0x7ed   :  { %v933_v13 = vsel %vm141_vm2, %v1272_v10, 0.0 }
 0x7ee   :  { %v815_v14 = vpop.permute.xlu1 %814  ;;  %934 = vadd.xlane.f32.xlu0 %v933_v13 }
 0x7ef   :  { %820 = vst.msk [vmem:[%s1511_s1 + $0x1] sm:$0x1] %vm818_vm7, %v815_v14 }
 0x7f0   :  { %v1274_v15 = vpop.eup %1273 }
 0x7f1   :  { %v936_v16 = vsel %vm141_vm2, %v1274_v15, 0.0 }
 0x7f2   :  { %937 = vadd.xlane.f32.xlu0 %v936_v16 }
 0x808   :  { %993 = vrot.lane.b32.xlu0 %v1333_v12, %s1292_s23 }
 0x80c   :  { %812 = vrot.lane.b32.xlu0 %v797_v19, %s1294_s25 }
 0x877   :  { %v935_v20 = vpop.xlane.xlu0 %934 }
 0x878   :  { %1275 = vrcp.f32 %v935_v20 }
 0x87b   :  { %v938_v46 = vpop.xlane.xlu0 %937 }
 0x87c   :  { %1277 = vrcp.f32 %v938_v46 }
 0x87f   :  { %v994_v21 = vpop.permute.xlu0 %993 }
 0x880   :  { %v999_v22 = vsel %vm172_vm3, %v994_v21, 0 }
 0x881   :  { %1225 = vmatpush3.bf16.msra.mxu1 %v999_v22 }
 0x883   :  { %v813_v23 = vpop.permute.xlu0 %812 }
 0x884   :  { %819 = vst.msk [vmem:[%s1511_s1] sm:$0x1] %vm818_vm7, %v813_v23 }
 0x885   :  { %v1276_v24 = vpop.eup %1275 }
 0x886   :  { %v941_v12 = vmul.f32 %v1276_v24, %v1272_v10 }
 0x888   :  { %v943_v25 = vpack.c.bf16 %v941_v12, %v941_v12 }
 0x889   :  { %v1278_v26 = vpop.eup %1277 }
 0x88a   :  { %1221 = vmatmul.mubr.msk.bf16.vlgmr.msra.gmra.mxu0 %vm168_vm4, %v943_v25  ;;  %v942_v27 = vmul.f32 %v1278_v26, %v1274_v15 }
 0x88c   :  { %v944_v28 = vpack.c.bf16 %v942_v27, %v942_v27 }
 0x88e   :  { %1227 = vmatmul.mubr.msk.bf16.vlgmr.msra.gmra.mxu1 %vm168_vm4, %v944_v28 }
 0x94a   :  { %v987_v29 = vpop.f32.mrf.mxu0 }
 0x94b   :  { %v1041_v30 = vpack.c.bf16 %v987_v29, %v987_v29 }
 0x94c   :  { %v1222_v45 = vpop.f32.mrf.mxu0 }
 0x94d   :  { %v1051_v31 = vrot.slane %v1041_v30, %v1322_v8 }
 0x94e   :  { %v990_v32 = vpop.f32.mrf.mxu0  ;;  %v1035_v33 = vpop.f32.mrf.mxu1 }
 0x94f   :  { %v1042_v34 = vpack.c.bf16 %v1035_v33, %v1035_v33  ;;  %v1058_v35 = vrot.slane %v1051_v31, %v1322_v8 }
 0x950   :  { %v1223_v36 = vpop.f32.mrf.mxu0  ;;  %v1228_v37 = vpop.f32.mrf.mxu1 }
 0x951   :  { %v1065_v38 = vrot.slane %v1042_v34, %v1322_v8  ;;  %1073 = vrot.lane.b32.xlu0 %v1058_v35, %s1295_s5 }
 0x952   :  { %v1038_v39 = vpop.f32.mrf.mxu1 }
 0x953   :  { %v1072_v40 = vrot.slane %v1065_v38, %v1322_v8 }
 0x954   :  { %v1229_v41 = vpop.f32.mrf.mxu1 }
 0x955   :  { %1075 = vrot.lane.b32.xlu1 %v1072_v40, %s1295_s5 }
 0x9c3   :  { %v1074_v42 = vpop.permute.xlu0 %1073 }
 0x9c4   :  { %1080 = vst.msk [vmem:[%s1511_s1] sm:$0x1] %vm1079_vm8, %v1074_v42 }
 0x9c7   :  { %v1076_v43 = vpop.permute.xlu1 %1075 }
 0x9c8   :  { %1081 = vst.msk [vmem:[%s1511_s1 + $0x1] sm:$0x1] %vm1079_vm8, %v1076_v43 }

// kernel: cross_frame_attention_block.14
= control target key start
LH: loop header
LB: loop body
LE: loop exit
PB: predicated region body
PF: predicated region fallthrough
CT: control target
= control target key end

     0   :  { %vm25_vm0 = vcmask 261120   ;;  %vm197_vm1 = vcmask 781312   ;;  %s322_s0 = inlined_call_operand.vmem [shape: f32[32,32], index: 0, kind: input, shape index: {}]   ;;  %s323_s3 = inlined_call_operand.vmem [shape: bf16[32,96], index: 3, kind: input, shape index: {}]   ;;  %s324_s1 = inlined_call_operand.vmem [shape: f32[1,32], index: 1, kind: input, shape index: {}]   ;;  %s325_s2 = inlined_call_operand.vmem [shape: f32[1,32], index: 2, kind: input, shape index: {}]   ;;  %s326_s4 = inlined_call_operand.vmem [shape: f32[1,96], index: 4, kind: input, shape index: {}]   ;;  %s327_s5 = inlined_call_operand.vmem [shape: bf16[32,96], index: 5, kind: output, shape index: {}]  }
   0x1   :  { %v21_v0 = vld [vmem:[%s322_s0] sm:$0xff]  ;;  %v23_v1 = vld [vmem:[%s322_s0 + $0x10] sm:$0xff]  ;;  %v22_v2 = vld [vmem:[%s322_s0 + $0x8] sm:$0xff] }
   0x2   :  { %v26_v3 = vsel %vm25_vm0, %v21_v0, 0.0  ;;  %v32_v4 = vsel %vm25_vm0, %v23_v1, 0.0  ;;  %v24_v5 = vld [vmem:[%s322_s0 + $0x18] sm:$0xff]  ;;  %v29_v6 = vsel %vm25_vm0, %v22_v2, 0.0  ;;  %v233_v28 = vld [vmem:[%s323_s3 + $0x8] sm:$0xff]   ;;  %v234_v29 = vld [vmem:[%s323_s3] sm:$0xff]  }
   0x3   :  { %27 = vadd.xlane.f32.xlu0 %v26_v3  ;;  %33 = vadd.xlane.f32.xlu1 %v32_v4  ;;  %v35_v7 = vsel %vm25_vm0, %v24_v5, 0.0  ;;  %v206_v44 = vld [vmem:[%s324_s1] ss:$0 sm:$0xff] }
   0x4   :  { %225 = vmatprep.subr.bf16.mxu0 %v233_v28  ;;  %v207_v49 = vld [vmem:[%s325_s2] ss:$0 sm:$0xff] }
   0x5   :  { %226 = vmatpush3.bf16.msra.mxu0 %v233_v28  ;;  %v208_v62 = vld [vmem:[%s326_s4] ss:$0 sm:$0xff] }
   0x6   :  { %227 = vmatprep.subr.bf16.mxu0 %v234_v29 }
   0x7   :  { %30 = vadd.xlane.f32.xlu0 %v29_v6  ;;  %36 = vadd.xlane.f32.xlu1 %v35_v7 }
   0x9   :  { %228 = vmatpush3.bf16.msra.mxu0 %v234_v29 }
  0x8c   :  { %v28_v8 = vpop.xlane.xlu0 %27  ;;  %v34_v9 = vpop.xlane.xlu1 %33 }
  0x8d   :  { %v39_v10 = vmul.f32 0.03125, %v28_v8  ;;  %v41_v11 = vmul.f32 0.03125, %v34_v9 }
  0x8f   :  { %v43_v12 = vsub.f32 %v21_v0, %v39_v10  ;;  %v45_v13 = vsub.f32 %v23_v1, %v41_v11 }
  0x90   :  { %v31_v14 = vpop.xlane.xlu0 %30  ;;  %v37_v15 = vpop.xlane.xlu1 %36 }
  0x91   :  { %v40_v16 = vmul.f32 0.03125, %v31_v14  ;;  %v42_v17 = vmul.f32 0.03125, %v37_v15  ;;  %v47_v18 = vmul.f32 %v43_v12, %v43_v12  ;;  %v49_v19 = vmul.f32 %v45_v13, %v45_v13 }
  0x93   :  { %v44_v20 = vsub.f32 %v22_v2, %v40_v16  ;;  %v46_v21 = vsub.f32 %v24_v5, %v42_v17  ;;  %v51_v22 = vsel %vm25_vm0, %v47_v18, 0.0  ;;  %v57_v23 = vsel %vm25_vm0, %v49_v19, 0.0 }
  0x94   :  { %52 = vadd.xlane.f32.xlu0 %v51_v22 }
  0x95   :  { %v48_v24 = vmul.f32 %v44_v20, %v44_v20  ;;  %v50_v25 = vmul.f32 %v46_v21, %v46_v21 }
  0x97   :  { %v54_v26 = vsel %vm25_vm0, %v48_v24, 0.0  ;;  %v60_v27 = vsel %vm25_vm0, %v50_v25, 0.0 }
  0x98   :  { %58 = vadd.xlane.f32.xlu0 %v57_v23  ;;  %55 = vadd.xlane.f32.xlu1 %v54_v26 }
  0x9c   :  { %61 = vadd.xlane.f32.xlu1 %v60_v27 }
 0x11d   :  { %v53_v30 = vpop.xlane.xlu0 %52 }
 0x11e   :  { %v63_v31 = vmul.f32 0.03125, %v53_v30 }
 0x120   :  { %v67_v32 = vadd.f32 1e-05, %v63_v31 }
 0x121   :  { %v56_v33 = vpop.xlane.xlu1 %55  ;;  %v59_v34 = vpop.xlane.xlu0 %58 }
 0x122   :  { %235 = vrsqrt.f32 %v67_v32  ;;  %v64_v35 = vmul.f32 0.03125, %v56_v33  ;;  %v65_v36 = vmul.f32 0.03125, %v59_v34 }
 0x124   :  { %v68_v37 = vadd.f32 1e-05, %v64_v35  ;;  %v69_v38 = vadd.f32 1e-05, %v65_v36 }
 0x125   :  { %v62_v39 = vpop.xlane.xlu1 %61 }
 0x126   :  { %237 = vrsqrt.f32 %v68_v37  ;;  %v66_v40 = vmul.f32 0.03125, %v62_v39 }
 0x127   :  { %239 = vrsqrt.f32 %v69_v38 }
 0x128   :  { %v70_v41 = vadd.f32 1e-05, %v66_v40 }
 0x12a   :  { %241 = vrsqrt.f32 %v70_v41 }
 0x12f   :  { %v236_v42 = vpop.eup %235 }
 0x130   :  { %v75_v43 = vmul.f32 %v236_v42, %v43_v12 }
 0x132   :  { %v86_v48 = vmul.f32 %v206_v44, %v75_v43 }
 0x133   :  { %v238_v45 = vpop.eup %237 }
 0x134   :  { %v240_v46 = vpop.eup %239  ;;  %v76_v47 = vmul.f32 %v238_v45, %v44_v20  ;;  %v97_v53 = vadd.f32 %v207_v49, %v86_v48 }
 0x135   :  { %v77_v50 = vmul.f32 %v240_v46, %v45_v13 }
 0x136   :  { %v87_v51 = vmul.f32 %v206_v44, %v76_v47 }
 0x137   :  { %v242_v52 = vpop.eup %241  ;;  %v88_v56 = vmul.f32 %v206_v44, %v77_v50 }
 0x138   :  { %v98_v54 = vadd.f32 %v207_v49, %v87_v51  ;;  %v78_v55 = vmul.f32 %v242_v52, %v46_v21 }
 0x139   :  { %v99_v59 = vadd.f32 %v207_v49, %v88_v56 }
 0x13a   :  { %v101_v57 = vpack.c.bf16 %v98_v54, %v97_v53  ;;  %v89_v58 = vmul.f32 %v206_v44, %v78_v55 }
 0x13c   :  { %229 = vmatprep.mubr.msk.bf16.mxu0 %vm25_vm0, %v101_v57  ;;  %v100_v60 = vadd.f32 %v207_v49, %v89_v58 }
 0x13e   :  { %v102_v61 = vpack.c.bf16 %v100_v60, %v99_v59 }
 0x140   :  { %230 = vmatmul.mubr.msk.bf16.vlgmr.msra.gmra.mxu0 %vm25_vm0, %v102_v61 }
 0x200   :  { %v231_v63 = vpop.f32.mrf.mxu0 }
 0x201   :  { %v175_v0 = vadd.f32 %v231_v63, %v208_v62 }
 0x202   :  { %v166_v1 = vpop.f32.mrf.mxu0 }
 0x203   :  { %v219_v2 = vpack.c.bf16 %v175_v0, %v175_v0  ;;  %v167_v3 = vadd.f32 %v208_v62, %v166_v1 }
 0x204   :  { %v232_v4 = vpop.f32.mrf.mxu0 }
 0x205   :  { %200 = vst.msk [vmem:[%s327_s5 + $0x8] sm:$0xf] %vm197_vm1, %v219_v2  ;;  %v217_v5 = vpack.c.bf16 %v167_v3, %v167_v3  ;;  %v178_v6 = vadd.f32 %v232_v4, %v208_v62 }
 0x206   :  { %v169_v7 = vpop.f32.mrf.mxu0 }
 0x207   :  { %198 = vst.msk [vmem:[%s327_s5] sm:$0xf] %vm197_vm1, %v217_v5  ;;  %v220_v8 = vpack.c.bf16 %v178_v6, %v178_v6  ;;  %v170_v9 = vadd.f32 %v208_v62, %v169_v7 }
 0x209   :  { %201 = vst.msk [vmem:[%s327_s5 + $0xc] sm:$0xf] %vm197_vm1, %v220_v8  ;;  %v218_v10 = vpack.c.bf16 %v170_v9, %v170_v9 }
 0x20b   :  { %199 = vst.msk [vmem:[%s327_s5 + $0x4] sm:$0xf] %vm197_vm1, %v218_v10 }

// kernel: cross_frame_attention_block.17
= control target key start
LH: loop header
LB: loop body
LE: loop exit
PB: predicated region body
PF: predicated region fallthrough
CT: control target
= control target key end

     0   :  { %vm55_vm0 = vcmask 261120   ;;  %s220_s1 = inlined_call_operand.vmem [shape: bf16[32,32], index: 1, kind: input, shape index: {}]   ;;  %s221_s0 = inlined_call_operand.vmem [shape: bf16[32,32], index: 0, kind: input, shape index: {}]   ;;  %s222_s2 = inlined_call_operand.vmem [shape: f32[1,32], index: 2, kind: input, shape index: {}]   ;;  %s223_s3 = inlined_call_operand.vmem [shape: f32[32,32], index: 3, kind: input, shape index: {}]   ;;  %s224_s4 = inlined_call_operand.vmem [shape: f32[32,32], index: 4, kind: output, shape index: {}]  }
   0x1   :  { %v146_v0 = vld [vmem:[%s220_s1 + $0x8] sm:$0xff]   ;;  %v147_v1 = vld [vmem:[%s220_s1] sm:$0xff]   ;;  %v113_v6 = vld [vmem:[%s223_s3 + $0x10] sm:$0xff] }
   0x2   :  { %138 = vmatprep.subr.bf16.mxu0 %v146_v0  ;;  %v148_v2 = vld [vmem:[%s221_s0] sm:$0xff]   ;;  %v149_v3 = vld [vmem:[%s221_s0 + $0x8] sm:$0xff]   ;;  %v114_v13 = vld [vmem:[%s223_s3 + $0x18] sm:$0xff] }
   0x3   :  { %139 = vmatpush3.bf16.msra.mxu0 %v146_v0  ;;  %142 = vmatprep.mubr.msk.bf16.mxu0 %vm55_vm0, %v148_v2  ;;  %v127_v4 = vld [vmem:[%s222_s2] ss:$0 sm:$0xff]  ;;  %v112_v17 = vld [vmem:[%s223_s3 + $0x8] sm:$0xff] }
   0x4   :  { %140 = vmatprep.subr.bf16.mxu0 %v147_v1  ;;  %v111_v9 = vld [vmem:[%s223_s3] sm:$0xff] }
   0x7   :  { %141 = vmatpush3.bf16.msra.mxu0 %v147_v1 }
   0xa   :  { %143 = vmatmul.mubr.msk.bf16.vlgmr.msra.gmra.mxu0 %vm55_vm0, %v149_v3 }
  0xca   :  { %v144_v5 = vpop.f32.mrf.mxu0 }
  0xcb   :  { %v105_v7 = vadd.f32 %v144_v5, %v127_v4 }
  0xcc   :  { %v96_v8 = vpop.f32.mrf.mxu0 }
  0xcd   :  { %v117_v10 = vadd.f32 %v113_v6, %v105_v7  ;;  %v97_v11 = vadd.f32 %v127_v4, %v96_v8 }
  0xce   :  { %v145_v12 = vpop.f32.mrf.mxu0 }
  0xcf   :  { %121 = vst.msk [vmem:[%s224_s4 + $0x10] sm:$0xff] %vm55_vm0, %v117_v10  ;;  %v115_v14 = vadd.f32 %v111_v9, %v97_v11  ;;  %v108_v15 = vadd.f32 %v145_v12, %v127_v4 }
  0xd0   :  { %v99_v16 = vpop.f32.mrf.mxu0 }
  0xd1   :  { %119 = vst.msk [vmem:[%s224_s4] sm:$0xff] %vm55_vm0, %v115_v14  ;;  %v118_v18 = vadd.f32 %v114_v13, %v108_v15  ;;  %v100_v19 = vadd.f32 %v127_v4, %v99_v16 }
  0xd3   :  { %122 = vst.msk [vmem:[%s224_s4 + $0x18] sm:$0xff] %vm55_vm0, %v118_v18  ;;  %v116_v20 = vadd.f32 %v112_v17, %v100_v19 }
  0xd5   :  { %120 = vst.msk [vmem:[%s224_s4 + $0x8] sm:$0xff] %vm55_vm0, %v116_v20 }

// kernel: cross_frame_attention_block.18
= control target key start
LH: loop header
LB: loop body
LE: loop exit
PB: predicated region body
PF: predicated region fallthrough
CT: control target
= control target key end

     0   :  { %vm25_vm0 = vcmask 261120   ;;  %s378_s0 = inlined_call_operand.vmem [shape: f32[32,32], index: 0, kind: input, shape index: {}]   ;;  %s379_s3 = inlined_call_operand.vmem [shape: bf16[32,128], index: 3, kind: input, shape index: {}]   ;;  %s380_s1 = inlined_call_operand.vmem [shape: f32[1,32], index: 1, kind: input, shape index: {}]   ;;  %s381_s2 = inlined_call_operand.vmem [shape: f32[1,32], index: 2, kind: input, shape index: {}]   ;;  %s382_s4 = inlined_call_operand.vmem [shape: f32[1,128], index: 4, kind: input, shape index: {}]   ;;  %s383_s5 = inlined_call_operand.vmem [shape: bf16[32,128], index: 5, kind: output, shape index: {}]  }
   0x1   :  { %v21_v0 = vld [vmem:[%s378_s0] sm:$0xff]  ;;  %v23_v1 = vld [vmem:[%s378_s0 + $0x10] sm:$0xff]  ;;  %v22_v2 = vld [vmem:[%s378_s0 + $0x8] sm:$0xff] }
   0x2   :  { %v26_v3 = vsel %vm25_vm0, %v21_v0, 0.0  ;;  %v32_v4 = vsel %vm25_vm0, %v23_v1, 0.0  ;;  %v24_v5 = vld [vmem:[%s378_s0 + $0x18] sm:$0xff]  ;;  %v29_v6 = vsel %vm25_vm0, %v22_v2, 0.0  ;;  %v279_v28 = vld [vmem:[%s379_s3 + $0x8] sm:$0xff]   ;;  %v280_v29 = vld [vmem:[%s379_s3] sm:$0xff]  }
   0x3   :  { %27 = vadd.xlane.f32.xlu0 %v26_v3  ;;  %33 = vadd.xlane.f32.xlu1 %v32_v4  ;;  %v35_v7 = vsel %vm25_vm0, %v24_v5, 0.0  ;;  %v237_v44 = vld [vmem:[%s380_s1] ss:$0 sm:$0xff] }
   0x4   :  { %271 = vmatprep.subr.bf16.mxu0 %v279_v28  ;;  %v238_v49 = vld [vmem:[%s381_s2] ss:$0 sm:$0xff] }
   0x5   :  { %272 = vmatpush3.bf16.msra.mxu0 %v279_v28  ;;  %v239_v62 = vld [vmem:[%s382_s4] ss:$0 sm:$0xff] }
   0x6   :  { %273 = vmatprep.subr.bf16.mxu0 %v280_v29 }
   0x7   :  { %30 = vadd.xlane.f32.xlu0 %v29_v6  ;;  %36 = vadd.xlane.f32.xlu1 %v35_v7 }
   0x9   :  { %274 = vmatpush3.bf16.msra.mxu0 %v280_v29 }
  0x8c   :  { %v28_v8 = vpop.xlane.xlu0 %27  ;;  %v34_v9 = vpop.xlane.xlu1 %33 }
  0x8d   :  { %v39_v10 = vmul.f32 0.03125, %v28_v8  ;;  %v41_v11 = vmul.f32 0.03125, %v34_v9 }
  0x8f   :  { %v43_v12 = vsub.f32 %v21_v0, %v39_v10  ;;  %v45_v13 = vsub.f32 %v23_v1, %v41_v11 }
  0x90   :  { %v31_v14 = vpop.xlane.xlu0 %30  ;;  %v37_v15 = vpop.xlane.xlu1 %36 }
  0x91   :  { %v40_v16 = vmul.f32 0.03125, %v31_v14  ;;  %v42_v17 = vmul.f32 0.03125, %v37_v15  ;;  %v47_v18 = vmul.f32 %v43_v12, %v43_v12  ;;  %v49_v19 = vmul.f32 %v45_v13, %v45_v13 }
  0x93   :  { %v44_v20 = vsub.f32 %v22_v2, %v40_v16  ;;  %v46_v21 = vsub.f32 %v24_v5, %v42_v17  ;;  %v51_v22 = vsel %vm25_vm0, %v47_v18, 0.0  ;;  %v57_v23 = vsel %vm25_vm0, %v49_v19, 0.0 }
  0x94   :  { %52 = vadd.xlane.f32.xlu0 %v51_v22 }
  0x95   :  { %v48_v24 = vmul.f32 %v44_v20, %v44_v20  ;;  %v50_v25 = vmul.f32 %v46_v21, %v46_v21 }
  0x97   :  { %v54_v26 = vsel %vm25_vm0, %v48_v24, 0.0  ;;  %v60_v27 = vsel %vm25_vm0, %v50_v25, 0.0 }
  0x98   :  { %58 = vadd.xlane.f32.xlu0 %v57_v23  ;;  %55 = vadd.xlane.f32.xlu1 %v54_v26 }
  0x9c   :  { %61 = vadd.xlane.f32.xlu1 %v60_v27 }
 0x11d   :  { %v53_v30 = vpop.xlane.xlu0 %52 }
 0x11e   :  { %v63_v31 = vmul.f32 0.03125, %v53_v30 }
 0x120   :  { %v67_v32 = vadd.f32 1e-05, %v63_v31 }
 0x121   :  { %v56_v33 = vpop.xlane.xlu1 %55  ;;  %v59_v34 = vpop.xlane.xlu0 %58 }
 0x122   :  { %281 = vrsqrt.f32 %v67_v32  ;;  %v64_v35 = vmul.f32 0.03125, %v56_v33  ;;  %v65_v36 = vmul.f32 0.03125, %v59_v34 }
 0x124   :  { %v68_v37 = vadd.f32 1e-05, %v64_v35  ;;  %v69_v38 = vadd.f32 1e-05, %v65_v36 }
 0x125   :  { %v62_v39 = vpop.xlane.xlu1 %61 }
 0x126   :  { %283 = vrsqrt.f32 %v68_v37  ;;  %v66_v40 = vmul.f32 0.03125, %v62_v39 }
 0x127   :  { %285 = vrsqrt.f32 %v69_v38 }
 0x128   :  { %v70_v41 = vadd.f32 1e-05, %v66_v40 }
 0x12a   :  { %287 = vrsqrt.f32 %v70_v41 }
 0x12f   :  { %v282_v42 = vpop.eup %281 }
 0x130   :  { %v75_v43 = vmul.f32 %v282_v42, %v43_v12 }
 0x132   :  { %v86_v48 = vmul.f32 %v237_v44, %v75_v43 }
 0x133   :  { %v284_v45 = vpop.eup %283 }
 0x134   :  { %v286_v46 = vpop.eup %285  ;;  %v76_v47 = vmul.f32 %v284_v45, %v44_v20  ;;  %v97_v53 = vadd.f32 %v238_v49, %v86_v48 }
 0x135   :  { %v77_v50 = vmul.f32 %v286_v46, %v45_v13 }
 0x136   :  { %v87_v51 = vmul.f32 %v237_v44, %v76_v47 }
 0x137   :  { %v288_v52 = vpop.eup %287  ;;  %v88_v56 = vmul.f32 %v237_v44, %v77_v50 }
 0x138   :  { %v98_v54 = vadd.f32 %v238_v49, %v87_v51  ;;  %v78_v55 = vmul.f32 %v288_v52, %v46_v21 }
 0x139   :  { %v99_v59 = vadd.f32 %v238_v49, %v88_v56 }
 0x13a   :  { %v101_v57 = vpack.c.bf16 %v98_v54, %v97_v53  ;;  %v89_v58 = vmul.f32 %v237_v44, %v78_v55 }
 0x13c   :  { %275 = vmatprep.mubr.msk.bf16.mxu0 %vm25_vm0, %v101_v57  ;;  %v100_v60 = vadd.f32 %v238_v49, %v89_v58 }
 0x13e   :  { %v102_v61 = vpack.c.bf16 %v100_v60, %v99_v59 }
 0x140   :  { %276 = vmatmul.mubr.msk.bf16.vlgmr.msra.gmra.mxu0 %vm25_vm0, %v102_v61 }
 0x200   :  { %v277_v63 = vpop.f32.mrf.mxu0 }
 0x201   :  { %v175_v0 = vadd.f32 %v277_v63, %v239_v62 }
 0x202   :  { %v166_v1 = vpop.f32.mrf.mxu0 }
 0x203   :  { %v246_v2 = vmul.f32 -1.702, %v175_v0  ;;  %v167_v3 = vadd.f32 %v239_v62, %v166_v1 }
 0x204   :  { %v278_v4 = vpop.f32.mrf.mxu0 }
 0x205   :  { %v193_v5 = vmul.f32 1.442695, %v246_v2  ;;  %v244_v6 = vmul.f32 -1.702, %v167_v3  ;;  %v178_v7 = vadd.f32 %v278_v4, %v239_v62 }
 0x206   :  { %v169_v8 = vpop.f32.mrf.mxu0 }
 0x207   :  { %289 = vpow2.f32 %v193_v5  ;;  %v189_v9 = vmul.f32 1.442695, %v244_v6  ;;  %v247_v10 = vmul.f32 -1.702, %v178_v7  ;;  %v170_v11 = vadd.f32 %v239_v62, %v169_v8 }
 0x209   :  { %291 = vpow2.f32 %v189_v9  ;;  %v195_v12 = vmul.f32 1.442695, %v247_v10  ;;  %v245_v13 = vmul.f32 -1.702, %v170_v11 }
 0x20b   :  { %293 = vpow2.f32 %v195_v12  ;;  %v191_v14 = vmul.f32 1.442695, %v245_v13 }
 0x20d   :  { %295 = vpow2.f32 %v191_v14 }
 0x214   :  { %v290_v15 = vpop.eup %289 }
 0x215   :  { %v199_v16 = vadd.f32 1.0, %v290_v15 }
 0x216   :  { %v292_v17 = vpop.eup %291 }
 0x217   :  { %v197_v18 = vadd.f32 1.0, %v292_v17  ;;  %297 = vrcp.f32 %v199_v16 }
 0x218   :  { %v294_v19 = vpop.eup %293 }
 0x219   :  { %v200_v20 = vadd.f32 1.0, %v294_v19  ;;  %299 = vrcp.f32 %v197_v18 }
 0x21a   :  { %v296_v21 = vpop.eup %295 }
 0x21b   :  { %301 = vrcp.f32 %v200_v20  ;;  %v198_v22 = vadd.f32 1.0, %v296_v21 }
 0x21d   :  { %303 = vrcp.f32 %v198_v22 }
 0x224   :  { %v298_v23 = vpop.eup %297 }
 0x225   :  { %v211_v26 = vmul.f32 %v298_v23, %v175_v0 }
 0x226   :  { %v300_v24 = vpop.eup %299 }
 0x227   :  { %v209_v29 = vmul.f32 %v300_v24, %v167_v3 }
 0x228   :  { %v302_v25 = vpop.eup %301 }
 0x229   :  { %v212_v27 = vmul.f32 %v302_v25, %v178_v7 }
 0x22a   :  { %v304_v28 = vpop.eup %303 }
 0x22b   :  { %v264_v30 = vpack.c.bf16 %v212_v27, %v211_v26  ;;  %v210_v31 = vmul.f32 %v304_v28, %v170_v11 }
 0x22d   :  { %266 = vst [vmem:[%s383_s5 + $0x8] sm:$0xff] %v264_v30   ;;  %v259_v32 = vpack.c.bf16 %v210_v31, %v209_v29 }
 0x22f   :  { %260 = vst [vmem:[%s383_s5] sm:$0xff] %v259_v32  }

// kernel: cross_frame_attention_block.19
= control target key start
LH: loop header
LB: loop body
LE: loop exit
PB: predicated region body
PF: predicated region fallthrough
CT: control target
= control target key end

     0   :  { %vm162_vm0 = vcmask 261120   ;;  %s308_s1 = inlined_call_operand.vmem [shape: bf16[128,32], index: 1, kind: input, shape index: {}]   ;;  %s309_s0 = inlined_call_operand.vmem [shape: bf16[32,128], index: 0, kind: input, shape index: {}]   ;;  %s310_s2 = inlined_call_operand.vmem [shape: f32[1,32], index: 2, kind: input, shape index: {}]   ;;  %s311_s3 = inlined_call_operand.vmem [shape: f32[32,32], index: 3, kind: input, shape index: {}]   ;;  %s312_s4 = inlined_call_operand.vmem [shape: f32[32,32], index: 4, kind: output, shape index: {}]  }
   0x1   :  { %v212_v0 = vld [vmem:[%s308_s1 + $0x38] sm:$0xff]   ;;  %v213_v1 = vld [vmem:[%s308_s1 + $0x30] sm:$0xff]   ;;  %v214_v2 = vld [vmem:[%s308_s1 + $0x28] sm:$0xff]  }
   0x2   :  { %192 = vmatprep.subr.bf16.mxu0 %v212_v0  ;;  %v215_v3 = vld [vmem:[%s308_s1 + $0x20] sm:$0xff]   ;;  %v216_v5 = vld [vmem:[%s308_s1 + $0x18] sm:$0xff]   ;;  %v217_v6 = vld [vmem:[%s308_s1 + $0x10] sm:$0xff]  }
   0x3   :  { %193 = vmatpush3.bf16.msra.mxu0 %v212_v0  ;;  %v220_v4 = vld [vmem:[%s309_s0] sm:$0xff]   ;;  %v218_v7 = vld [vmem:[%s308_s1 + $0x8] sm:$0xff]   ;;  %v156_v12 = vld [vmem:[%s311_s3 + $0x10] sm:$0xff] }
   0x4   :  { %194 = vmatprep.subr.bf16.mxu0 %v213_v1  ;;  %208 = vmatprep.mubr.bf16.mxu0 %v220_v4  ;;  %v219_v8 = vld [vmem:[%s308_s1] sm:$0xff]   ;;  %v221_v9 = vld [vmem:[%s309_s0 + $0x8] sm:$0xff]   ;;  %v157_v19 = vld [vmem:[%s311_s3 + $0x18] sm:$0xff] }
   0x5   :  { %v171_v10 = vld [vmem:[%s310_s2] ss:$0 sm:$0xff]  ;;  %v155_v23 = vld [vmem:[%s311_s3 + $0x8] sm:$0xff] }
   0x6   :  { %v154_v15 = vld [vmem:[%s311_s3] sm:$0xff] }
   0x7   :  { %195 = vmatpush3.bf16.msra.mxu0 %v213_v1 }
   0x8   :  { %196 = vmatprep.subr.bf16.mxu0 %v214_v2 }
   0xb   :  { %197 = vmatpush3.bf16.msra.mxu0 %v214_v2 }
   0xc   :  { %198 = vmatprep.subr.bf16.mxu0 %v215_v3 }
   0xf   :  { %199 = vmatpush3.bf16.msra.mxu0 %v215_v3 }
  0x10   :  { %200 = vmatprep.subr.bf16.mxu0 %v216_v5 }
  0x13   :  { %201 = vmatpush3.bf16.msra.mxu0 %v216_v5 }
  0x14   :  { %202 = vmatprep.subr.bf16.mxu0 %v217_v6 }
  0x17   :  { %203 = vmatpush3.bf16.msra.mxu0 %v217_v6 }
  0x18   :  { %204 = vmatprep.subr.bf16.mxu0 %v218_v7 }
  0x1b   :  { %205 = vmatpush3.bf16.msra.mxu0 %v218_v7 }
  0x1c   :  { %206 = vmatprep.subr.bf16.mxu0 %v219_v8 }
  0x1f   :  { %207 = vmatpush3.bf16.msra.mxu0 %v219_v8 }
  0x22   :  { %209 = vmatmul.mubr.bf16.vlgmr.msra.gmra.mxu0 %v221_v9 }
  0xe2   :  { %v210_v11 = vpop.f32.mrf.mxu0 }
  0xe3   :  { %v148_v13 = vadd.f32 %v210_v11, %v171_v10 }
  0xe4   :  { %v139_v14 = vpop.f32.mrf.mxu0 }
  0xe5   :  { %v160_v16 = vadd.f32 %v156_v12, %v148_v13  ;;  %v140_v17 = vadd.f32 %v171_v10, %v139_v14 }
  0xe6   :  { %v211_v18 = vpop.f32.mrf.mxu0 }
  0xe7   :  { %165 = vst.msk [vmem:[%s312_s4 + $0x10] sm:$0xff] %vm162_vm0, %v160_v16  ;;  %v158_v20 = vadd.f32 %v154_v15, %v140_v17  ;;  %v151_v21 = vadd.f32 %v211_v18, %v171_v10 }
  0xe8   :  { %v142_v22 = vpop.f32.mrf.mxu0 }
  0xe9   :  { %163 = vst.msk [vmem:[%s312_s4] sm:$0xff] %vm162_vm0, %v158_v20  ;;  %v161_v24 = vadd.f32 %v157_v19, %v151_v21  ;;  %v143_v25 = vadd.f32 %v171_v10, %v142_v22 }
  0xeb   :  { %166 = vst.msk [vmem:[%s312_s4 + $0x18] sm:$0xff] %vm162_vm0, %v161_v24  ;;  %v159_v26 = vadd.f32 %v155_v23, %v143_v25 }
  0xed   :  { %164 = vst.msk [vmem:[%s312_s4 + $0x8] sm:$0xff] %vm162_vm0, %v159_v26 }

// kernel: cross_frame_attention_block.16
= control target key start
LH: loop header
LB: loop body
LE: loop exit
PB: predicated region body
PF: predicated region fallthrough
CT: control target
= control target key end

     0   :  { %v35_v0 = vlaneseq  ;;  %v2389_v1 = vmov 1966171168   ;;  %v2390_v8 = vmov 0.0   ;;  %vm2391_vm0 = vmmov 0   ;;  %s2392_s24 = smov 96   ;;  %s2395_s25 = smov 88   ;;  %s2821_s1 = inlined_call_operand.vmem [shape: bf16[4,1,96], index: 1, kind: input, shape index: {}]   ;;  %s2822_s0 = inlined_call_operand.vmem [shape: bf16[4,8,96], index: 0, kind: input, shape index: {}]   ;;  %s2823_s2 = inlined_call_operand.vmem [shape: bf16[4,8,32], index: 2, kind: output, shape index: {}]  }
   0x1   :  { %v33_v2 = vunpack.c.l.s4 %v2389_v1  ;;  %v1987_v3 = vld.sshfl [vmem:[%s2821_s1] sm:$0x1 pattern:$0x75316420]  ;;  %2115 = vmatprep.subr.bf16.mxu0 %v2390_v8  ;;  %2121 = vmatprep.subr.bf16.mxu1 %v2390_v8  ;;  %vm85_vm1 = vcmask 1043456   ;;  %vm105_vm2 = vcmask 64512  }
   0x2   :  { %v36_v4 = vshrl.u32 %v35_v0, 7  ;;  %v1988_v6 = vld.sshfl [vmem:[%s2821_s1 + $0x1] sm:$0x1 pattern:$0x75316420]  ;;  %2117 = vmatprep.mubr.msk.bf16.mxu0 %vm2391_vm0, %v2390_v8  ;;  %2123 = vmatprep.mubr.msk.bf16.mxu1 %vm2391_vm0, %v2390_v8  ;;  %vm299_vm3 = vcmask 72704  }
   0x3   :  { %v34_v5 = vunpack.c.0.s8 %v33_v2  ;;  %v1989_v7 = vld.sshfl [vmem:[%s2821_s1 + $0x2] sm:$0x1 pattern:$0x75316420]  ;;  %v15_v16 = vld [vmem:[%s2822_s0 + $0x8] sm:$0xf] }
   0x4   :  { %v1990_v10 = vld.sshfl [vmem:[%s2821_s1 + $0x3] sm:$0x1 pattern:$0x75316420]  ;;  %v14_v21 = vld [vmem:[%s2822_s0 + $0x4] sm:$0xf] }
   0x5   :  { %v37_v9 = vsub.s32 %v34_v5, %v36_v4  ;;  %v13_v15 = vld [vmem:[%s2822_s0] sm:$0xf]  ;;  %v16_v22 = vld [vmem:[%s2822_s0 + $0xc] sm:$0xf]  ;;  %v2477_v35 = vmul.bf16 1052065461, %v14_v21 }
   0x6   :  { %v2471_v32 = vmul.bf16 1052065461, %v13_v15  ;;  %v2485_v37 = vmul.bf16 1052065461, %v15_v16  ;;  %v2492_v38 = vmul.bf16 1052065461, %v16_v22 }
   0x7   :  { %v38_v11 = vrot.slane %v1987_v3, %v37_v9  ;;  %v53_v12 = vrot.slane %v1988_v6, %v37_v9  ;;  %v68_v13 = vrot.slane %v1989_v7, %v37_v9  ;;  %v83_v14 = vrot.slane %v1990_v10, %v37_v9  ;;  %s2393_s0 = smov 64   ;;  %s2396_s26 = smov 120  }
   0x8   :  { %vm353_vm4 = vcmask 1044480   ;;  %v2394_v61 = vmov 65535   ;;  %vm547_vm5 = vcmask 60416   ;;  %s2397_s7 = smov 56   ;;  %s2398_s8 = smov 80   ;;  %vm1032_vm6 = vcmask 126016  }
   0x9   :  { %v39_v17 = vcombine.low %v38_v11, %v38_v11  ;;  %v54_v18 = vcombine.low %v53_v12, %v53_v12  ;;  %v69_v19 = vcombine.low %v68_v13, %v68_v13  ;;  %v84_v20 = vcombine.low %v83_v14, %v83_v14  ;;  %s2399_s9 = smov 112   ;;  %s2400_s10 = smov 48  }
   0xa   :  { %v354_v62 = vsel %vm85_vm1, 4294967295, %v2394_v61  ;;  %s2401_s11 = smov 72   ;;  %s2402_s12 = smov 104   ;;  %vm1505_vm7 = vcmask 191616   ;;  %vm1978_vm8 = vcmask 257216  }
   0xb   :  { %v2453_v23 = vsel %vm85_vm1, %v13_v15, %v39_v17  ;;  %v2456_v24 = vsel %vm85_vm1, %v15_v16, %v69_v19  ;;  %v2461_v25 = vsel %vm85_vm1, %v14_v21, %v54_v18  ;;  %v2464_v26 = vsel %vm85_vm1, %v16_v22, %v84_v20  ;;  %s2403_s13 = smov 40   ;;  %s2404_s14 = smov 8  }
   0xc   :  { %103 = vrot.lane.b32.xlu0 %v2453_v23, %s2392_s24  ;;  %202 = vrot.lane.b32.xlu1 %v2456_v24, %s2392_s24  ;;  %v2506_v2 = vsel %vm353_vm4, %v354_v62, 0  ;;  %v2520_v21 = vcombine.low %v2477_v35, %v2477_v35  ;;  %v2526_v22 = vcombine.low %v2471_v32, %v2471_v32  ;;  %s2405_s15 = smov 16   ;;  %s2406_s30 = smov 24  }
  0x10   :  { %153 = vrot.lane.b32.xlu0 %v2461_v25, %s2392_s24  ;;  %251 = vrot.lane.b32.xlu1 %v2464_v26, %s2392_s24 }
  0x7e   :  { %v104_v27 = vpop.permute.xlu0 %103  ;;  %v203_v29 = vpop.permute.xlu1 %202 }
  0x7f   :  { %v110_v28 = vsel %vm105_vm2, %v104_v27, 0  ;;  %v208_v33 = vsel %vm105_vm2, %v203_v29, 0  ;;  %v2531_v27 = vcombine.low %v2492_v38, %v2492_v38 }
  0x80   :  { %2116 = vmatpush3.bf16.xpose.msra.mxu0 %v110_v28  ;;  %v2538_v28 = vcombine.low %v2485_v37, %v2485_v37 }
  0x81   :  { %2127 = vmatprep.subr.bf16.mxu0 %v2390_v8 }
  0x82   :  { %v154_v30 = vpop.permute.xlu0 %153  ;;  %v252_v34 = vpop.permute.xlu1 %251 }
  0x83   :  { %v159_v31 = vsel %vm105_vm2, %v154_v30, 0  ;;  %v257_v36 = vsel %vm105_vm2, %v252_v34, 0 }
  0x84   :  { %2122 = vmatpush3.bf16.xpose.msra.mxu1 %v159_v31 }
  0x85   :  { %2133 = vmatprep.subr.bf16.mxu1 %v2390_v8 }
  0x87   :  { %2118 = vmatmul.mubr.msk.bf16.vlgmr.msra.gmra.mxu0 %vm105_vm2, %v2471_v32 }
  0x88   :  { %2128 = vmatpush3.bf16.xpose.msra.mxu0 %v208_v33  ;;  %2129 = vmatprep.mubr.msk.bf16.mxu0 %vm2391_vm0, %v2390_v8 }
  0x89   :  { %2139 = vmatprep.subr.bf16.mxu0 %v2390_v8 }
  0x8b   :  { %2124 = vmatmul.mubr.msk.bf16.vlgmr.msra.gmra.mxu1 %vm105_vm2, %v2477_v35 }
  0x8c   :  { %2134 = vmatpush3.bf16.xpose.msra.mxu1 %v257_v36  ;;  %2135 = vmatprep.mubr.msk.bf16.mxu1 %vm2391_vm0, %v2390_v8 }
  0x8d   :  { %2145 = vmatprep.subr.bf16.mxu1 %v2390_v8 }
  0x8f   :  { %2130 = vmatmul.mubr.msk.bf16.vlgmr.msra.gmra.mxu0 %vm105_vm2, %v2485_v37 }
  0x90   :  { %2141 = vmatprep.mubr.msk.bf16.mxu0 %vm2391_vm0, %v2390_v8 }
  0x93   :  { %2136 = vmatmul.mubr.msk.bf16.vlgmr.msra.gmra.mxu1 %vm105_vm2, %v2492_v38 }
  0x94   :  { %2147 = vmatprep.mubr.msk.bf16.mxu1 %vm2391_vm0, %v2390_v8 }
 0x147   :  { %v146_v39 = vpop.f32.mrf.mxu0 }
 0x148   :  { %v300_v40 = vsel %vm299_vm3, %v146_v39, -inf }
 0x149   :  { %301 = vmax.xlane.f32.xlu0 %v300_v40  ;;  %v2119_v41 = vpop.f32.mrf.mxu0 }
 0x14b   :  { %v149_v42 = vpop.f32.mrf.mxu0  ;;  %v195_v43 = vpop.f32.mrf.mxu1 }
 0x14c   :  { %v303_v44 = vsel %vm299_vm3, %v195_v43, -inf }
 0x14d   :  { %v2120_v45 = vpop.f32.mrf.mxu0  ;;  %304 = vmax.xlane.f32.xlu1 %v303_v44  ;;  %v2125_v46 = vpop.f32.mrf.mxu1 }
 0x14f   :  { %v198_v47 = vpop.f32.mrf.mxu1  ;;  %v244_v48 = vpop.f32.mrf.mxu0 }
 0x150   :  { %v306_v49 = vsel %vm299_vm3, %v244_v48, -inf }
 0x151   :  { %307 = vmax.xlane.f32.xlu0 %v306_v49  ;;  %v2126_v50 = vpop.f32.mrf.mxu1  ;;  %v2131_v51 = vpop.f32.mrf.mxu0 }
 0x153   :  { %v293_v52 = vpop.f32.mrf.mxu1  ;;  %v247_v53 = vpop.f32.mrf.mxu0 }
 0x154   :  { %v309_v54 = vsel %vm299_vm3, %v293_v52, -inf }
 0x155   :  { %310 = vmax.xlane.f32.xlu0 %v309_v54  ;;  %v2132_v55 = vpop.f32.mrf.mxu0  ;;  %v2137_v56 = vpop.f32.mrf.mxu1 }
 0x157   :  { %v296_v57 = vpop.f32.mrf.mxu1 }
 0x159   :  { %v2138_v58 = vpop.f32.mrf.mxu1 }
 0x15e   :  { %348 = vrot.lane.b32.xlu1 %v2453_v23, %s2393_s0 }
 0x1d2   :  { %v302_v59 = vpop.xlane.xlu0 %301 }
 0x1d3   :  { %v312_v60 = vsub.f32 %v146_v39, %v302_v59 }
 0x1d5   :  { %v316_v63 = vmul.f32 1.442695, %v312_v60 }
 0x1d6   :  { %v305_v0 = vpop.xlane.xlu1 %304 }
 0x1d7   :  { %2325 = vpow2.f32 %v316_v63  ;;  %v313_v1 = vsub.f32 %v195_v43, %v305_v0 }
 0x1d9   :  { %v318_v3 = vmul.f32 1.442695, %v313_v1 }
 0x1da   :  { %v349_v4 = vpop.permute.xlu1 %348  ;;  %v308_v11 = vpop.xlane.xlu0 %307 }
 0x1db   :  { %2327 = vpow2.f32 %v318_v3  ;;  %v357_v5 = vand.u32 %v2506_v2, %v349_v4  ;;  %v314_v13 = vsub.f32 %v244_v48, %v308_v11 }
 0x1dd   :  { %2140 = vmatpush3.bf16.msra.mxu0 %v357_v5  ;;  %v320_v15 = vmul.f32 1.442695, %v314_v13 }
 0x1de   :  { %2151 = vmatprep.subr.bf16.mxu0 %v2390_v8  ;;  %v311_v12 = vpop.xlane.xlu0 %310 }
 0x1df   :  { %v315_v14 = vsub.f32 %v293_v52, %v311_v12  ;;  %2329 = vpow2.f32 %v320_v15 }
 0x1e1   :  { %v322_v16 = vmul.f32 1.442695, %v315_v14 }
 0x1e3   :  { %2331 = vpow2.f32 %v322_v16 }
 0x1e4   :  { %v2326_v6 = vpop.eup %2325 }
 0x1e5   :  { %v324_v7 = vsel %vm299_vm3, %v2326_v6, 0.0 }
 0x1e6   :  { %325 = vadd.xlane.f32.xlu1 %v324_v7 }
 0x1e8   :  { %v2328_v9 = vpop.eup %2327 }
 0x1e9   :  { %v327_v10 = vsel %vm299_vm3, %v2328_v9, 0.0 }
 0x1ea   :  { %328 = vadd.xlane.f32.xlu0 %v327_v10 }
 0x1ec   :  { %v2330_v17 = vpop.eup %2329 }
 0x1ed   :  { %v330_v19 = vsel %vm299_vm3, %v2330_v17, 0.0 }
 0x1f0   :  { %v2332_v18 = vpop.eup %2331 }
 0x1f1   :  { %v333_v20 = vsel %vm299_vm3, %v2332_v18, 0.0 }
 0x1f7   :  { %447 = vrot.lane.b32.xlu1 %v2456_v24, %s2393_s0 }
 0x1fb   :  { %495 = vrot.lane.b32.xlu1 %v2464_v26, %s2393_s0 }
 0x200   :  { %399 = vrot.lane.b32.xlu0 %v2461_v25, %s2393_s0 }
 0x21f   :  { %331 = vadd.xlane.f32.xlu1 %v330_v19  ;;  %334 = vadd.xlane.f32.xlu0 %v333_v20 }
 0x230   :  { %610 = vrot.lane.b32.xlu1 %v2461_v25, %s2395_s25 }
 0x234   :  { %608 = vrot.lane.b32.xlu1 %v2520_v21, %s2396_s26 }
 0x235   :  { %557 = vrot.lane.b32.xlu0 %v2453_v23, %s2395_s25 }
 0x238   :  { %716 = vrot.lane.b32.xlu1 %v2464_v26, %s2395_s25 }
 0x239   :  { %555 = vrot.lane.b32.xlu0 %v2526_v22, %s2396_s26 }
 0x23c   :  { %714 = vrot.lane.b32.xlu1 %v2531_v27, %s2396_s26 }
 0x23d   :  { %663 = vrot.lane.b32.xlu0 %v2456_v24, %s2395_s25 }
 0x241   :  { %661 = vrot.lane.b32.xlu0 %v2538_v28, %s2396_s26 }
 0x26f   :  { %v326_v29 = vpop.xlane.xlu1 %325 }
 0x270   :  { %2333 = vrcp.f32 %v326_v29 }
 0x273   :  { %v329_v30 = vpop.xlane.xlu0 %328  ;;  %v448_v33 = vpop.permute.xlu1 %447 }
 0x274   :  { %2335 = vrcp.f32 %v329_v30  ;;  %v453_v37 = vand.u32 %v448_v33, %v2506_v2 }
 0x277   :  { %v400_v31 = vpop.permute.xlu0 %399  ;;  %v496_v39 = vpop.permute.xlu1 %495 }
 0x278   :  { %v405_v32 = vand.u32 %v400_v31, %v2506_v2  ;;  %v501_v42 = vand.u32 %v496_v39, %v2506_v2 }
 0x27a   :  { %2146 = vmatpush3.bf16.msra.mxu1 %v405_v32 }
 0x27b   :  { %2157 = vmatprep.subr.bf16.mxu1 %v2390_v8 }
 0x27d   :  { %v2334_v34 = vpop.eup %2333 }
 0x27e   :  { %v340_v35 = vmul.f32 %v2334_v34, %v2326_v6 }
 0x280   :  { %v344_v36 = vpack.c.bf16 %v340_v35, %v340_v35 }
 0x281   :  { %v2336_v38 = vpop.eup %2335 }
 0x282   :  { %2142 = vmatmul.mubr.msk.bf16.vlgmr.msra.gmra.mxu0 %vm299_vm3, %v344_v36  ;;  %v341_v40 = vmul.f32 %v2336_v38, %v2328_v9 }
 0x283   :  { %2152 = vmatpush3.bf16.msra.mxu0 %v453_v37  ;;  %2153 = vmatprep.mubr.msk.bf16.mxu0 %vm2391_vm0, %v2390_v8 }
 0x284   :  { %v345_v41 = vpack.c.bf16 %v341_v40, %v341_v40  ;;  %2163 = vmatprep.subr.bf16.mxu0 %v2390_v8 }
 0x286   :  { %2148 = vmatmul.mubr.msk.bf16.vlgmr.msra.gmra.mxu1 %vm299_vm3, %v345_v41 }
 0x287   :  { %2158 = vmatpush3.bf16.msra.mxu1 %v501_v42  ;;  %2159 = vmatprep.mubr.msk.bf16.mxu1 %vm2391_vm0, %v2390_v8 }
 0x288   :  { %2169 = vmatprep.subr.bf16.mxu1 %v2390_v8 }
 0x2a8   :  { %v332_v43 = vpop.xlane.xlu1 %331  ;;  %v335_v44 = vpop.xlane.xlu0 %334 }
 0x2a9   :  { %2337 = vrcp.f32 %v332_v43 }
 0x2aa   :  { %2339 = vrcp.f32 %v335_v44 }
 0x2ac   :  { %v558_v45 = vpop.permute.xlu0 %557  ;;  %v611_v46 = vpop.permute.xlu1 %610 }
 0x2ad   :  { %v563_v52 = vsel %vm105_vm2, %v558_v45, 0  ;;  %v616_v55 = vsel %vm105_vm2, %v611_v46, 0 }
 0x2b0   :  { %v556_v51 = vpop.permute.xlu0 %555  ;;  %v609_v54 = vpop.permute.xlu1 %608 }
 0x2b4   :  { %v664_v57 = vpop.permute.xlu0 %663  ;;  %v717_v58 = vpop.permute.xlu1 %716 }
 0x2b5   :  { %v669_v59 = vsel %vm105_vm2, %v664_v57, 0  ;;  %v722_v60 = vsel %vm105_vm2, %v717_v58, 0 }
 0x2b6   :  { %v2338_v47 = vpop.eup %2337 }
 0x2b7   :  { %v2340_v48 = vpop.eup %2339  ;;  %v342_v49 = vmul.f32 %v2338_v47, %v2330_v17 }
 0x2b8   :  { %v343_v50 = vmul.f32 %v2340_v48, %v2332_v18  ;;  %v662_v61 = vpop.permute.xlu0 %661  ;;  %v715_v62 = vpop.permute.xlu1 %714 }
 0x2b9   :  { %v346_v53 = vpack.c.bf16 %v342_v49, %v342_v49 }
 0x2ba   :  { %v347_v56 = vpack.c.bf16 %v343_v50, %v343_v50 }
 0x2bb   :  { %2154 = vmatmul.mubr.msk.bf16.vlgmr.msra.gmra.mxu0 %vm299_vm3, %v346_v53 }
 0x2bc   :  { %2160 = vmatmul.mubr.msk.bf16.vlgmr.msra.gmra.mxu1 %vm299_vm3, %v347_v56  ;;  %2164 = vmatpush3.bf16.xpose.msra.mxu0 %v563_v52 }
 0x2bd   :  { %2170 = vmatpush3.bf16.xpose.msra.mxu1 %v616_v55  ;;  %2165 = vmatprep.mubr.msk.bf16.mxu0 %vm2391_vm0, %v2390_v8 }
 0x2be   :  { %2171 = vmatprep.mubr.msk.bf16.mxu1 %vm2391_vm0, %v2390_v8  ;;  %2175 = vmatprep.subr.bf16.mxu0 %v2390_v8 }
 0x2bf   :  { %2181 = vmatprep.subr.bf16.mxu1 %v2390_v8 }
 0x2c3   :  { %2166 = vmatmul.mubr.msk.bf16.vlgmr.msra.gmra.mxu0 %vm105_vm2, %v556_v51 }
 0x2c4   :  { %2172 = vmatmul.mubr.msk.bf16.vlgmr.msra.gmra.mxu1 %vm105_vm2, %v609_v54  ;;  %2176 = vmatpush3.bf16.xpose.msra.mxu0 %v669_v59 }
 0x2c5   :  { %2182 = vmatpush3.bf16.xpose.msra.mxu1 %v722_v60  ;;  %2177 = vmatprep.mubr.msk.bf16.mxu0 %vm2391_vm0, %v2390_v8 }
 0x2c6   :  { %2183 = vmatprep.mubr.msk.bf16.mxu1 %vm2391_vm0, %v2390_v8  ;;  %2187 = vmatprep.subr.bf16.mxu0 %v2390_v8 }
 0x2c7   :  { %2193 = vmatprep.subr.bf16.mxu1 %v2390_v8 }
 0x2cb   :  { %2178 = vmatmul.mubr.msk.bf16.vlgmr.msra.gmra.mxu0 %vm105_vm2, %v662_v61 }
 0x2cc   :  { %2184 = vmatmul.mubr.msk.bf16.vlgmr.msra.gmra.mxu1 %vm105_vm2, %v715_v62  ;;  %2189 = vmatprep.mubr.msk.bf16.mxu0 %vm2391_vm0, %v2390_v8 }
 0x2cd   :  { %2195 = vmatprep.mubr.msk.bf16.mxu1 %vm2391_vm0, %v2390_v8 }
 0x342   :  { %v393_v63 = vpop.f32.mrf.mxu0 }
 0x343   :  { %v543_v0 = vpack.c.bf16 %v393_v63, %v393_v63 }
 0x344   :  { %v2143_v1 = vpop.f32.mrf.mxu0 }
 0x345   :  { %548 = vst.msk [vmem:[%s2823_s2] sm:$0xf] %vm547_vm5, %v543_v0 }
 0x346   :  { %v396_v3 = vpop.f32.mrf.mxu0  ;;  %v441_v4 = vpop.f32.mrf.mxu1 }
 0x347   :  { %v544_v5 = vpack.c.bf16 %v441_v4, %v441_v4 }
 0x348   :  { %v2144_v6 = vpop.f32.mrf.mxu0  ;;  %v2149_v7 = vpop.f32.mrf.mxu1 }
 0x349   :  { %549 = vst.msk [vmem:[%s2823_s2 + $0x4] sm:$0xf] %vm547_vm5, %v544_v5 }
 0x34a   :  { %v444_v9 = vpop.f32.mrf.mxu1 }
 0x34c   :  { %v2150_v10 = vpop.f32.mrf.mxu1 }
 0x37b   :  { %v489_v11 = vpop.f32.mrf.mxu0 }
 0x37c   :  { %v545_v12 = vpack.c.bf16 %v489_v11, %v489_v11  ;;  %v537_v13 = vpop.f32.mrf.mxu1 }
 0x37d   :  { %v546_v14 = vpack.c.bf16 %v537_v13, %v537_v13  ;;  %v2155_v15 = vpop.f32.mrf.mxu0 }
 0x37e   :  { %550 = vst.msk [vmem:[%s2823_s2 + $0x8] sm:$0xf] %vm547_vm5, %v545_v12  ;;  %v2161_v16 = vpop.f32.mrf.mxu1 }
 0x37f   :  { %551 = vst.msk [vmem:[%s2823_s2 + $0xc] sm:$0xf] %vm547_vm5, %v546_v14  ;;  %v492_v17 = vpop.f32.mrf.mxu0 }
 0x380   :  { %v540_v18 = vpop.f32.mrf.mxu1 }
 0x381   :  { %v2156_v19 = vpop.f32.mrf.mxu0 }
 0x382   :  { %v2162_v20 = vpop.f32.mrf.mxu1 }
 0x383   :  { %v599_v29 = vpop.f32.mrf.mxu0 }
 0x384   :  { %v652_v30 = vpop.f32.mrf.mxu1  ;;  %v764_v31 = vsel %vm299_vm3, %v599_v29, -inf }
 0x385   :  { %v767_v32 = vsel %vm299_vm3, %v652_v30, -inf  ;;  %765 = vmax.xlane.f32.xlu0 %v764_v31  ;;  %v2167_v33 = vpop.f32.mrf.mxu0 }
 0x386   :  { %768 = vmax.xlane.f32.xlu1 %v767_v32  ;;  %v2173_v34 = vpop.f32.mrf.mxu1 }
 0x387   :  { %v602_v35 = vpop.f32.mrf.mxu0 }
 0x388   :  { %v655_v36 = vpop.f32.mrf.mxu1 }
 0x389   :  { %v2168_v38 = vpop.f32.mrf.mxu0 }
 0x38a   :  { %v2174_v37 = vpop.f32.mrf.mxu1 }
 0x38b   :  { %v705_v39 = vpop.f32.mrf.mxu0 }
 0x38c   :  { %v770_v40 = vsel %vm299_vm3, %v705_v39, -inf  ;;  %v758_v41 = vpop.f32.mrf.mxu1 }
 0x38d   :  { %771 = vmax.xlane.f32.xlu0 %v770_v40  ;;  %v2179_v42 = vpop.f32.mrf.mxu0  ;;  %v773_v43 = vsel %vm299_vm3, %v758_v41, -inf }
 0x38e   :  { %v2185_v44 = vpop.f32.mrf.mxu1 }
 0x38f   :  { %v708_v45 = vpop.f32.mrf.mxu0 }
 0x390   :  { %v761_v46 = vpop.f32.mrf.mxu1 }
 0x391   :  { %774 = vmax.xlane.f32.xlu0 %v773_v43  ;;  %v2180_v47 = vpop.f32.mrf.mxu0 }
 0x392   :  { %v2186_v48 = vpop.f32.mrf.mxu1 }
 0x397   :  { %812 = vrot.lane.b32.xlu1 %v2453_v23, %s2397_s7 }
 0x40e   :  { %v766_v49 = vpop.xlane.xlu0 %765 }
 0x40f   :  { %v769_v50 = vpop.xlane.xlu1 %768  ;;  %v776_v51 = vsub.f32 %v599_v29, %v766_v49 }
 0x410   :  { %v777_v52 = vsub.f32 %v652_v30, %v769_v50 }
 0x411   :  { %v780_v53 = vmul.f32 1.442695, %v776_v51 }
 0x412   :  { %v782_v54 = vmul.f32 1.442695, %v777_v52 }
 0x413   :  { %2341 = vpow2.f32 %v780_v53  ;;  %v813_v55 = vpop.permute.xlu1 %812 }
 0x414   :  { %2343 = vpow2.f32 %v782_v54  ;;  %v818_v56 = vand.u32 %v813_v55, %v2506_v2 }
 0x416   :  { %2188 = vmatpush3.bf16.msra.mxu0 %v818_v56  ;;  %v772_v61 = vpop.xlane.xlu0 %771 }
 0x417   :  { %2199 = vmatprep.subr.bf16.mxu0 %v2390_v8  ;;  %v778_v0 = vsub.f32 %v705_v39, %v772_v61 }
 0x419   :  { %v784_v3 = vmul.f32 1.442695, %v778_v0 }
 0x41a   :  { %v775_v62 = vpop.xlane.xlu0 %774 }
 0x41b   :  { %v779_v63 = vsub.f32 %v758_v41, %v775_v62 }
 0x41d   :  { %v786_v1 = vmul.f32 1.442695, %v779_v63 }
 0x41f   :  { %2345 = vpow2.f32 %v786_v1 }
 0x420   :  { %v2342_v57 = vpop.eup %2341  ;;  %2347 = vpow2.f32 %v784_v3 }
 0x421   :  { %v2344_v58 = vpop.eup %2343  ;;  %v788_v59 = vsel %vm299_vm3, %v2342_v57, 0.0 }
 0x422   :  { %v791_v60 = vsel %vm299_vm3, %v2344_v58, 0.0  ;;  %789 = vadd.xlane.f32.xlu1 %v788_v59 }
 0x423   :  { %792 = vadd.xlane.f32.xlu0 %v791_v60 }
 0x42c   :  { %v2346_v4 = vpop.eup %2345 }
 0x42d   :  { %v2348_v5 = vpop.eup %2347  ;;  %v797_v6 = vsel %vm299_vm3, %v2346_v4, 0.0 }
 0x42e   :  { %v794_v7 = vsel %vm299_vm3, %v2348_v5, 0.0 }
 0x433   :  { %908 = vrot.lane.b32.xlu1 %v2456_v24, %s2397_s7 }
 0x437   :  { %956 = vrot.lane.b32.xlu1 %v2464_v26, %s2397_s7 }
 0x439   :  { %860 = vrot.lane.b32.xlu0 %v2461_v25, %s2397_s7 }
 0x458   :  { %798 = vadd.xlane.f32.xlu0 %v797_v6 }
 0x45b   :  { %795 = vadd.xlane.f32.xlu1 %v794_v7 }
 0x46c   :  { %1089 = vrot.lane.b32.xlu1 %v2461_v25, %s2398_s8 }
 0x46e   :  { %1039 = vrot.lane.b32.xlu0 %v2453_v23, %s2398_s8 }
 0x470   :  { %1087 = vrot.lane.b32.xlu1 %v2520_v21, %s2399_s9 }
 0x472   :  { %1037 = vrot.lane.b32.xlu0 %v2526_v22, %s2399_s9 }
 0x474   :  { %1189 = vrot.lane.b32.xlu1 %v2464_v26, %s2398_s8 }
 0x476   :  { %1139 = vrot.lane.b32.xlu0 %v2456_v24, %s2398_s8 }
 0x478   :  { %1187 = vrot.lane.b32.xlu1 %v2531_v27, %s2399_s9 }
 0x47a   :  { %1137 = vrot.lane.b32.xlu0 %v2538_v28, %s2399_s9 }
 0x4ab   :  { %v790_v9 = vpop.xlane.xlu1 %789 }
 0x4ac   :  { %2349 = vrcp.f32 %v790_v9  ;;  %v793_v10 = vpop.xlane.xlu0 %792 }
 0x4ad   :  { %2351 = vrcp.f32 %v793_v10 }
 0x4af   :  { %v909_v13 = vpop.permute.xlu1 %908 }
 0x4b0   :  { %v861_v11 = vpop.permute.xlu0 %860  ;;  %v914_v20 = vand.u32 %v909_v13, %v2506_v2 }
 0x4b1   :  { %v866_v12 = vand.u32 %v861_v11, %v2506_v2 }
 0x4b3   :  { %2194 = vmatpush3.bf16.msra.mxu1 %v866_v12  ;;  %v957_v17 = vpop.permute.xlu1 %956 }
 0x4b4   :  { %2205 = vmatprep.subr.bf16.mxu1 %v2390_v8  ;;  %v962_v30 = vand.u32 %v957_v17, %v2506_v2 }
 0x4b9   :  { %v2350_v14 = vpop.eup %2349 }
 0x4ba   :  { %v2352_v15 = vpop.eup %2351  ;;  %v804_v16 = vmul.f32 %v2350_v14, %v2342_v57 }
 0x4bb   :  { %v805_v18 = vmul.f32 %v2352_v15, %v2344_v58 }
 0x4bc   :  { %v808_v19 = vpack.c.bf16 %v804_v16, %v804_v16 }
 0x4bd   :  { %v809_v29 = vpack.c.bf16 %v805_v18, %v805_v18 }
 0x4be   :  { %2190 = vmatmul.mubr.msk.bf16.vlgmr.msra.gmra.mxu0 %vm299_vm3, %v808_v19 }
 0x4bf   :  { %2196 = vmatmul.mubr.msk.bf16.vlgmr.msra.gmra.mxu1 %vm299_vm3, %v809_v29  ;;  %2200 = vmatpush3.bf16.msra.mxu0 %v914_v20 }
 0x4c0   :  { %2206 = vmatpush3.bf16.msra.mxu1 %v962_v30  ;;  %2207 = vmatprep.mubr.msk.bf16.mxu1 %vm2391_vm0, %v2390_v8 }
 0x4c1   :  { %2217 = vmatprep.subr.bf16.mxu1 %v2390_v8  ;;  %2201 = vmatprep.mubr.msk.bf16.mxu0 %vm2391_vm0, %v2390_v8 }
 0x4c2   :  { %2211 = vmatprep.subr.bf16.mxu0 %v2390_v8 }
 0x4e1   :  { %v799_v31 = vpop.xlane.xlu0 %798 }
 0x4e2   :  { %2353 = vrcp.f32 %v799_v31 }
 0x4e4   :  { %v796_v32 = vpop.xlane.xlu1 %795 }
 0x4e5   :  { %2355 = vrcp.f32 %v796_v32  ;;  %v1040_v33 = vpop.permute.xlu0 %1039 }
 0x4e6   :  { %v1045_v43 = vsel %vm105_vm2, %v1040_v33, 0 }
 0x4e8   :  { %v1090_v35 = vpop.permute.xlu1 %1089 }
 0x4e9   :  { %v1095_v37 = vsel %vm105_vm2, %v1090_v35, 0  ;;  %v1038_v42 = vpop.permute.xlu0 %1037 }
 0x4ec   :  { %v1088_v41 = vpop.permute.xlu1 %1087 }
 0x4ed   :  { %v1140_v46 = vpop.permute.xlu0 %1139 }
 0x4ee   :  { %v1145_v48 = vsel %vm105_vm2, %v1140_v46, 0 }
 0x4ef   :  { %v2354_v34 = vpop.eup %2353 }
 0x4f0   :  { %v807_v36 = vmul.f32 %v2354_v34, %v2346_v4  ;;  %v1190_v45 = vpop.permute.xlu1 %1189 }
 0x4f1   :  { %v1195_v47 = vsel %vm105_vm2, %v1190_v45, 0  ;;  %v1138_v50 = vpop.permute.xlu0 %1137 }
 0x4f2   :  { %v2356_v38 = vpop.eup %2355  ;;  %v811_v39 = vpack.c.bf16 %v807_v36, %v807_v36 }
 0x4f3   :  { %v806_v40 = vmul.f32 %v2356_v38, %v2348_v5 }
 0x4f4   :  { %2208 = vmatmul.mubr.msk.bf16.vlgmr.msra.gmra.mxu1 %vm299_vm3, %v811_v39  ;;  %v1188_v49 = vpop.permute.xlu1 %1187 }
 0x4f5   :  { %2218 = vmatpush3.bf16.xpose.msra.mxu1 %v1095_v37  ;;  %v810_v44 = vpack.c.bf16 %v806_v40, %v806_v40  ;;  %2219 = vmatprep.mubr.msk.bf16.mxu1 %vm2391_vm0, %v2390_v8 }
 0x4f6   :  { %2229 = vmatprep.subr.bf16.mxu1 %v2390_v8 }
 0x4f7   :  { %2202 = vmatmul.mubr.msk.bf16.vlgmr.msra.gmra.mxu0 %vm299_vm3, %v810_v44 }
 0x4f8   :  { %2212 = vmatpush3.bf16.xpose.msra.mxu0 %v1045_v43  ;;  %2213 = vmatprep.mubr.msk.bf16.mxu0 %vm2391_vm0, %v2390_v8 }
 0x4f9   :  { %2223 = vmatprep.subr.bf16.mxu0 %v2390_v8 }
 0x4fc   :  { %2220 = vmatmul.mubr.msk.bf16.vlgmr.msra.gmra.mxu1 %vm105_vm2, %v1088_v41 }
 0x4fd   :  { %2230 = vmatpush3.bf16.xpose.msra.mxu1 %v1195_v47  ;;  %2231 = vmatprep.mubr.msk.bf16.mxu1 %vm2391_vm0, %v2390_v8 }
 0x4fe   :  { %2241 = vmatprep.subr.bf16.mxu1 %v2390_v8 }
 0x4ff   :  { %2214 = vmatmul.mubr.msk.bf16.vlgmr.msra.gmra.mxu0 %vm105_vm2, %v1038_v42 }
 0x500   :  { %2224 = vmatpush3.bf16.xpose.msra.mxu0 %v1145_v48  ;;  %2225 = vmatprep.mubr.msk.bf16.mxu0 %vm2391_vm0, %v2390_v8 }
 0x501   :  { %2235 = vmatprep.subr.bf16.mxu0 %v2390_v8 }
 0x504   :  { %2232 = vmatmul.mubr.msk.bf16.vlgmr.msra.gmra.mxu1 %vm105_vm2, %v1188_v49 }
 0x505   :  { %2243 = vmatprep.mubr.msk.bf16.mxu1 %vm2391_vm0, %v2390_v8 }
 0x507   :  { %2226 = vmatmul.mubr.msk.bf16.vlgmr.msra.gmra.mxu0 %vm105_vm2, %v1138_v50 }
 0x508   :  { %2237 = vmatprep.mubr.msk.bf16.mxu0 %vm2391_vm0, %v2390_v8 }
 0x57e   :  { %v2655_v51 = vpop.f32.mrf.mxu0 }
 0x57f   :  { %v2657_v52 = vpop.f32.mrf.mxu1 }
 0x580   :  { %v2191_v53 = vpop.f32.mrf.mxu0 }
 0x581   :  { %v2197_v54 = vpop.f32.mrf.mxu1 }
 0x582   :  { %v857_v55 = vpop.f32.mrf.mxu0 }
 0x583   :  { %v905_v56 = vpop.f32.mrf.mxu1 }
 0x584   :  { %v2192_v57 = vpop.f32.mrf.mxu0 }
 0x585   :  { %v2198_v58 = vpop.f32.mrf.mxu1 }
 0x5b4   :  { %v2659_v59 = vpop.f32.mrf.mxu1 }
 0x5b6   :  { %v2209_v60 = vpop.f32.mrf.mxu1 }
 0x5b7   :  { %v2661_v61 = vpop.f32.mrf.mxu0 }
 0x5b8   :  { %v1001_v62 = vpop.f32.mrf.mxu1 }
 0x5b9   :  { %v2203_v63 = vpop.f32.mrf.mxu0 }
 0x5ba   :  { %v2210_v0 = vpop.f32.mrf.mxu1 }
 0x5bb   :  { %v953_v1 = vpop.f32.mrf.mxu0 }
 0x5bc   :  { %v1131_v3 = vpop.f32.mrf.mxu1 }
 0x5bd   :  { %v2204_v4 = vpop.f32.mrf.mxu0  ;;  %v1240_v5 = vsel %vm299_vm3, %v1131_v3, -inf }
 0x5be   :  { %1241 = vmax.xlane.f32.xlu1 %v1240_v5  ;;  %v2221_v6 = vpop.f32.mrf.mxu1 }
 0x5bf   :  { %v1081_v7 = vpop.f32.mrf.mxu0 }
 0x5c0   :  { %v1237_v9 = vsel %vm299_vm3, %v1081_v7, -inf  ;;  %v1134_v10 = vpop.f32.mrf.mxu1 }
 0x5c1   :  { %1238 = vmax.xlane.f32.xlu0 %v1237_v9  ;;  %v2215_v11 = vpop.f32.mrf.mxu0 }
 0x5c2   :  { %v2222_v12 = vpop.f32.mrf.mxu1 }
 0x5c3   :  { %v1084_v13 = vpop.f32.mrf.mxu0 }
 0x5c4   :  { %v1231_v14 = vpop.f32.mrf.mxu1 }
 0x5c5   :  { %v2216_v15 = vpop.f32.mrf.mxu0  ;;  %v1246_v29 = vsel %vm299_vm3, %v1231_v14, -inf }
 0x5c6   :  { %v2233_v16 = vpop.f32.mrf.mxu1 }
 0x5c7   :  { %v1181_v17 = vpop.f32.mrf.mxu0 }
 0x5c8   :  { %v1243_v18 = vsel %vm299_vm3, %v1181_v17, -inf  ;;  %v1234_v19 = vpop.f32.mrf.mxu1 }
 0x5c9   :  { %1244 = vmax.xlane.f32.xlu0 %v1243_v18  ;;  %v2227_v20 = vpop.f32.mrf.mxu0 }
 0x5ca   :  { %v2234_v30 = vpop.f32.mrf.mxu1 }
 0x5cb   :  { %v1184_v31 = vpop.f32.mrf.mxu0 }
 0x5cd   :  { %1247 = vmax.xlane.f32.xlu0 %v1246_v29  ;;  %v2228_v32 = vpop.f32.mrf.mxu0 }
 0x5cf   :  { %1285 = vrot.lane.b32.xlu1 %v2453_v23, %s2400_s10 }
 0x647   :  { %v1242_v33 = vpop.xlane.xlu1 %1241 }
 0x648   :  { %v1250_v34 = vsub.f32 %v1131_v3, %v1242_v33 }
 0x64a   :  { %v1255_v35 = vmul.f32 1.442695, %v1250_v34  ;;  %v1239_v36 = vpop.xlane.xlu0 %1238 }
 0x64b   :  { %v1249_v38 = vsub.f32 %v1081_v7, %v1239_v36  ;;  %v1286_v37 = vpop.permute.xlu1 %1285 }
 0x64c   :  { %2357 = vpow2.f32 %v1255_v35  ;;  %v1291_v39 = vand.u32 %v1286_v37, %v2506_v2 }
 0x64d   :  { %v1253_v40 = vmul.f32 1.442695, %v1249_v38 }
 0x64e   :  { %2236 = vmatpush3.bf16.msra.mxu0 %v1291_v39 }
 0x64f   :  { %2359 = vpow2.f32 %v1253_v40  ;;  %2247 = vmatprep.subr.bf16.mxu0 %v2390_v8 }
 0x652   :  { %v1245_v45 = vpop.xlane.xlu0 %1244 }
 0x653   :  { %v1251_v49 = vsub.f32 %v1181_v17, %v1245_v45 }
 0x655   :  { %v1257_v50 = vmul.f32 1.442695, %v1251_v49 }
 0x656   :  { %v1248_v46 = vpop.xlane.xlu0 %1247 }
 0x657   :  { %v1252_v47 = vsub.f32 %v1231_v14, %v1248_v46 }
 0x659   :  { %v2358_v41 = vpop.eup %2357  ;;  %v1259_v48 = vmul.f32 1.442695, %v1252_v47 }
 0x65a   :  { %v1264_v42 = vsel %vm299_vm3, %v2358_v41, 0.0 }
 0x65b   :  { %1265 = vadd.xlane.f32.xlu0 %v1264_v42  ;;  %2361 = vpow2.f32 %v1259_v48 }
 0x65c   :  { %v2360_v43 = vpop.eup %2359  ;;  %2363 = vpow2.f32 %v1257_v50 }
 0x65d   :  { %v1261_v44 = vsel %vm299_vm3, %v2360_v43, 0.0 }
 0x65e   :  { %1262 = vadd.xlane.f32.xlu1 %v1261_v44 }
 0x668   :  { %v2362_v53 = vpop.eup %2361 }
 0x669   :  { %v1270_v54 = vsel %vm299_vm3, %v2362_v53, 0.0  ;;  %v2364_v55 = vpop.eup %2363 }
 0x66a   :  { %v1267_v56 = vsel %vm299_vm3, %v2364_v55, 0.0 }
 0x66f   :  { %1381 = vrot.lane.b32.xlu1 %v2456_v24, %s2400_s10 }
 0x671   :  { %1333 = vrot.lane.b32.xlu0 %v2461_v25, %s2400_s10 }
 0x673   :  { %1429 = vrot.lane.b32.xlu1 %v2464_v26, %s2400_s10 }
 0x690   :  { %1271 = vadd.xlane.f32.xlu0 %v1270_v54 }
 0x697   :  { %1268 = vadd.xlane.f32.xlu1 %v1267_v56 }
 0x6a6   :  { %1512 = vrot.lane.b32.xlu0 %v2453_v23, %s2401_s11 }
 0x6a8   :  { %1562 = vrot.lane.b32.xlu1 %v2461_v25, %s2401_s11 }
 0x6aa   :  { %1510 = vrot.lane.b32.xlu0 %v2526_v22, %s2402_s12 }
 0x6ac   :  { %1560 = vrot.lane.b32.xlu1 %v2520_v21, %s2402_s12 }
 0x6ae   :  { %1612 = vrot.lane.b32.xlu0 %v2456_v24, %s2401_s11 }
 0x6b0   :  { %1662 = vrot.lane.b32.xlu1 %v2464_v26, %s2401_s11 }
 0x6b2   :  { %1610 = vrot.lane.b32.xlu0 %v2538_v28, %s2402_s12 }
 0x6b4   :  { %1660 = vrot.lane.b32.xlu1 %v2531_v27, %s2402_s12 }
 0x6e4   :  { %v1266_v57 = vpop.xlane.xlu0 %1265 }
 0x6e5   :  { %2365 = vrcp.f32 %v1266_v57 }
 0x6e7   :  { %v1263_v58 = vpop.xlane.xlu1 %1262 }
 0x6e8   :  { %2367 = vrcp.f32 %v1263_v58  ;;  %v1334_v60 = vpop.permute.xlu0 %1333 }
 0x6e9   :  { %v1339_v62 = vand.u32 %v1334_v60, %v2506_v2 }
 0x6eb   :  { %2242 = vmatpush3.bf16.msra.mxu1 %v1339_v62  ;;  %v1382_v22 = vpop.permute.xlu1 %1381 }
 0x6ec   :  { %2253 = vmatprep.subr.bf16.mxu1 %v2390_v8  ;;  %v1387_v5 = vand.u32 %v1382_v22, %v2506_v2 }
 0x6ef   :  { %v1430_v63 = vpop.permute.xlu1 %1429 }
 0x6f0   :  { %v1435_v28 = vand.u32 %v1430_v63, %v2506_v2 }
 0x6f2   :  { %v2366_v21 = vpop.eup %2365 }
 0x6f3   :  { %v1278_v0 = vmul.f32 %v2366_v21, %v2358_v41 }
 0x6f5   :  { %v2368_v1 = vpop.eup %2367  ;;  %v1282_v3 = vpack.c.bf16 %v1278_v0, %v1278_v0 }
 0x6f6   :  { %v1277_v4 = vmul.f32 %v2368_v1, %v2360_v43 }
 0x6f7   :  { %2244 = vmatmul.mubr.msk.bf16.vlgmr.msra.gmra.mxu1 %vm299_vm3, %v1282_v3 }
 0x6f8   :  { %2254 = vmatpush3.bf16.msra.mxu1 %v1435_v28  ;;  %v1281_v27 = vpack.c.bf16 %v1277_v4, %v1277_v4  ;;  %2255 = vmatprep.mubr.msk.bf16.mxu1 %vm2391_vm0, %v2390_v8 }
 0x6f9   :  { %2265 = vmatprep.subr.bf16.mxu1 %v2390_v8 }
 0x6fa   :  { %2238 = vmatmul.mubr.msk.bf16.vlgmr.msra.gmra.mxu0 %vm299_vm3, %v1281_v27 }
 0x6fb   :  { %2248 = vmatpush3.bf16.msra.mxu0 %v1387_v5  ;;  %2249 = vmatprep.mubr.msk.bf16.mxu0 %vm2391_vm0, %v2390_v8 }
 0x6fc   :  { %2259 = vmatprep.subr.bf16.mxu0 %v2390_v8 }
 0x719   :  { %v1272_v6 = vpop.xlane.xlu0 %1271 }
 0x71a   :  { %2369 = vrcp.f32 %v1272_v6 }
 0x71d   :  { %v1513_v14 = vpop.permute.xlu0 %1512 }
 0x71e   :  { %v1518_v20 = vsel %vm105_vm2, %v1513_v14, 0 }
 0x720   :  { %v1269_v7 = vpop.xlane.xlu1 %1268 }
 0x721   :  { %2371 = vrcp.f32 %v1269_v7  ;;  %v1511_v19 = vpop.permute.xlu0 %1510 }
 0x724   :  { %v1563_v10 = vpop.permute.xlu1 %1562 }
 0x725   :  { %v1568_v12 = vsel %vm105_vm2, %v1563_v10, 0  ;;  %v1613_v31 = vpop.permute.xlu0 %1612 }
 0x726   :  { %v1618_v32 = vsel %vm105_vm2, %v1613_v31, 0 }
 0x727   :  { %v2370_v9 = vpop.eup %2369 }
 0x728   :  { %v1280_v11 = vmul.f32 %v2370_v9, %v2362_v53  ;;  %v1561_v15 = vpop.permute.xlu1 %1560 }
 0x729   :  { %v1611_v34 = vpop.permute.xlu0 %1610 }
 0x72a   :  { %v1284_v13 = vpack.c.bf16 %v1280_v11, %v1280_v11 }
 0x72c   :  { %2256 = vmatmul.mubr.msk.bf16.vlgmr.msra.gmra.mxu1 %vm299_vm3, %v1284_v13  ;;  %v1663_v18 = vpop.permute.xlu1 %1662 }
 0x72d   :  { %2266 = vmatpush3.bf16.xpose.msra.mxu1 %v1568_v12  ;;  %2267 = vmatprep.mubr.msk.bf16.mxu1 %vm2391_vm0, %v2390_v8  ;;  %v1668_v30 = vsel %vm105_vm2, %v1663_v18, 0 }
 0x72e   :  { %v2372_v16 = vpop.eup %2371  ;;  %2277 = vmatprep.subr.bf16.mxu1 %v2390_v8 }
 0x72f   :  { %v1279_v17 = vmul.f32 %v2372_v16, %v2364_v55 }
 0x730   :  { %v1661_v33 = vpop.permute.xlu1 %1660 }
 0x731   :  { %v1283_v29 = vpack.c.bf16 %v1279_v17, %v1279_v17 }
 0x733   :  { %2250 = vmatmul.mubr.msk.bf16.vlgmr.msra.gmra.mxu0 %vm299_vm3, %v1283_v29 }
 0x734   :  { %2268 = vmatmul.mubr.msk.bf16.vlgmr.msra.gmra.mxu1 %vm105_vm2, %v1561_v15  ;;  %2260 = vmatpush3.bf16.xpose.msra.mxu0 %v1518_v20 }
 0x735   :  { %2261 = vmatprep.mubr.msk.bf16.mxu0 %vm2391_vm0, %v2390_v8  ;;  %2278 = vmatpush3.bf16.xpose.msra.mxu1 %v1668_v30 }
 0x736   :  { %2271 = vmatprep.subr.bf16.mxu0 %v2390_v8  ;;  %2279 = vmatprep.mubr.msk.bf16.mxu1 %vm2391_vm0, %v2390_v8 }
 0x737   :  { %2289 = vmatprep.subr.bf16.mxu1 %v2390_v8 }
 0x73b   :  { %2262 = vmatmul.mubr.msk.bf16.vlgmr.msra.gmra.mxu0 %vm105_vm2, %v1511_v19 }
 0x73c   :  { %2272 = vmatpush3.bf16.xpose.msra.mxu0 %v1618_v32  ;;  %2280 = vmatmul.mubr.msk.bf16.vlgmr.msra.gmra.mxu1 %vm105_vm2, %v1661_v33 }
 0x73d   :  { %2273 = vmatprep.mubr.msk.bf16.mxu0 %vm2391_vm0, %v2390_v8  ;;  %2283 = vmatprep.subr.bf16.mxu0 %v2390_v8 }
 0x73e   :  { %2291 = vmatprep.mubr.msk.bf16.mxu1 %vm2391_vm0, %v2390_v8 }
 0x743   :  { %2274 = vmatmul.mubr.msk.bf16.vlgmr.msra.gmra.mxu0 %vm105_vm2, %v1611_v34 }
 0x744   :  { %2285 = vmatprep.mubr.msk.bf16.mxu0 %vm2391_vm0, %v2390_v8 }
 0x7b7   :  { %v2723_v35 = vpop.f32.mrf.mxu1 }
 0x7b9   :  { %v2245_v36 = vpop.f32.mrf.mxu1 }
 0x7ba   :  { %v2725_v38 = vpop.f32.mrf.mxu0 }
 0x7bb   :  { %v1378_v37 = vpop.f32.mrf.mxu1 }
 0x7bc   :  { %v2239_v39 = vpop.f32.mrf.mxu0 }
 0x7bd   :  { %v2246_v40 = vpop.f32.mrf.mxu1 }
 0x7be   :  { %v1330_v41 = vpop.f32.mrf.mxu0  ;;  %v2040_v40 = vpack.c.bf16 %v2657_v52, %v2657_v52  ;;  %v2043_v52 = vpack.c.bf16 %v2725_v38, %v2725_v38 }
 0x7bf   :  { %v2042_v41 = vpack.c.bf16 %v2659_v59, %v2659_v59 }
 0x7c0   :  { %v2240_v42 = vpop.f32.mrf.mxu0 }
 0x7c1   :  { %v2039_v42 = vpack.c.bf16 %v2655_v51, %v2655_v51 }
 0x7ec   :  { %v2727_v43 = vpop.f32.mrf.mxu1 }
 0x7ee   :  { %v2257_v44 = vpop.f32.mrf.mxu1 }
 0x7f0   :  { %v1474_v45 = vpop.f32.mrf.mxu1 }
 0x7f2   :  { %v2258_v46 = vpop.f32.mrf.mxu1 }
 0x7f3   :  { %v2729_v47 = vpop.f32.mrf.mxu0 }
 0x7f4   :  { %v1604_v48 = vpop.f32.mrf.mxu1  ;;  %v2045_v51 = vpack.c.bf16 %v2729_v47, %v2729_v47 }
 0x7f5   :  { %v2251_v49 = vpop.f32.mrf.mxu0  ;;  %v1713_v50 = vsel %vm299_vm3, %v1604_v48, -inf }
 0x7f6   :  { %1714 = vmax.xlane.f32.xlu1 %v1713_v50  ;;  %v2269_v53 = vpop.f32.mrf.mxu1 }
 0x7f7   :  { %v1426_v54 = vpop.f32.mrf.mxu0 }
 0x7f8   :  { %v1607_v55 = vpop.f32.mrf.mxu1 }
 0x7f9   :  { %v2252_v56 = vpop.f32.mrf.mxu0 }
 0x7fa   :  { %v2270_v57 = vpop.f32.mrf.mxu1 }
 0x7fb   :  { %v1554_v58 = vpop.f32.mrf.mxu0 }
 0x7fc   :  { %v1710_v60 = vsel %vm299_vm3, %v1554_v58, -inf  ;;  %v1704_v62 = vpop.f32.mrf.mxu1 }
 0x7fd   :  { %1711 = vmax.xlane.f32.xlu0 %v1710_v60  ;;  %v2263_v22 = vpop.f32.mrf.mxu0  ;;  %v1719_v5 = vsel %vm299_vm3, %v1704_v62, -inf }
 0x7fe   :  { %v2281_v21 = vpop.f32.mrf.mxu1 }
 0x7ff   :  { %v1557_v63 = vpop.f32.mrf.mxu0 }
 0x800   :  { %v1707_v0 = vpop.f32.mrf.mxu1 }
 0x801   :  { %v2264_v1 = vpop.f32.mrf.mxu0 }
 0x802   :  { %v2282_v3 = vpop.f32.mrf.mxu1 }
 0x803   :  { %v1654_v28 = vpop.f32.mrf.mxu0 }
 0x804   :  { %v1716_v4 = vsel %vm299_vm3, %v1654_v28, -inf }
 0x805   :  { %1717 = vmax.xlane.f32.xlu0 %v1716_v4  ;;  %v2275_v27 = vpop.f32.mrf.mxu0 }
 0x807   :  { %v1657_v6 = vpop.f32.mrf.mxu0  ;;  %1758 = vrot.lane.b32.xlu1 %v2453_v23, %s2403_s13 }
 0x809   :  { %1720 = vmax.xlane.f32.xlu0 %v1719_v5  ;;  %v2276_v7 = vpop.f32.mrf.mxu0 }
 0x87f   :  { %v1715_v9 = vpop.xlane.xlu1 %1714 }
 0x880   :  { %v1723_v10 = vsub.f32 %v1604_v48, %v1715_v9 }
 0x882   :  { %v1728_v11 = vmul.f32 1.442695, %v1723_v10 }
 0x883   :  { %v1759_v12 = vpop.permute.xlu1 %1758 }
 0x884   :  { %2373 = vpow2.f32 %v1728_v11  ;;  %v1764_v13 = vand.u32 %v1759_v12, %v2506_v2 }
 0x886   :  { %v1712_v14 = vpop.xlane.xlu0 %1711  ;;  %2284 = vmatpush3.bf16.msra.mxu0 %v1764_v13 }
 0x887   :  { %v1722_v15 = vsub.f32 %v1554_v58, %v1712_v14  ;;  %2295 = vmatprep.subr.bf16.mxu0 %v2390_v8 }
 0x889   :  { %v1726_v16 = vmul.f32 1.442695, %v1722_v15 }
 0x88b   :  { %2375 = vpow2.f32 %v1726_v16 }
 0x88e   :  { %v1718_v17 = vpop.xlane.xlu0 %1717 }
 0x88f   :  { %v1724_v18 = vsub.f32 %v1654_v28, %v1718_v17 }
 0x891   :  { %v2374_v19 = vpop.eup %2373  ;;  %v1730_v23 = vmul.f32 1.442695, %v1724_v18 }
 0x892   :  { %v1737_v20 = vsel %vm299_vm3, %v2374_v19, 0.0  ;;  %v1721_v29 = vpop.xlane.xlu0 %1720 }
 0x893   :  { %2377 = vpow2.f32 %v1730_v23  ;;  %1738 = vadd.xlane.f32.xlu0 %v1737_v20  ;;  %v1725_v30 = vsub.f32 %v1704_v62, %v1721_v29 }
 0x895   :  { %v1732_v31 = vmul.f32 1.442695, %v1725_v30 }
 0x897   :  { %2379 = vpow2.f32 %v1732_v31 }
 0x898   :  { %v2376_v32 = vpop.eup %2375 }
 0x899   :  { %v1734_v33 = vsel %vm299_vm3, %v2376_v32, 0.0 }
 0x89a   :  { %1735 = vadd.xlane.f32.xlu1 %v1734_v33 }
 0x8a0   :  { %v2378_v34 = vpop.eup %2377 }
 0x8a1   :  { %v1740_v36 = vsel %vm299_vm3, %v2378_v34, 0.0 }
 0x8a2   :  { %1741 = vadd.xlane.f32.xlu1 %v1740_v36 }
 0x8a4   :  { %v2742_v37 = vpop.eup %2379 }
 0x8a5   :  { %v1743_v39 = vsel %vm299_vm3, %v2742_v37, 0.0 }
 0x8a6   :  { %1744 = vadd.xlane.f32.xlu0 %v1743_v39 }
 0x8b3   :  { %1854 = vrot.lane.b32.xlu1 %v2456_v24, %s2403_s13  ;;  %v2044_v24 = vpack.c.bf16 %v2723_v35, %v2723_v35 }
 0x8b7   :  { %1902 = vrot.lane.b32.xlu1 %v2464_v26, %s2403_s13  ;;  %v2041_v26 = vpack.c.bf16 %v2661_v61, %v2661_v61 }
 0x8bb   :  { %1022 = vrot.lane.b32.xlu1 %v2040_v40, %s2404_s14 }
 0x8bc   :  { %1806 = vrot.lane.b32.xlu0 %v2461_v25, %s2403_s13  ;;  %v2046_v25 = vpack.c.bf16 %v2727_v43, %v2727_v43 }
 0x8bf   :  { %1026 = vrot.lane.b32.xlu1 %v2042_v41, %s2404_s14 }
 0x8c0   :  { %1020 = vrot.lane.b32.xlu0 %v2039_v42, %s2404_s14 }
 0x8c3   :  { %1495 = vrot.lane.b32.xlu1 %v2044_v24, %s2405_s15 }
 0x8c4   :  { %1024 = vrot.lane.b32.xlu0 %v2041_v26, %s2404_s14 }
 0x8c7   :  { %1499 = vrot.lane.b32.xlu1 %v2046_v25, %s2405_s15 }
 0x8c8   :  { %1493 = vrot.lane.b32.xlu0 %v2043_v52, %s2405_s15 }
 0x8cc   :  { %1497 = vrot.lane.b32.xlu0 %v2045_v51, %s2405_s15 }
 0x91c   :  { %v1739_v59 = vpop.xlane.xlu0 %1738 }
 0x91d   :  { %2381 = vrcp.f32 %v1739_v59 }
 0x923   :  { %v1736_v35 = vpop.xlane.xlu1 %1735 }
 0x924   :  { %2383 = vrcp.f32 %v1736_v35 }
 0x92a   :  { %v2382_v46 = vpop.eup %2381 }
 0x92b   :  { %v1742_v61 = vpop.xlane.xlu1 %1741  ;;  %v1751_v53 = vmul.f32 %v2382_v46, %v2374_v19 }
 0x92c   :  { %2385 = vrcp.f32 %v1742_v61 }
 0x92d   :  { %v1755_v58 = vpack.c.bf16 %v1751_v53, %v1751_v53 }
 0x92f   :  { %v1855_v44 = vpop.permute.xlu1 %1854  ;;  %v1745_v45 = vpop.xlane.xlu0 %1744 }
 0x930   :  { %2387 = vrcp.f32 %v1745_v45  ;;  %v1860_v38 = vand.u32 %v1855_v44, %v2506_v2 }
 0x931   :  { %v2384_v43 = vpop.eup %2383 }
 0x932   :  { %v1750_v48 = vmul.f32 %v2384_v43, %v2376_v32 }
 0x933   :  { %v1903_v49 = vpop.permute.xlu1 %1902  ;;  %v1807_v50 = vpop.permute.xlu0 %1806 }
 0x934   :  { %v1812_v47 = vand.u32 %v1807_v50, %v2506_v2  ;;  %v1754_v54 = vpack.c.bf16 %v1750_v48, %v1750_v48  ;;  %v1908_v55 = vand.u32 %v1903_v49, %v2506_v2 }
 0x936   :  { %2286 = vmatmul.mubr.msk.bf16.vlgmr.msra.gmra.mxu0 %vm299_vm3, %v1754_v54  ;;  %2290 = vmatpush3.bf16.msra.mxu1 %v1812_v47 }
 0x937   :  { %v1023_v56 = vpop.permute.xlu1 %1022  ;;  %v1021_v57 = vpop.permute.xlu0 %1020  ;;  %2296 = vmatpush3.bf16.msra.mxu0 %v1860_v38  ;;  %2297 = vmatprep.mubr.msk.bf16.mxu0 %vm2391_vm0, %v2390_v8 }
 0x938   :  { %1034 = vst.msk [vmem:[%s2823_s2 + $0x4] sm:$0xf] %vm1032_vm6, %v1023_v56  ;;  %1033 = vst.msk [vmem:[%s2823_s2] sm:$0xf] %vm1032_vm6, %v1021_v57  ;;  %2301 = vmatprep.subr.bf16.mxu1 %v2390_v8 }
 0x939   :  { %v2386_v2 = vpop.eup %2385  ;;  %2292 = vmatmul.mubr.msk.bf16.vlgmr.msra.gmra.mxu1 %vm299_vm3, %v1755_v58 }
 0x93a   :  { %v1752_v60 = vmul.f32 %v2386_v2, %v2378_v34  ;;  %2302 = vmatpush3.bf16.msra.mxu1 %v1908_v55  ;;  %2303 = vmatprep.mubr.msk.bf16.mxu1 %vm2391_vm0, %v2390_v8 }
 0x93b   :  { %v1027_v62 = vpop.permute.xlu1 %1026  ;;  %v1025_v22 = vpop.permute.xlu0 %1024 }
 0x93c   :  { %1036 = vst.msk [vmem:[%s2823_s2 + $0xc] sm:$0xf] %vm1032_vm6, %v1027_v62  ;;  %1035 = vst.msk [vmem:[%s2823_s2 + $0x8] sm:$0xf] %vm1032_vm6, %v1025_v22  ;;  %v1756_v21 = vpack.c.bf16 %v1752_v60, %v1752_v60 }
 0x93d   :  { %v2388_v63 = vpop.eup %2387 }
 0x93e   :  { %2298 = vmatmul.mubr.msk.bf16.vlgmr.msra.gmra.mxu0 %vm299_vm3, %v1756_v21  ;;  %v1753_v0 = vmul.f32 %v2388_v63, %v2742_v37 }
 0x93f   :  { %v1496_v8 = vpop.permute.xlu1 %1495  ;;  %v1494_v1 = vpop.permute.xlu0 %1493 }
 0x940   :  { %1507 = vst.msk [vmem:[%s2823_s2 + $0x4] sm:$0xf] %vm1505_vm7, %v1496_v8  ;;  %1506 = vst.msk [vmem:[%s2823_s2] sm:$0xf] %vm1505_vm7, %v1494_v1  ;;  %v1757_v3 = vpack.c.bf16 %v1753_v0, %v1753_v0 }
 0x942   :  { %2304 = vmatmul.mubr.msk.bf16.vlgmr.msra.gmra.mxu1 %vm299_vm3, %v1757_v3 }
 0x943   :  { %v1500_v28 = vpop.permute.xlu1 %1499  ;;  %v1498_v4 = vpop.permute.xlu0 %1497 }
 0x944   :  { %1509 = vst.msk [vmem:[%s2823_s2 + $0xc] sm:$0xf] %vm1505_vm7, %v1500_v28  ;;  %1508 = vst.msk [vmem:[%s2823_s2 + $0x8] sm:$0xf] %vm1505_vm7, %v1498_v4 }
 0x9f6   :  { %v1800_v27 = vpop.f32.mrf.mxu0 }
 0x9f7   :  { %v2047_v5 = vpack.c.bf16 %v1800_v27, %v1800_v27 }
 0x9f8   :  { %v2287_v6 = vpop.f32.mrf.mxu0 }
 0x9f9   :  { %1966 = vrot.lane.b32.xlu0 %v2047_v5, %s2406_s30  ;;  %v1848_v7 = vpop.f32.mrf.mxu1 }
 0x9fa   :  { %v2048_v9 = vpack.c.bf16 %v1848_v7, %v1848_v7  ;;  %v1803_v10 = vpop.f32.mrf.mxu0 }
 0x9fb   :  { %v2293_v11 = vpop.f32.mrf.mxu1 }
 0x9fc   :  { %v2288_v12 = vpop.f32.mrf.mxu0  ;;  %1968 = vrot.lane.b32.xlu1 %v2048_v9, %s2406_s30 }
 0x9fd   :  { %v1851_v13 = vpop.f32.mrf.mxu1 }
 0x9fe   :  { %v1896_v14 = vpop.f32.mrf.mxu0 }
 0x9ff   :  { %v2049_v15 = vpack.c.bf16 %v1896_v14, %v1896_v14  ;;  %v2294_v16 = vpop.f32.mrf.mxu1 }
 0xa00   :  { %v2299_v17 = vpop.f32.mrf.mxu0 }
 0xa01   :  { %1970 = vrot.lane.b32.xlu0 %v2049_v15, %s2406_s30 }
 0xa02   :  { %v1899_v18 = vpop.f32.mrf.mxu0  ;;  %v1944_v19 = vpop.f32.mrf.mxu1 }
 0xa03   :  { %v2050_v23 = vpack.c.bf16 %v1944_v19, %v1944_v19 }
 0xa04   :  { %v2300_v20 = vpop.f32.mrf.mxu0  ;;  %v2305_v29 = vpop.f32.mrf.mxu1 }
 0xa05   :  { %1972 = vrot.lane.b32.xlu1 %v2050_v23, %s2406_s30 }
 0xa06   :  { %v1947_v30 = vpop.f32.mrf.mxu1 }
 0xa08   :  { %v2306_v31 = vpop.f32.mrf.mxu1 }
 0xa6b   :  { %v1967_v32 = vpop.permute.xlu0 %1966 }
 0xa6c   :  { %1979 = vst.msk [vmem:[%s2823_s2] sm:$0xf] %vm1978_vm8, %v1967_v32 }
 0xa6e   :  { %v1969_v33 = vpop.permute.xlu1 %1968 }
 0xa6f   :  { %1980 = vst.msk [vmem:[%s2823_s2 + $0x4] sm:$0xf] %vm1978_vm8, %v1969_v33 }
 0xa73   :  { %v1971_v34 = vpop.permute.xlu0 %1970 }
 0xa74   :  { %1981 = vst.msk [vmem:[%s2823_s2 + $0x8] sm:$0xf] %vm1978_vm8, %v1971_v34 }
 0xa77   :  { %v1973_v36 = vpop.permute.xlu1 %1972 }
 0xa78   :  { %1982 = vst.msk [vmem:[%s2823_s2 + $0xc] sm:$0xf] %vm1978_vm8, %v1973_v36 }

</bundles_post_ra>
